<compile_context>
chip_gen: v5e
topology: v5e:2x2
jax: 0.10.0
libtpu: 0.0.40
codegen_flags: <defaults>
</compile_context>

<pallas_src>
import functools

import jax
import jax.numpy as jnp
from jax.experimental import pallas as pl
from jax.experimental.pallas import tpu as pltpu


def _conv_bn_relu_kernel(x_ref, w_ref, b_ref, o_ref, acc_ref, *,
                         K, stride, Hout, Wout):
    """One padded NHWC image: conv as K*K shifted matmuls + bias + ReLU."""
    Cin = x_ref.shape[-1]
    Cp = o_ref.shape[-1]
    x = x_ref[0]                                        # (Hp, Wp, Cin), bf16
    acc_ref[...] = jnp.zeros_like(acc_ref)
    # In-kernel im2col: accumulate K*K shifted (rows, Cin) @ (Cin, Cp) matmuls
    # into the f32 VMEM scratch (unrolled static loop -> MXU back-to-back).
    for kh in range(K):
        for kw in range(K):
            sl = x[kh:kh + stride * Hout:stride,
                   kw:kw + stride * Wout:stride, :]
            acc_ref[...] += jnp.dot(
                sl.reshape(Hout * Wout, Cin), w_ref[kh * K + kw],
                preferred_element_type=jnp.float32)
    y = jnp.maximum(acc_ref[...] + b_ref[...], 0.0)     # f32 epilogue (VPU)
    o_ref[0] = y.reshape(Hout, Wout, Cp).astype(o_ref.dtype)


def conv_bn_relu(x_nhwc, w_kkcp, bias_cp, *, K, stride, padding, out_dtype):
    """Fused Conv2d + folded BatchNorm + ReLU. x_nhwc: (N,H,W,Cin) bf16."""
    N, H, W, Cin = x_nhwc.shape
    Cp = w_kkcp.shape[-1]
    assert w_kkcp.shape == (K * K, Cin, Cp)
    Hout = (H + 2 * padding - K) // stride + 1
    Wout = (W + 2 * padding - K) // stride + 1
    Hp, Wp = H + 2 * padding, W + 2 * padding

    # Spatial zero-pad only (cheap; no 9x im2col materialization).
    xp = jnp.pad(x_nhwc, ((0, 0), (padding, padding), (padding, padding), (0, 0)))

    kernel = functools.partial(_conv_bn_relu_kernel,
                               K=K, stride=stride, Hout=Hout, Wout=Wout)
    return pl.pallas_call(
        kernel,
        out_shape=jax.ShapeDtypeStruct((N, Hout, Wout, Cp), out_dtype),
        grid_spec=pltpu.PrefetchScalarGridSpec(
            num_scalar_prefetch=0,
            grid=(N,),
            in_specs=[
                pl.BlockSpec((1, Hp, Wp, Cin), lambda n: (n, 0, 0, 0)),
                # Constant index_map -> weight / bias fetched once, not per step.
                pl.BlockSpec((K * K, Cin, Cp), lambda n: (0, 0, 0)),
                pl.BlockSpec((1, Cp), lambda n: (0, 0)),
            ],
            out_specs=pl.BlockSpec((1, Hout, Wout, Cp), lambda n: (n, 0, 0, 0)),
            scratch_shapes=[pltpu.VMEM((Hout * Wout, Cp), jnp.float32)],
        ),
        compiler_params=pltpu.CompilerParams(
            dimension_semantics=("parallel",),          # megacore on v7x
            vmem_limit_bytes=64 * 1024 * 1024,
        ),
    )(xp, w_kkcp, bias_cp)


def _fold_bn(conv_b, gamma, beta, rmean, rvar, eps=1e-5):
    s = gamma / jnp.sqrt(rvar + eps)
    b = (conv_b - rmean) * s + beta
    return s, b


def _prep_weight(w_oihw, scale, bias, *, cin_pad, cout_pad):
    """(Cout,Cin,K,K) -> (K*K, cin_pad, cout_pad) bf16 with BN scale folded in."""
    Cout, Cin, K, _ = w_oihw.shape
    w = jnp.transpose(w_oihw, (2, 3, 1, 0)) * scale[None, None, None, :]
    w = jnp.pad(w, ((0, 0), (0, 0), (0, cin_pad - Cin), (0, cout_pad - Cout)))
    w = w.reshape(K * K, cin_pad, cout_pad).astype(jnp.bfloat16)
    b = jnp.pad(bias, (0, cout_pad - Cout)).reshape(1, cout_pad).astype(jnp.float32)
    return w, b


def unet_down_block(x_nchw, params, *, kernel_size, stride):
    """Forward pass of UNetDownBlock. Input/output are NCHW (PyTorch convention)."""
    N, Cin, H, W = x_nchw.shape
    Cout = params["w1"].shape[0]
    Cp = ((Cout + 127) // 128) * 128        # lane-dense padded channel count

    s1, fb1 = _fold_bn(params["b1"], params["gamma1"], params["beta1"],
                       params["rmean1"], params["rvar1"])
    s2, fb2 = _fold_bn(params["b2"], params["gamma2"], params["beta2"],
                       params["rmean2"], params["rvar2"])

    w1, b1 = _prep_weight(params["w1"], s1, fb1, cin_pad=Cin, cout_pad=Cp)
    w2, b2 = _prep_weight(params["w2"], s2, fb2, cin_pad=Cp, cout_pad=Cp)

    x_nhwc = jnp.transpose(x_nchw, (0, 2, 3, 1)).astype(jnp.bfloat16)

    # conv1: padding=1 regardless of ctor arg (matches the reference conv()).
    h = conv_bn_relu(x_nhwc, w1, b1, K=kernel_size, stride=stride, padding=1,
                     out_dtype=jnp.bfloat16)
    # conv2: 3x3, stride 1, padding 1. Padded zero channels stay zero.
    y = conv_bn_relu(h, w2, b2, K=3, stride=1, padding=1,
                     out_dtype=jnp.float32)

    y = y[..., :Cout]
    return jnp.transpose(y, (0, 3, 1, 2))


def _reference(x_nchw, params, *, stride):
    """Plain-JAX f32 reference for correctness checking."""
    eps = 1e-5

    def block(x, w, b, gamma, beta, rm, rv, st):
        y = jax.lax.conv_general_dilated(
            x, w, (st, st), [(1, 1), (1, 1)],
            dimension_numbers=("NCHW", "OIHW", "NCHW"))
        y = y + b[None, :, None, None]
        y = (y - rm[None, :, None, None]) / jnp.sqrt(rv + eps)[None, :, None, None]
        y = y * gamma[None, :, None, None] + beta[None, :, None, None]
        return jnp.maximum(y, 0.0)

    h = block(x_nchw, params["w1"], params["b1"], params["gamma1"], params["beta1"],
              params["rmean1"], params["rvar1"], stride)
    h = block(h, params["w2"], params["b2"], params["gamma2"], params["beta2"],
              params["rmean2"], params["rvar2"], 1)
    return h


if __name__ == "__main__":
    key = jax.random.PRNGKey(0)
    N, Cin, H, W = 2, 4, 16, 16
    Cout, K, stride = 8, 3, 1

    k1, k2, k3, k4, k5 = jax.random.split(key, 5)
    x = jax.random.normal(k1, (N, Cin, H, W), jnp.float32)

    fan1 = Cin * K * K
    fan2 = Cout * 3 * 3
    params = {
        # conv1: Conv2d(Cin, Cout, K, stride, padding=1)
        "w1": jax.random.uniform(k2, (Cout, Cin, K, K), jnp.float32, -1.0, 1.0)
              / jnp.sqrt(fan1),
        "b1": jax.random.uniform(k3, (Cout,), jnp.float32, -1.0, 1.0) / jnp.sqrt(fan1),
        # conv2: Conv2d(Cout, Cout, 3, 1, 1)
        "w2": jax.random.uniform(k4, (Cout, Cout, 3, 3), jnp.float32, -1.0, 1.0)
              / jnp.sqrt(fan2),
        "b2": jax.random.uniform(k5, (Cout,), jnp.float32, -1.0, 1.0) / jnp.sqrt(fan2),
        # BatchNorm2d fresh-init parameters / running stats (eval mode)
        "gamma1": jnp.ones((Cout,), jnp.float32),
        "beta1": jnp.zeros((Cout,), jnp.float32),
        "rmean1": jnp.zeros((Cout,), jnp.float32),
        "rvar1": jnp.ones((Cout,), jnp.float32),
        "gamma2": jnp.ones((Cout,), jnp.float32),
        "beta2": jnp.zeros((Cout,), jnp.float32),
        "rmean2": jnp.zeros((Cout,), jnp.float32),
        "rvar2": jnp.ones((Cout,), jnp.float32),
    }

    fwd = jax.jit(functools.partial(unet_down_block, kernel_size=K, stride=stride))
    out = jax.block_until_ready(fwd(x, params))

    ref = _reference(x, params, stride=stride)
    assert out.shape == ref.shape == (N, Cout, H // stride, W // stride)
    # bf16 MXU operands with f32 accumulation -> loosened tolerance vs f32 ref.
    assert jnp.allclose(out, ref, atol=3e-2, rtol=3e-2), "mismatch vs reference"

    print("KERNEL_OK")
</pallas_src>

<mosaic_0001>
module attributes {stable_mosaic.version = 11 : i64} {
  func.func @_conv_bn_relu_kernel(%arg0: i32, %arg1: memref<1x18x18x4xbf16, #tpu.memory_space<vmem>>, %arg2: memref<9x4x128xbf16, #tpu.memory_space<vmem>>, %arg3: memref<1x128xf32, #tpu.memory_space<vmem>>, %arg4: memref<1x16x16x128xbf16, #tpu.memory_space<vmem>>, %arg5: memref<256x128xf32, #tpu.memory_space<vmem>>) attributes {dimension_semantics = [#tpu.dimension_semantics<parallel>], iteration_bounds = array<i64: 2>, scalar_prefetch = 0 : i64, scratch_operands = 1 : i64, tpu.core_type = #tpu.core_type<tc>, window_params = [{transform_indices = @transform_0, window_bounds = array<i64: 1, 18, 18, 4>}, {pipeline_mode = #tpu.pipeline_mode<synchronous>, transform_indices = @transform_1, window_bounds = array<i64: 9, 4, 128>}, {pipeline_mode = #tpu.pipeline_mode<synchronous>, transform_indices = @transform_2, window_bounds = array<i64: 1, 128>}, {transform_indices = @transform_3, window_bounds = array<i64: 1, 16, 16, 128>}]} {
    %c0 = arith.constant 0 : index
    %c0_0 = arith.constant 0 : index
    %c0_1 = arith.constant 0 : index
    %c0_2 = arith.constant 0 : index
    %0 = vector.load %arg1[%c0, %c0_0, %c0_1, %c0_2] : memref<1x18x18x4xbf16, #tpu.memory_space<vmem>>, vector<1x18x18x4xbf16>
    %1 = vector.shape_cast %0 : vector<1x18x18x4xbf16> to vector<18x18x4xbf16>
    %cst = arith.constant 0.000000e+00 : f32
    %2 = vector.broadcast %cst : f32 to vector<256x128xf32>
    %c0_3 = arith.constant 0 : index
    %c0_4 = arith.constant 0 : index
    %3 = vector.load %arg5[%c0_3, %c0_4] : memref<256x128xf32, #tpu.memory_space<vmem>>, vector<256x128xf32>
    tpu.vector_store %arg5[%c0_3, %c0_4], %2 {strides = array<i32>} : memref<256x128xf32, #tpu.memory_space<vmem>>, vector<256x128xf32>,
    %4 = vector.extract_strided_slice %1 {offsets = [0, 0, 0], sizes = [16, 16, 4], strides = [1, 1, 1]} : vector<18x18x4xbf16> to vector<16x16x4xbf16>
    %c0_5 = arith.constant 0 : index
    %c0_6 = arith.constant 0 : index
    %5 = vector.load %arg5[%c0_5, %c0_6] : memref<256x128xf32, #tpu.memory_space<vmem>>, vector<256x128xf32>
    %6 = vector.shape_cast %4 : vector<16x16x4xbf16> to vector<256x4xbf16>
    %c0_7 = arith.constant 0 : index
    %c0_8 = arith.constant 0 : index
    %c0_9 = arith.constant 0 : index
    %7 = vector.load %arg2[%c0_7, %c0_8, %c0_9] : memref<9x4x128xbf16, #tpu.memory_space<vmem>>, vector<1x4x128xbf16>
    %8 = vector.shape_cast %7 : vector<1x4x128xbf16> to vector<4x128xbf16>
    %cst_10 = arith.constant dense<0.000000e+00> : vector<256x128xf32>
    %9 = tpu.matmul %6, %8, %cst_10 {dimension_numbers = #tpu.dot_dimension_numbers<[1], [0], [0], [1], [0, 0, 1, 1], [], []>} : vector<256x4xbf16>, vector<4x128xbf16>, vector<256x128xf32> -> vector<256x128xf32>
    %10 = arith.addf %5, %9 : vector<256x128xf32>
    %c0_11 = arith.constant 0 : index
    %c0_12 = arith.constant 0 : index
    %11 = vector.load %arg5[%c0_11, %c0_12] : memref<256x128xf32, #tpu.memory_space<vmem>>, vector<256x128xf32>
    tpu.vector_store %arg5[%c0_11, %c0_12], %10 {strides = array<i32>} : memref<256x128xf32, #tpu.memory_space<vmem>>, vector<256x128xf32>,
    %12 = vector.extract_strided_slice %1 {offsets = [0, 1, 0], sizes = [16, 16, 4], strides = [1, 1, 1]} : vector<18x18x4xbf16> to vector<16x16x4xbf16>
    %c0_13 = arith.constant 0 : index
    %c0_14 = arith.constant 0 : index
    %13 = vector.load %arg5[%c0_13, %c0_14] : memref<256x128xf32, #tpu.memory_space<vmem>>, vector<256x128xf32>
    %14 = vector.shape_cast %12 : vector<16x16x4xbf16> to vector<256x4xbf16>
    %c1 = arith.constant 1 : index
    %c0_15 = arith.constant 0 : index
    %c0_16 = arith.constant 0 : index
    %15 = vector.load %arg2[%c1, %c0_15, %c0_16] : memref<9x4x128xbf16, #tpu.memory_space<vmem>>, vector<1x4x128xbf16>
    %16 = vector.shape_cast %15 : vector<1x4x128xbf16> to vector<4x128xbf16>
    %cst_17 = arith.constant dense<0.000000e+00> : vector<256x128xf32>
    %17 = tpu.matmul %14, %16, %cst_17 {dimension_numbers = #tpu.dot_dimension_numbers<[1], [0], [0], [1], [0, 0, 1, 1], [], []>} : vector<256x4xbf16>, vector<4x128xbf16>, vector<256x128xf32> -> vector<256x128xf32>
    %18 = arith.addf %13, %17 : vector<256x128xf32>
    %c0_18 = arith.constant 0 : index
    %c0_19 = arith.constant 0 : index
    %19 = vector.load %arg5[%c0_18, %c0_19] : memref<256x128xf32, #tpu.memory_space<vmem>>, vector<256x128xf32>
    tpu.vector_store %arg5[%c0_18, %c0_19], %18 {strides = array<i32>} : memref<256x128xf32, #tpu.memory_space<vmem>>, vector<256x128xf32>,
    %20 = vector.extract_strided_slice %1 {offsets = [0, 2, 0], sizes = [16, 16, 4], strides = [1, 1, 1]} : vector<18x18x4xbf16> to vector<16x16x4xbf16>
    %c0_20 = arith.constant 0 : index
    %c0_21 = arith.constant 0 : index
    %21 = vector.load %arg5[%c0_20, %c0_21] : memref<256x128xf32, #tpu.memory_space<vmem>>, vector<256x128xf32>
    %22 = vector.shape_cast %20 : vector<16x16x4xbf16> to vector<256x4xbf16>
    %c2 = arith.constant 2 : index
    %c0_22 = arith.constant 0 : index
    %c0_23 = arith.constant 0 : index
    %23 = vector.load %arg2[%c2, %c0_22, %c0_23] : memref<9x4x128xbf16, #tpu.memory_space<vmem>>, vector<1x4x128xbf16>
    %24 = vector.shape_cast %23 : vector<1x4x128xbf16> to vector<4x128xbf16>
    %cst_24 = arith.constant dense<0.000000e+00> : vector<256x128xf32>
    %25 = tpu.matmul %22, %24, %cst_24 {dimension_numbers = #tpu.dot_dimension_numbers<[1], [0], [0], [1], [0, 0, 1, 1], [], []>} : vector<256x4xbf16>, vector<4x128xbf16>, vector<256x128xf32> -> vector<256x128xf32>
    %26 = arith.addf %21, %25 : vector<256x128xf32>
    %c0_25 = arith.constant 0 : index
    %c0_26 = arith.constant 0 : index
    %27 = vector.load %arg5[%c0_25, %c0_26] : memref<256x128xf32, #tpu.memory_space<vmem>>, vector<256x128xf32>
    tpu.vector_store %arg5[%c0_25, %c0_26], %26 {strides = array<i32>} : memref<256x128xf32, #tpu.memory_space<vmem>>, vector<256x128xf32>,
    %28 = vector.extract_strided_slice %1 {offsets = [1, 0, 0], sizes = [16, 16, 4], strides = [1, 1, 1]} : vector<18x18x4xbf16> to vector<16x16x4xbf16>
    %c0_27 = arith.constant 0 : index
    %c0_28 = arith.constant 0 : index
    %29 = vector.load %arg5[%c0_27, %c0_28] : memref<256x128xf32, #tpu.memory_space<vmem>>, vector<256x128xf32>
    %30 = vector.shape_cast %28 : vector<16x16x4xbf16> to vector<256x4xbf16>
    %c3 = arith.constant 3 : index
    %c0_29 = arith.constant 0 : index
    %c0_30 = arith.constant 0 : index
    %31 = vector.load %arg2[%c3, %c0_29, %c0_30] : memref<9x4x128xbf16, #tpu.memory_space<vmem>>, vector<1x4x128xbf16>
    %32 = vector.shape_cast %31 : vector<1x4x128xbf16> to vector<4x128xbf16>
    %cst_31 = arith.constant dense<0.000000e+00> : vector<256x128xf32>
    %33 = tpu.matmul %30, %32, %cst_31 {dimension_numbers = #tpu.dot_dimension_numbers<[1], [0], [0], [1], [0, 0, 1, 1], [], []>} : vector<256x4xbf16>, vector<4x128xbf16>, vector<256x128xf32> -> vector<256x128xf32>
    %34 = arith.addf %29, %33 : vector<256x128xf32>
    %c0_32 = arith.constant 0 : index
    %c0_33 = arith.constant 0 : index
    %35 = vector.load %arg5[%c0_32, %c0_33] : memref<256x128xf32, #tpu.memory_space<vmem>>, vector<256x128xf32>
    tpu.vector_store %arg5[%c0_32, %c0_33], %34 {strides = array<i32>} : memref<256x128xf32, #tpu.memory_space<vmem>>, vector<256x128xf32>,
    %36 = vector.extract_strided_slice %1 {offsets = [1, 1, 0], sizes = [16, 16, 4], strides = [1, 1, 1]} : vector<18x18x4xbf16> to vector<16x16x4xbf16>
    %c0_34 = arith.constant 0 : index
    %c0_35 = arith.constant 0 : index
    %37 = vector.load %arg5[%c0_34, %c0_35] : memref<256x128xf32, #tpu.memory_space<vmem>>, vector<256x128xf32>
    %38 = vector.shape_cast %36 : vector<16x16x4xbf16> to vector<256x4xbf16>
    %c4 = arith.constant 4 : index
    %c0_36 = arith.constant 0 : index
    %c0_37 = arith.constant 0 : index
    %39 = vector.load %arg2[%c4, %c0_36, %c0_37] : memref<9x4x128xbf16, #tpu.memory_space<vmem>>, vector<1x4x128xbf16>
    %40 = vector.shape_cast %39 : vector<1x4x128xbf16> to vector<4x128xbf16>
    %cst_38 = arith.constant dense<0.000000e+00> : vector<256x128xf32>
    %41 = tpu.matmul %38, %40, %cst_38 {dimension_numbers = #tpu.dot_dimension_numbers<[1], [0], [0], [1], [0, 0, 1, 1], [], []>} : vector<256x4xbf16>, vector<4x128xbf16>, vector<256x128xf32> -> vector<256x128xf32>
    %42 = arith.addf %37, %41 : vector<256x128xf32>
    %c0_39 = arith.constant 0 : index
    %c0_40 = arith.constant 0 : index
    %43 = vector.load %arg5[%c0_39, %c0_40] : memref<256x128xf32, #tpu.memory_space<vmem>>, vector<256x128xf32>
    tpu.vector_store %arg5[%c0_39, %c0_40], %42 {strides = array<i32>} : memref<256x128xf32, #tpu.memory_space<vmem>>, vector<256x128xf32>,
    %44 = vector.extract_strided_slice %1 {offsets = [1, 2, 0], sizes = [16, 16, 4], strides = [1, 1, 1]} : vector<18x18x4xbf16> to vector<16x16x4xbf16>
    %c0_41 = arith.constant 0 : index
    %c0_42 = arith.constant 0 : index
    %45 = vector.load %arg5[%c0_41, %c0_42] : memref<256x128xf32, #tpu.memory_space<vmem>>, vector<256x128xf32>
    %46 = vector.shape_cast %44 : vector<16x16x4xbf16> to vector<256x4xbf16>
    %c5 = arith.constant 5 : index
    %c0_43 = arith.constant 0 : index
    %c0_44 = arith.constant 0 : index
    %47 = vector.load %arg2[%c5, %c0_43, %c0_44] : memref<9x4x128xbf16, #tpu.memory_space<vmem>>, vector<1x4x128xbf16>
    %48 = vector.shape_cast %47 : vector<1x4x128xbf16> to vector<4x128xbf16>
    %cst_45 = arith.constant dense<0.000000e+00> : vector<256x128xf32>
    %49 = tpu.matmul %46, %48, %cst_45 {dimension_numbers = #tpu.dot_dimension_numbers<[1], [0], [0], [1], [0, 0, 1, 1], [], []>} : vector<256x4xbf16>, vector<4x128xbf16>, vector<256x128xf32> -> vector<256x128xf32>
    %50 = arith.addf %45, %49 : vector<256x128xf32>
    %c0_46 = arith.constant 0 : index
    %c0_47 = arith.constant 0 : index
    %51 = vector.load %arg5[%c0_46, %c0_47] : memref<256x128xf32, #tpu.memory_space<vmem>>, vector<256x128xf32>
    tpu.vector_store %arg5[%c0_46, %c0_47], %50 {strides = array<i32>} : memref<256x128xf32, #tpu.memory_space<vmem>>, vector<256x128xf32>,
    %52 = vector.extract_strided_slice %1 {offsets = [2, 0, 0], sizes = [16, 16, 4], strides = [1, 1, 1]} : vector<18x18x4xbf16> to vector<16x16x4xbf16>
    %c0_48 = arith.constant 0 : index
    %c0_49 = arith.constant 0 : index
    %53 = vector.load %arg5[%c0_48, %c0_49] : memref<256x128xf32, #tpu.memory_space<vmem>>, vector<256x128xf32>
    %54 = vector.shape_cast %52 : vector<16x16x4xbf16> to vector<256x4xbf16>
    %c6 = arith.constant 6 : index
    %c0_50 = arith.constant 0 : index
    %c0_51 = arith.constant 0 : index
    %55 = vector.load %arg2[%c6, %c0_50, %c0_51] : memref<9x4x128xbf16, #tpu.memory_space<vmem>>, vector<1x4x128xbf16>
    %56 = vector.shape_cast %55 : vector<1x4x128xbf16> to vector<4x128xbf16>
    %cst_52 = arith.constant dense<0.000000e+00> : vector<256x128xf32>
    %57 = tpu.matmul %54, %56, %cst_52 {dimension_numbers = #tpu.dot_dimension_numbers<[1], [0], [0], [1], [0, 0, 1, 1], [], []>} : vector<256x4xbf16>, vector<4x128xbf16>, vector<256x128xf32> -> vector<256x128xf32>
    %58 = arith.addf %53, %57 : vector<256x128xf32>
    %c0_53 = arith.constant 0 : index
    %c0_54 = arith.constant 0 : index
    %59 = vector.load %arg5[%c0_53, %c0_54] : memref<256x128xf32, #tpu.memory_space<vmem>>, vector<256x128xf32>
    tpu.vector_store %arg5[%c0_53, %c0_54], %58 {strides = array<i32>} : memref<256x128xf32, #tpu.memory_space<vmem>>, vector<256x128xf32>,
    %60 = vector.extract_strided_slice %1 {offsets = [2, 1, 0], sizes = [16, 16, 4], strides = [1, 1, 1]} : vector<18x18x4xbf16> to vector<16x16x4xbf16>
    %c0_55 = arith.constant 0 : index
    %c0_56 = arith.constant 0 : index
    %61 = vector.load %arg5[%c0_55, %c0_56] : memref<256x128xf32, #tpu.memory_space<vmem>>, vector<256x128xf32>
    %62 = vector.shape_cast %60 : vector<16x16x4xbf16> to vector<256x4xbf16>
    %c7 = arith.constant 7 : index
    %c0_57 = arith.constant 0 : index
    %c0_58 = arith.constant 0 : index
    %63 = vector.load %arg2[%c7, %c0_57, %c0_58] : memref<9x4x128xbf16, #tpu.memory_space<vmem>>, vector<1x4x128xbf16>
    %64 = vector.shape_cast %63 : vector<1x4x128xbf16> to vector<4x128xbf16>
    %cst_59 = arith.constant dense<0.000000e+00> : vector<256x128xf32>
    %65 = tpu.matmul %62, %64, %cst_59 {dimension_numbers = #tpu.dot_dimension_numbers<[1], [0], [0], [1], [0, 0, 1, 1], [], []>} : vector<256x4xbf16>, vector<4x128xbf16>, vector<256x128xf32> -> vector<256x128xf32>
    %66 = arith.addf %61, %65 : vector<256x128xf32>
    %c0_60 = arith.constant 0 : index
    %c0_61 = arith.constant 0 : index
    %67 = vector.load %arg5[%c0_60, %c0_61] : memref<256x128xf32, #tpu.memory_space<vmem>>, vector<256x128xf32>
    tpu.vector_store %arg5[%c0_60, %c0_61], %66 {strides = array<i32>} : memref<256x128xf32, #tpu.memory_space<vmem>>, vector<256x128xf32>,
    %68 = vector.extract_strided_slice %1 {offsets = [2, 2, 0], sizes = [16, 16, 4], strides = [1, 1, 1]} : vector<18x18x4xbf16> to vector<16x16x4xbf16>
    %c0_62 = arith.constant 0 : index
    %c0_63 = arith.constant 0 : index
    %69 = vector.load %arg5[%c0_62, %c0_63] : memref<256x128xf32, #tpu.memory_space<vmem>>, vector<256x128xf32>
    %70 = vector.shape_cast %68 : vector<16x16x4xbf16> to vector<256x4xbf16>
    %c8 = arith.constant 8 : index
    %c0_64 = arith.constant 0 : index
    %c0_65 = arith.constant 0 : index
    %71 = vector.load %arg2[%c8, %c0_64, %c0_65] : memref<9x4x128xbf16, #tpu.memory_space<vmem>>, vector<1x4x128xbf16>
    %72 = vector.shape_cast %71 : vector<1x4x128xbf16> to vector<4x128xbf16>
    %cst_66 = arith.constant dense<0.000000e+00> : vector<256x128xf32>
    %73 = tpu.matmul %70, %72, %cst_66 {dimension_numbers = #tpu.dot_dimension_numbers<[1], [0], [0], [1], [0, 0, 1, 1], [], []>} : vector<256x4xbf16>, vector<4x128xbf16>, vector<256x128xf32> -> vector<256x128xf32>
    %74 = arith.addf %69, %73 : vector<256x128xf32>
    %c0_67 = arith.constant 0 : index
    %c0_68 = arith.constant 0 : index
    %75 = vector.load %arg5[%c0_67, %c0_68] : memref<256x128xf32, #tpu.memory_space<vmem>>, vector<256x128xf32>
    tpu.vector_store %arg5[%c0_67, %c0_68], %74 {strides = array<i32>} : memref<256x128xf32, #tpu.memory_space<vmem>>, vector<256x128xf32>,
    %c0_69 = arith.constant 0 : index
    %c0_70 = arith.constant 0 : index
    %76 = vector.load %arg5[%c0_69, %c0_70] : memref<256x128xf32, #tpu.memory_space<vmem>>, vector<256x128xf32>
    %c0_71 = arith.constant 0 : index
    %c0_72 = arith.constant 0 : index
    %77 = vector.load %arg3[%c0_71, %c0_72] : memref<1x128xf32, #tpu.memory_space<vmem>>, vector<1x128xf32>
    %78 = vector.broadcast %77 : vector<1x128xf32> to vector<256x128xf32>
    %79 = arith.addf %76, %78 : vector<256x128xf32>
    %cst_73 = arith.constant 0.000000e+00 : f32
    %80 = vector.broadcast %cst_73 : f32 to vector<256x128xf32>
    %81 = arith.maximumf %79, %80 : vector<256x128xf32>
    %82 = vector.shape_cast %81 : vector<256x128xf32> to vector<16x16x128xf32>
    %83 = arith.truncf %82 : vector<16x16x128xf32> to vector<16x16x128xbf16>
    %c0_74 = arith.constant 0 : index
    %c0_75 = arith.constant 0 : index
    %c0_76 = arith.constant 0 : index
    %c0_77 = arith.constant 0 : index
    %84 = vector.load %arg4[%c0_74, %c0_75, %c0_76, %c0_77] : memref<1x16x16x128xbf16, #tpu.memory_space<vmem>>, vector<1x16x16x128xbf16>
    %85 = vector.shape_cast %84 : vector<1x16x16x128xbf16> to vector<16x16x128xbf16>
    %86 = vector.shape_cast %83 : vector<16x16x128xbf16> to vector<1x16x16x128xbf16>
    tpu.vector_store %arg4[%c0_74, %c0_75, %c0_76, %c0_77], %86 {strides = array<i32>} : memref<1x16x16x128xbf16, #tpu.memory_space<vmem>>, vector<1x16x16x128xbf16>,
    return
  }
  func.func @transform_0(%arg0: i32) -> (i32, i32, i32, i32) {
    %c0_i32 = arith.constant 0 : i32
    %c0_i32_0 = arith.constant 0 : i32
    %c0_i32_1 = arith.constant 0 : i32
    %c0_i32_2 = arith.constant 0 : i32
    return %arg0, %c0_i32, %c0_i32_0, %c0_i32_1 : i32, i32, i32, i32
  }
  func.func @transform_1(%arg0: i32) -> (i32, i32, i32) {
    %c0_i32 = arith.constant 0 : i32
    %c0_i32_0 = arith.constant 0 : i32
    %c0_i32_1 = arith.constant 0 : i32
    %c0_i32_2 = arith.constant 0 : i32
    return %c0_i32, %c0_i32_0, %c0_i32_1 : i32, i32, i32
  }
  func.func @transform_2(%arg0: i32) -> (i32, i32) {
    %c0_i32 = arith.constant 0 : i32
    %c0_i32_0 = arith.constant 0 : i32
    %c0_i32_1 = arith.constant 0 : i32
    return %c0_i32, %c0_i32_0 : i32, i32
  }
  func.func @transform_3(%arg0: i32) -> (i32, i32, i32, i32) {
    %c0_i32 = arith.constant 0 : i32
    %c0_i32_0 = arith.constant 0 : i32
    %c0_i32_1 = arith.constant 0 : i32
    %c0_i32_2 = arith.constant 0 : i32
    return %arg0, %c0_i32, %c0_i32_0, %c0_i32_1 : i32, i32, i32, i32
  }
}

module attributes {stable_mosaic.version = 11 : i64} {
  func.func @_conv_bn_relu_kernel(%arg0: i32, %arg1: memref<1x18x18x128xbf16, #tpu.memory_space<vmem>>, %arg2: memref<9x128x128xbf16, #tpu.memory_space<vmem>>, %arg3: memref<1x128xf32, #tpu.memory_space<vmem>>, %arg4: memref<1x16x16x128xf32, #tpu.memory_space<vmem>>, %arg5: memref<256x128xf32, #tpu.memory_space<vmem>>) attributes {dimension_semantics = [#tpu.dimension_semantics<parallel>], iteration_bounds = array<i64: 2>, scalar_prefetch = 0 : i64, scratch_operands = 1 : i64, tpu.core_type = #tpu.core_type<tc>, window_params = [{transform_indices = @transform_0, window_bounds = array<i64: 1, 18, 18, 128>}, {pipeline_mode = #tpu.pipeline_mode<synchronous>, transform_indices = @transform_1, window_bounds = array<i64: 9, 128, 128>}, {pipeline_mode = #tpu.pipeline_mode<synchronous>, transform_indices = @transform_2, window_bounds = array<i64: 1, 128>}, {transform_indices = @transform_3, window_bounds = array<i64: 1, 16, 16, 128>}]} {
    %c0 = arith.constant 0 : index
    %c0_0 = arith.constant 0 : index
    %c0_1 = arith.constant 0 : index
    %c0_2 = arith.constant 0 : index
    %0 = vector.load %arg1[%c0, %c0_0, %c0_1, %c0_2] : memref<1x18x18x128xbf16, #tpu.memory_space<vmem>>, vector<1x18x18x128xbf16>
    %1 = vector.shape_cast %0 : vector<1x18x18x128xbf16> to vector<18x18x128xbf16>
    %cst = arith.constant 0.000000e+00 : f32
    %2 = vector.broadcast %cst : f32 to vector<256x128xf32>
    %c0_3 = arith.constant 0 : index
    %c0_4 = arith.constant 0 : index
    %3 = vector.load %arg5[%c0_3, %c0_4] : memref<256x128xf32, #tpu.memory_space<vmem>>, vector<256x128xf32>
    tpu.vector_store %arg5[%c0_3, %c0_4], %2 {strides = array<i32>} : memref<256x128xf32, #tpu.memory_space<vmem>>, vector<256x128xf32>,
    %4 = vector.extract_strided_slice %1 {offsets = [0, 0, 0], sizes = [16, 16, 128], strides = [1, 1, 1]} : vector<18x18x128xbf16> to vector<16x16x128xbf16>
    %c0_5 = arith.constant 0 : index
    %c0_6 = arith.constant 0 : index
    %5 = vector.load %arg5[%c0_5, %c0_6] : memref<256x128xf32, #tpu.memory_space<vmem>>, vector<256x128xf32>
    %6 = vector.shape_cast %4 : vector<16x16x128xbf16> to vector<256x128xbf16>
    %c0_7 = arith.constant 0 : index
    %c0_8 = arith.constant 0 : index
    %c0_9 = arith.constant 0 : index
    %7 = vector.load %arg2[%c0_7, %c0_8, %c0_9] : memref<9x128x128xbf16, #tpu.memory_space<vmem>>, vector<1x128x128xbf16>
    %8 = vector.shape_cast %7 : vector<1x128x128xbf16> to vector<128x128xbf16>
    %cst_10 = arith.constant dense<0.000000e+00> : vector<256x128xf32>
    %9 = tpu.matmul %6, %8, %cst_10 {dimension_numbers = #tpu.dot_dimension_numbers<[1], [0], [0], [1], [0, 0, 1, 1], [], []>} : vector<256x128xbf16>, vector<128x128xbf16>, vector<256x128xf32> -> vector<256x128xf32>
    %10 = arith.addf %5, %9 : vector<256x128xf32>
    %c0_11 = arith.constant 0 : index
    %c0_12 = arith.constant 0 : index
    %11 = vector.load %arg5[%c0_11, %c0_12] : memref<256x128xf32, #tpu.memory_space<vmem>>, vector<256x128xf32>
    tpu.vector_store %arg5[%c0_11, %c0_12], %10 {strides = array<i32>} : memref<256x128xf32, #tpu.memory_space<vmem>>, vector<256x128xf32>,
    %12 = vector.extract_strided_slice %1 {offsets = [0, 1, 0], sizes = [16, 16, 128], strides = [1, 1, 1]} : vector<18x18x128xbf16> to vector<16x16x128xbf16>
    %c0_13 = arith.constant 0 : index
    %c0_14 = arith.constant 0 : index
    %13 = vector.load %arg5[%c0_13, %c0_14] : memref<256x128xf32, #tpu.memory_space<vmem>>, vector<256x128xf32>
    %14 = vector.shape_cast %12 : vector<16x16x128xbf16> to vector<256x128xbf16>
    %c1 = arith.constant 1 : index
    %c0_15 = arith.constant 0 : index
    %c0_16 = arith.constant 0 : index
    %15 = vector.load %arg2[%c1, %c0_15, %c0_16] : memref<9x128x128xbf16, #tpu.memory_space<vmem>>, vector<1x128x128xbf16>
    %16 = vector.shape_cast %15 : vector<1x128x128xbf16> to vector<128x128xbf16>
    %cst_17 = arith.constant dense<0.000000e+00> : vector<256x128xf32>
    %17 = tpu.matmul %14, %16, %cst_17 {dimension_numbers = #tpu.dot_dimension_numbers<[1], [0], [0], [1], [0, 0, 1, 1], [], []>} : vector<256x128xbf16>, vector<128x128xbf16>, vector<256x128xf32> -> vector<256x128xf32>
    %18 = arith.addf %13, %17 : vector<256x128xf32>
    %c0_18 = arith.constant 0 : index
    %c0_19 = arith.constant 0 : index
    %19 = vector.load %arg5[%c0_18, %c0_19] : memref<256x128xf32, #tpu.memory_space<vmem>>, vector<256x128xf32>
    tpu.vector_store %arg5[%c0_18, %c0_19], %18 {strides = array<i32>} : memref<256x128xf32, #tpu.memory_space<vmem>>, vector<256x128xf32>,
    %20 = vector.extract_strided_slice %1 {offsets = [0, 2, 0], sizes = [16, 16, 128], strides = [1, 1, 1]} : vector<18x18x128xbf16> to vector<16x16x128xbf16>
    %c0_20 = arith.constant 0 : index
    %c0_21 = arith.constant 0 : index
    %21 = vector.load %arg5[%c0_20, %c0_21] : memref<256x128xf32, #tpu.memory_space<vmem>>, vector<256x128xf32>
    %22 = vector.shape_cast %20 : vector<16x16x128xbf16> to vector<256x128xbf16>
    %c2 = arith.constant 2 : index
    %c0_22 = arith.constant 0 : index
    %c0_23 = arith.constant 0 : index
    %23 = vector.load %arg2[%c2, %c0_22, %c0_23] : memref<9x128x128xbf16, #tpu.memory_space<vmem>>, vector<1x128x128xbf16>
    %24 = vector.shape_cast %23 : vector<1x128x128xbf16> to vector<128x128xbf16>
    %cst_24 = arith.constant dense<0.000000e+00> : vector<256x128xf32>
    %25 = tpu.matmul %22, %24, %cst_24 {dimension_numbers = #tpu.dot_dimension_numbers<[1], [0], [0], [1], [0, 0, 1, 1], [], []>} : vector<256x128xbf16>, vector<128x128xbf16>, vector<256x128xf32> -> vector<256x128xf32>
    %26 = arith.addf %21, %25 : vector<256x128xf32>
    %c0_25 = arith.constant 0 : index
    %c0_26 = arith.constant 0 : index
    %27 = vector.load %arg5[%c0_25, %c0_26] : memref<256x128xf32, #tpu.memory_space<vmem>>, vector<256x128xf32>
    tpu.vector_store %arg5[%c0_25, %c0_26], %26 {strides = array<i32>} : memref<256x128xf32, #tpu.memory_space<vmem>>, vector<256x128xf32>,
    %28 = vector.extract_strided_slice %1 {offsets = [1, 0, 0], sizes = [16, 16, 128], strides = [1, 1, 1]} : vector<18x18x128xbf16> to vector<16x16x128xbf16>
    %c0_27 = arith.constant 0 : index
    %c0_28 = arith.constant 0 : index
    %29 = vector.load %arg5[%c0_27, %c0_28] : memref<256x128xf32, #tpu.memory_space<vmem>>, vector<256x128xf32>
    %30 = vector.shape_cast %28 : vector<16x16x128xbf16> to vector<256x128xbf16>
    %c3 = arith.constant 3 : index
    %c0_29 = arith.constant 0 : index
    %c0_30 = arith.constant 0 : index
    %31 = vector.load %arg2[%c3, %c0_29, %c0_30] : memref<9x128x128xbf16, #tpu.memory_space<vmem>>, vector<1x128x128xbf16>
    %32 = vector.shape_cast %31 : vector<1x128x128xbf16> to vector<128x128xbf16>
    %cst_31 = arith.constant dense<0.000000e+00> : vector<256x128xf32>
    %33 = tpu.matmul %30, %32, %cst_31 {dimension_numbers = #tpu.dot_dimension_numbers<[1], [0], [0], [1], [0, 0, 1, 1], [], []>} : vector<256x128xbf16>, vector<128x128xbf16>, vector<256x128xf32> -> vector<256x128xf32>
    %34 = arith.addf %29, %33 : vector<256x128xf32>
    %c0_32 = arith.constant 0 : index
    %c0_33 = arith.constant 0 : index
    %35 = vector.load %arg5[%c0_32, %c0_33] : memref<256x128xf32, #tpu.memory_space<vmem>>, vector<256x128xf32>
    tpu.vector_store %arg5[%c0_32, %c0_33], %34 {strides = array<i32>} : memref<256x128xf32, #tpu.memory_space<vmem>>, vector<256x128xf32>,
    %36 = vector.extract_strided_slice %1 {offsets = [1, 1, 0], sizes = [16, 16, 128], strides = [1, 1, 1]} : vector<18x18x128xbf16> to vector<16x16x128xbf16>
    %c0_34 = arith.constant 0 : index
    %c0_35 = arith.constant 0 : index
    %37 = vector.load %arg5[%c0_34, %c0_35] : memref<256x128xf32, #tpu.memory_space<vmem>>, vector<256x128xf32>
    %38 = vector.shape_cast %36 : vector<16x16x128xbf16> to vector<256x128xbf16>
    %c4 = arith.constant 4 : index
    %c0_36 = arith.constant 0 : index
    %c0_37 = arith.constant 0 : index
    %39 = vector.load %arg2[%c4, %c0_36, %c0_37] : memref<9x128x128xbf16, #tpu.memory_space<vmem>>, vector<1x128x128xbf16>
    %40 = vector.shape_cast %39 : vector<1x128x128xbf16> to vector<128x128xbf16>
    %cst_38 = arith.constant dense<0.000000e+00> : vector<256x128xf32>
    %41 = tpu.matmul %38, %40, %cst_38 {dimension_numbers = #tpu.dot_dimension_numbers<[1], [0], [0], [1], [0, 0, 1, 1], [], []>} : vector<256x128xbf16>, vector<128x128xbf16>, vector<256x128xf32> -> vector<256x128xf32>
    %42 = arith.addf %37, %41 : vector<256x128xf32>
    %c0_39 = arith.constant 0 : index
    %c0_40 = arith.constant 0 : index
    %43 = vector.load %arg5[%c0_39, %c0_40] : memref<256x128xf32, #tpu.memory_space<vmem>>, vector<256x128xf32>
    tpu.vector_store %arg5[%c0_39, %c0_40], %42 {strides = array<i32>} : memref<256x128xf32, #tpu.memory_space<vmem>>, vector<256x128xf32>,
    %44 = vector.extract_strided_slice %1 {offsets = [1, 2, 0], sizes = [16, 16, 128], strides = [1, 1, 1]} : vector<18x18x128xbf16> to vector<16x16x128xbf16>
    %c0_41 = arith.constant 0 : index
    %c0_42 = arith.constant 0 : index
    %45 = vector.load %arg5[%c0_41, %c0_42] : memref<256x128xf32, #tpu.memory_space<vmem>>, vector<256x128xf32>
    %46 = vector.shape_cast %44 : vector<16x16x128xbf16> to vector<256x128xbf16>
    %c5 = arith.constant 5 : index
    %c0_43 = arith.constant 0 : index
    %c0_44 = arith.constant 0 : index
    %47 = vector.load %arg2[%c5, %c0_43, %c0_44] : memref<9x128x128xbf16, #tpu.memory_space<vmem>>, vector<1x128x128xbf16>
    %48 = vector.shape_cast %47 : vector<1x128x128xbf16> to vector<128x128xbf16>
    %cst_45 = arith.constant dense<0.000000e+00> : vector<256x128xf32>
    %49 = tpu.matmul %46, %48, %cst_45 {dimension_numbers = #tpu.dot_dimension_numbers<[1], [0], [0], [1], [0, 0, 1, 1], [], []>} : vector<256x128xbf16>, vector<128x128xbf16>, vector<256x128xf32> -> vector<256x128xf32>
    %50 = arith.addf %45, %49 : vector<256x128xf32>
    %c0_46 = arith.constant 0 : index
    %c0_47 = arith.constant 0 : index
    %51 = vector.load %arg5[%c0_46, %c0_47] : memref<256x128xf32, #tpu.memory_space<vmem>>, vector<256x128xf32>
    tpu.vector_store %arg5[%c0_46, %c0_47], %50 {strides = array<i32>} : memref<256x128xf32, #tpu.memory_space<vmem>>, vector<256x128xf32>,
    %52 = vector.extract_strided_slice %1 {offsets = [2, 0, 0], sizes = [16, 16, 128], strides = [1, 1, 1]} : vector<18x18x128xbf16> to vector<16x16x128xbf16>
    %c0_48 = arith.constant 0 : index
    %c0_49 = arith.constant 0 : index
    %53 = vector.load %arg5[%c0_48, %c0_49] : memref<256x128xf32, #tpu.memory_space<vmem>>, vector<256x128xf32>
    %54 = vector.shape_cast %52 : vector<16x16x128xbf16> to vector<256x128xbf16>
    %c6 = arith.constant 6 : index
    %c0_50 = arith.constant 0 : index
    %c0_51 = arith.constant 0 : index
    %55 = vector.load %arg2[%c6, %c0_50, %c0_51] : memref<9x128x128xbf16, #tpu.memory_space<vmem>>, vector<1x128x128xbf16>
    %56 = vector.shape_cast %55 : vector<1x128x128xbf16> to vector<128x128xbf16>
    %cst_52 = arith.constant dense<0.000000e+00> : vector<256x128xf32>
    %57 = tpu.matmul %54, %56, %cst_52 {dimension_numbers = #tpu.dot_dimension_numbers<[1], [0], [0], [1], [0, 0, 1, 1], [], []>} : vector<256x128xbf16>, vector<128x128xbf16>, vector<256x128xf32> -> vector<256x128xf32>
    %58 = arith.addf %53, %57 : vector<256x128xf32>
    %c0_53 = arith.constant 0 : index
    %c0_54 = arith.constant 0 : index
    %59 = vector.load %arg5[%c0_53, %c0_54] : memref<256x128xf32, #tpu.memory_space<vmem>>, vector<256x128xf32>
    tpu.vector_store %arg5[%c0_53, %c0_54], %58 {strides = array<i32>} : memref<256x128xf32, #tpu.memory_space<vmem>>, vector<256x128xf32>,
    %60 = vector.extract_strided_slice %1 {offsets = [2, 1, 0], sizes = [16, 16, 128], strides = [1, 1, 1]} : vector<18x18x128xbf16> to vector<16x16x128xbf16>
    %c0_55 = arith.constant 0 : index
    %c0_56 = arith.constant 0 : index
    %61 = vector.load %arg5[%c0_55, %c0_56] : memref<256x128xf32, #tpu.memory_space<vmem>>, vector<256x128xf32>
    %62 = vector.shape_cast %60 : vector<16x16x128xbf16> to vector<256x128xbf16>
    %c7 = arith.constant 7 : index
    %c0_57 = arith.constant 0 : index
    %c0_58 = arith.constant 0 : index
    %63 = vector.load %arg2[%c7, %c0_57, %c0_58] : memref<9x128x128xbf16, #tpu.memory_space<vmem>>, vector<1x128x128xbf16>
    %64 = vector.shape_cast %63 : vector<1x128x128xbf16> to vector<128x128xbf16>
    %cst_59 = arith.constant dense<0.000000e+00> : vector<256x128xf32>
    %65 = tpu.matmul %62, %64, %cst_59 {dimension_numbers = #tpu.dot_dimension_numbers<[1], [0], [0], [1], [0, 0, 1, 1], [], []>} : vector<256x128xbf16>, vector<128x128xbf16>, vector<256x128xf32> -> vector<256x128xf32>
    %66 = arith.addf %61, %65 : vector<256x128xf32>
    %c0_60 = arith.constant 0 : index
    %c0_61 = arith.constant 0 : index
    %67 = vector.load %arg5[%c0_60, %c0_61] : memref<256x128xf32, #tpu.memory_space<vmem>>, vector<256x128xf32>
    tpu.vector_store %arg5[%c0_60, %c0_61], %66 {strides = array<i32>} : memref<256x128xf32, #tpu.memory_space<vmem>>, vector<256x128xf32>,
    %68 = vector.extract_strided_slice %1 {offsets = [2, 2, 0], sizes = [16, 16, 128], strides = [1, 1, 1]} : vector<18x18x128xbf16> to vector<16x16x128xbf16>
    %c0_62 = arith.constant 0 : index
    %c0_63 = arith.constant 0 : index
    %69 = vector.load %arg5[%c0_62, %c0_63] : memref<256x128xf32, #tpu.memory_space<vmem>>, vector<256x128xf32>
    %70 = vector.shape_cast %68 : vector<16x16x128xbf16> to vector<256x128xbf16>
    %c8 = arith.constant 8 : index
    %c0_64 = arith.constant 0 : index
    %c0_65 = arith.constant 0 : index
    %71 = vector.load %arg2[%c8, %c0_64, %c0_65] : memref<9x128x128xbf16, #tpu.memory_space<vmem>>, vector<1x128x128xbf16>
    %72 = vector.shape_cast %71 : vector<1x128x128xbf16> to vector<128x128xbf16>
    %cst_66 = arith.constant dense<0.000000e+00> : vector<256x128xf32>
    %73 = tpu.matmul %70, %72, %cst_66 {dimension_numbers = #tpu.dot_dimension_numbers<[1], [0], [0], [1], [0, 0, 1, 1], [], []>} : vector<256x128xbf16>, vector<128x128xbf16>, vector<256x128xf32> -> vector<256x128xf32>
    %74 = arith.addf %69, %73 : vector<256x128xf32>
    %c0_67 = arith.constant 0 : index
    %c0_68 = arith.constant 0 : index
    %75 = vector.load %arg5[%c0_67, %c0_68] : memref<256x128xf32, #tpu.memory_space<vmem>>, vector<256x128xf32>
    tpu.vector_store %arg5[%c0_67, %c0_68], %74 {strides = array<i32>} : memref<256x128xf32, #tpu.memory_space<vmem>>, vector<256x128xf32>,
    %c0_69 = arith.constant 0 : index
    %c0_70 = arith.constant 0 : index
    %76 = vector.load %arg5[%c0_69, %c0_70] : memref<256x128xf32, #tpu.memory_space<vmem>>, vector<256x128xf32>
    %c0_71 = arith.constant 0 : index
    %c0_72 = arith.constant 0 : index
    %77 = vector.load %arg3[%c0_71, %c0_72] : memref<1x128xf32, #tpu.memory_space<vmem>>, vector<1x128xf32>
    %78 = vector.broadcast %77 : vector<1x128xf32> to vector<256x128xf32>
    %79 = arith.addf %76, %78 : vector<256x128xf32>
    %cst_73 = arith.constant 0.000000e+00 : f32
    %80 = vector.broadcast %cst_73 : f32 to vector<256x128xf32>
    %81 = arith.maximumf %79, %80 : vector<256x128xf32>
    %82 = vector.shape_cast %81 : vector<256x128xf32> to vector<16x16x128xf32>
    %c0_74 = arith.constant 0 : index
    %c0_75 = arith.constant 0 : index
    %c0_76 = arith.constant 0 : index
    %c0_77 = arith.constant 0 : index
    %83 = vector.load %arg4[%c0_74, %c0_75, %c0_76, %c0_77] : memref<1x16x16x128xf32, #tpu.memory_space<vmem>>, vector<1x16x16x128xf32>
    %84 = vector.shape_cast %83 : vector<1x16x16x128xf32> to vector<16x16x128xf32>
    %85 = vector.shape_cast %82 : vector<16x16x128xf32> to vector<1x16x16x128xf32>
    tpu.vector_store %arg4[%c0_74, %c0_75, %c0_76, %c0_77], %85 {strides = array<i32>} : memref<1x16x16x128xf32, #tpu.memory_space<vmem>>, vector<1x16x16x128xf32>,
    return
  }
  func.func @transform_0(%arg0: i32) -> (i32, i32, i32, i32) {
    %c0_i32 = arith.constant 0 : i32
    %c0_i32_0 = arith.constant 0 : i32
    %c0_i32_1 = arith.constant 0 : i32
    %c0_i32_2 = arith.constant 0 : i32
    return %arg0, %c0_i32, %c0_i32_0, %c0_i32_1 : i32, i32, i32, i32
  }
  func.func @transform_1(%arg0: i32) -> (i32, i32, i32) {
    %c0_i32 = arith.constant 0 : i32
    %c0_i32_0 = arith.constant 0 : i32
    %c0_i32_1 = arith.constant 0 : i32
    %c0_i32_2 = arith.constant 0 : i32
    return %c0_i32, %c0_i32_0, %c0_i32_1 : i32, i32, i32
  }
  func.func @transform_2(%arg0: i32) -> (i32, i32) {
    %c0_i32 = arith.constant 0 : i32
    %c0_i32_0 = arith.constant 0 : i32
    %c0_i32_1 = arith.constant 0 : i32
    return %c0_i32, %c0_i32_0 : i32, i32
  }
  func.func @transform_3(%arg0: i32) -> (i32, i32, i32, i32) {
    %c0_i32 = arith.constant 0 : i32
    %c0_i32_0 = arith.constant 0 : i32
    %c0_i32_1 = arith.constant 0 : i32
    %c0_i32_2 = arith.constant 0 : i32
    return %arg0, %c0_i32, %c0_i32_0, %c0_i32_1 : i32, i32, i32, i32
  }
}

</mosaic_0001>

<bundles_post_ra>
// kernel: unet_down_block.2
= control target key start
LH: loop header
LB: loop body
LE: loop exit
PB: predicated region body
PF: predicated region fallthrough
CT: control target
= control target key end

     0   :  { %s3551_s12 = smov 0   ;;  %s4679_s0 = inlined_call_operand.vmem [shape: bf16[2,18,18,4], index: 0, kind: input, shape index: {}]   ;;  %s4680_s1 = inlined_call_operand.vmem [shape: bf16[9,4,128], index: 1, kind: input, shape index: {}]   ;;  %s4681_s2 = inlined_call_operand.vmem [shape: f32[1,128], index: 2, kind: input, shape index: {}]   ;;  %s4682_s3 = inlined_call_operand.vmem [shape: bf16[2,16,16,128], index: 3, kind: output, shape index: {}]  }
   0x1 LB: > { %s3130_s13 = sadd.s32 4294967295, %s3529_s12   ;;  %p3134_p0 = scmp.ge.s32.totalorder %s3529_s12, 1  ;;  %s3529_s12 = sphi %s3551_s12, %s13_s12  }
   0x2   : > { %p137_p1 = scmp.lt.s32.totalorder %s3529_s12, 3 }
   0x4   : > { %p138_p2 = pnand %p3134_p0, %p137_p1 }
   0x6   : > { %141 = sbr.rel (%p138_p2) target bundleno = 732 (0x2dc), region = 32 }
   0xb   : > { %v290_v0 = vld [vmem:[%s4680_s1] sm:$0x3]  ;;  %vm420_vm0 = vcmask 1041408   ;;  %p161_p3 = scmp.lt.s32.totalorder %s3130_s13, 1  ;;  %v3251_v2 = vld [vmem:[%s4680_s1 + $0x4] sm:$0x3] }
   0xc   : > { %v422_v1 = vsel %vm420_vm0, %v290_v0, 0  ;;  %v3268_v3 = vld [vmem:[%s4680_s1 + $0x6] sm:$0x3]  ;;  %v1512_v4 = vsel %vm420_vm0, %v3251_v2, 0  ;;  %v3218_v6 = vld [vmem:[%s4680_s1 + $0x2] sm:$0x3] }
   0xd   : > { %3496 = vmatpush.bf16.msra.mxu1 %v422_v1  ;;  %3497 = vmatpush.bf16.msra.mxu2 %v422_v1  ;;  %s4763_s13 = smov (!%p161_p3, %s3130_s13), 1  ;;  %v1710_v5 = vsel %vm420_vm0, %v3268_v3, 0  ;;  %v1095_v7 = vsel %vm420_vm0, %v3218_v6, 0  ;;  %v3289_v8 = vld [vmem:[%s4680_s1 + $0x8] sm:$0x3]  ;;  %vm371_vm1 = vcmask 31744  }
   0xe   : > { %3498 = vmatpush.bf16.msra.mxu3 %v422_v1  ;;  %431 = vmatpush.bf16.msra.mxu0 %v422_v1  ;;  %s3499_s24 = smul.u32 216, %s4763_s13  ;;  %v1930_v9 = vsel %vm420_vm0, %v3289_v8, 0  ;;  %v3324_v26 = vld [vmem:[%s4680_s1 + $0xc] sm:$0x3]  ;;  %v3345_v27 = vld [vmem:[%s4680_s1 + $0xe] sm:$0x3] }
   0xf   : > { %v3307_v28 = vld [vmem:[%s4680_s1 + $0xa] sm:$0x3]  ;;  %v2332_v30 = vsel %vm420_vm0, %v3324_v26, 0  ;;  %v2552_v31 = vsel %vm420_vm0, %v3345_v27, 0  ;;  %v3363_v33 = vld [vmem:[%s4680_s1 + $0x10] sm:$0x3] }
  0x10   : > { %s3585_s27 = scalar_lea.vmem %s4679_s0, %s3499_s24  ;;  %v2134_v32 = vsel %vm420_vm0, %v3307_v28, 0  ;;  %v2756_v37 = vsel %vm420_vm0, %v3363_v33, 0  ;;  %vm609_vm2 = vsmask.f32 3328  ;;  %vm610_vm3 = vsmask.f32 7440 }
  0x11   : > { %1521 = vmatpush.bf16.msrb.mxu2 %v1512_v4  ;;  %1104 = vmatpush.bf16.msrb.mxu1 %v1095_v7  ;;  %v3588_v10 = vld [vmem:[%s3585_s27 + $0x30] sm:$0xff]  ;;  %v3591_v11 = vld [vmem:[%s3585_s27 + $0x60] sm:$0xff]  ;;  %v3619_v18 = vld [vmem:[%s3585_s27 + $0x48] sm:$0xff]  ;;  %vm1298_vm4 = vcmask 1042432   ;;  %vm1299_vm5 = vcmask 1046532   ;;  %s3382_s11 = sshll.u32 %s4763_s13, 7 }
  0x12   : > { %1719 = vmatpush.bf16.msrb.mxu3 %v1710_v5  ;;  %1939 = vmatpush.bf16.msrb.mxu0 %v1930_v9  ;;  %v3395_v12 = vld [vmem:[%s3585_s27 + $0x90] sm:$0xff]  ;;  %v3383_v13 = vld [vmem:[%s3585_s27] sm:$0xff]  ;;  %v3622_v19 = vld [vmem:[%s3585_s27 + $0x78] sm:$0xff]  ;;  %s4527_s16 = scalar_lea.vmem %s4682_s3, %s3382_s11 }
  0x13   : > { %3206 = vmatmul.msk.bf16.vlgmr.msra.gmra.mxu1 %vm371_vm1, %v3588_v10  ;;  %3210 = vmatmul.msk.bf16.vlgmr.msra.gmra.mxu2 %vm371_vm1, %v3591_v11  ;;  %v3602_v14 = vld [vmem:[%s3585_s27 + $0x3c] sm:$0xff]  ;;  %v3605_v15 = vld [vmem:[%s3585_s27 + $0x6c] sm:$0xff]  ;;  %v3632_v23 = vld [vmem:[%s3585_s27 + $0x4] sm:$0xf] }
  0x14   : > { %3214 = vmatmul.msk.bf16.vlgmr.msra.gmra.mxu3 %vm371_vm1, %v3395_v12  ;;  %3202 = vmatmul.msk.bf16.vlgmr.msra.gmra.mxu0 %vm371_vm1, %v3383_v13  ;;  %v3396_v16 = vld [vmem:[%s3585_s27 + $0x9c] sm:$0xff]  ;;  %v3609_v17 = vld [vmem:[%s3585_s27 + $0xc] sm:$0xff]  ;;  %v622_v29 = vshll.u32 %v3632_v23, 16  ;;  %v626_v34 = vshrl.u32 %v3632_v23, 16  ;;  %v174_v40 = vld [vmem:[%s3585_s27 + $0x8] sm:$0x1] }
  0x15   : > { %v3397_v20 = vld [vmem:[%s3585_s27 + $0xa8] sm:$0xff]  ;;  %v3626_v21 = vld [vmem:[%s3585_s27 + $0x18] sm:$0xff]  ;;  %v3629_v22 = vld [vmem:[%s3585_s27] sm:$0xf]  ;;  %2341 = vmatpush.bf16.msra.mxu2 %v2332_v30  ;;  %2143 = vmatpush.bf16.msra.mxu1 %v2134_v32  ;;  %v632_v48 = vshll.u32 %v174_v40, 16  ;;  %v1303_v54 = vrot.slane %v3632_v23, 5 }
  0x16   : > { %v613_v24 = vshrl.u32 %v3629_v22, 16  ;;  %v616_v25 = vshll.u32 %v3629_v22, 16  ;;  %v3661_v35 = vld [vmem:[%s3585_s27 + $0xc] sm:$0xf]  ;;  %v3664_v36 = vld [vmem:[%s3585_s27 + $0x10] sm:$0xf]  ;;  %2561 = vmatpush.bf16.msra.mxu3 %v2552_v31  ;;  %2765 = vmatpush.bf16.msra.mxu0 %v2756_v37  ;;  %vm3687_vm6 = vmor %vm609_vm2, %vm610_vm3 }
  0x17   : > { %v637_v41 = vshrl.u32 %v3661_v35, 16  ;;  %v640_v42 = vshll.u32 %v3661_v35, 16  ;;  %v646_v43 = vshll.u32 %v3664_v36, 16  ;;  %v650_v44 = vshrl.u32 %v3664_v36, 16  ;;  %v3674_v55 = vld [vmem:[%s3585_s27 + $0x14] sm:$0x1]  ;;  %vm3696_vm7 = vmor %vm1298_vm4, %vm1299_vm5 }
  0x18   : > { %v615_v38 = vrot.slane %v613_v24, 4  ;;  %v618_v39 = vrot.slane %v616_v25, 5  ;;  %v624_v45 = vrot.slane %v622_v29, 5  ;;  %v628_v46 = vrot.slane %v626_v34, 4  ;;  %v3677_v56 = vld [vmem:[%s3585_s27 + $0x54] sm:$0xff]  ;;  %v3680_v57 = vld [vmem:[%s3585_s27 + $0x84] sm:$0xff] }
  0x19   : > { %v639_v49 = vrot.slane %v637_v41, 4  ;;  %v642_v50 = vrot.slane %v640_v42, 5  ;;  %v648_v51 = vrot.slane %v646_v43, 5  ;;  %v652_v52 = vrot.slane %v650_v44, 4  ;;  %v3398_v58 = vld [vmem:[%s3585_s27 + $0xb4] sm:$0xff]  ;;  %v3684_v59 = vld [vmem:[%s3585_s27 + $0x24] sm:$0xff] }
  0x1a   : > { %v619_v47 = vor.u32 %v618_v39, %v615_v38  ;;  %v629_v53 = vor.u32 %v628_v46, %v624_v45  ;;  %v634_v60 = vrot.slane %v632_v48, 5  ;;  %v656_v0 = vshll.u32 %v3674_v55, 16  ;;  %v3704_v7 = vld [vmem:[%s3585_s27 + $0x18] sm:$0xf]  ;;  %v3707_v8 = vld [vmem:[%s3585_s27 + $0x1c] sm:$0xf] }
  0x1b   : > { %v643_v62 = vor.u32 %v642_v50, %v639_v49  ;;  %v653_v63 = vor.u32 %v652_v52, %v648_v51  ;;  %v3235_v3 = vrot.slane %v3629_v22, 9  ;;  %v1305_v4 = vrot.slane %v1303_v54, 4  ;;  %v180_v42 = vld [vmem:[%s3585_s27 + $0x20] sm:$0x1]  ;;  %v3400_v1 = vld [vmem:[%s3585_s27 + $0xcc] sm:$0xff] }
  0x1c   : > { %v620_v61 = vrot.slane %v619_v47, 4  ;;  %v630_v2 = vrot.slane %v629_v53, 4  ;;  %v1306_v5 = vrot.slane %v174_v40, 5  ;;  %v658_v13 = vrot.slane %v656_v0, 5 }
  0x1d   : > { %v644_v9 = vrot.slane %v643_v62, 4  ;;  %v654_v12 = vrot.slane %v653_v63, 4  ;;  %v1304_v22 = vsel %vm3696_vm7, %v3235_v3, %v1303_v54  ;;  %v661_v24 = vshrl.u32 %v3704_v7, 16 }
  0x1e   : > { %v1307_v23 = vsel %vm3696_vm7, %v1305_v4, %v1306_v5  ;;  %v664_v25 = vshll.u32 %v3704_v7, 16  ;;  %v670_v26 = vshll.u32 %v3707_v8, 16  ;;  %v674_v27 = vshrl.u32 %v3707_v8, 16 }
  0x1f   : > { %v649_v28 = vsel %vm3687_vm6, %v644_v9, %v648_v51  ;;  %v659_v29 = vsel %vm3687_vm6, %v654_v12, %v658_v13  ;;  %v1415_v32 = vunpack.c.l.b16 %v1304_v22  ;;  %v1416_v33 = vunpack.c.l.b16 %v1307_v23  ;;  %v183_v22 = vld [vmem:[%s3585_s27 + $0x2c] sm:$0x1] }
  0x20   : > { %v663_v34 = vrot.slane %v661_v24, 4  ;;  %v666_v37 = vrot.slane %v664_v25, 5  ;;  %v672_v38 = vrot.slane %v670_v26, 5  ;;  %v676_v39 = vrot.slane %v674_v27, 4 }
  0x21   : > { %v1000_v40 = vunpack.c.l.b16 %v649_v28  ;;  %v1001_v41 = vunpack.c.l.b16 %v659_v29  ;;  %v1310_v44 = vrot.slane %v3664_v36, 5  ;;  %v680_v48 = vshll.u32 %v180_v42, 16  ;;  %v3735_v36 = vld [vmem:[%s3585_s27 + $0x24] sm:$0xf] }
  0x22   : > { %v667_v46 = vor.u32 %v666_v37, %v663_v34  ;;  %v677_v47 = vor.u32 %v676_v39, %v672_v38  ;;  %v3236_v50 = vrot.slane %v3661_v35, 9  ;;  %v1313_v52 = vrot.slane %v3674_v55, 5  ;;  %v3767_v34 = vld [vmem:[%s3585_s27 + $0x30] sm:$0xf]  ;;  %v3770_v37 = vld [vmem:[%s3585_s27 + $0x34] sm:$0xf] }
  0x23   : > { %3207 = vmatmul.msk.bf16.gmra.mxu1 %vm371_vm1, %v3602_v14  ;;  %3211 = vmatmul.msk.bf16.gmra.mxu2 %vm371_vm1, %v3605_v15  ;;  %v1031_v49 = vpack.c.b16 %v1001_v41, %v1000_v40  ;;  %v1312_v51 = vrot.slane %v1310_v44, 4  ;;  %v688_v63 = vshll.u32 %v3735_v36, 16  ;;  %v1317_v24 = vrot.slane %v3707_v8, 5 }
  0x24   : > { %3215 = vmatmul.msk.bf16.gmra.mxu3 %vm371_vm1, %v3396_v16  ;;  %3203 = vmatmul.msk.bf16.gmra.mxu0 %vm371_vm1, %v3609_v17  ;;  %v625_v16 = vsel %vm3687_vm6, %v620_v61, %v624_v45  ;;  %v1447_v45 = vpack.c.b16 %v1416_v33, %v1415_v32  ;;  %v668_v53 = vrot.slane %v667_v46, 4  ;;  %v678_v54 = vrot.slane %v677_v47, 4 }
  0x25   : > { %v998_v30 = vunpack.c.l.b16 %v625_v16  ;;  %v1311_v35 = vsel %vm3696_vm7, %v3236_v50, %v1310_v44  ;;  %v1314_v61 = vsel %vm3696_vm7, %v1312_v51, %v1313_v52  ;;  %v690_v13 = vrot.slane %v688_v63, 5 }
  0x26   : > { %v673_v55 = vsel %vm3687_vm6, %v668_v53, %v672_v38  ;;  %v1417_v3 = vunpack.c.l.b16 %v1311_v35  ;;  %v1418_v4 = vunpack.c.l.b16 %v1314_v61  ;;  %v704_v28 = vshll.u32 %v183_v22, 16  ;;  %v186_v53 = vld [vmem:[%s3585_s27 + $0x38] sm:$0x1] }
  0x27   : > { %v1002_v5 = vunpack.c.l.b16 %v673_v55  ;;  %v3237_v29 = vrot.slane %v3704_v7, 9  ;;  %v1320_v8 = vrot.slane %v180_v42, 5  ;;  %v709_v40 = vshrl.u32 %v3767_v34, 16 }
  0x28   : > { %v3753_v23 = vpack.c.b16 %v1418_v4, %v1417_v3  ;;  %v706_v33 = vrot.slane %v704_v28, 5  ;;  %v712_v41 = vshll.u32 %v3767_v34, 16  ;;  %v718_v42 = vshll.u32 %v3770_v37, 16 }
  0x29   : > { %v1318_v38 = vsel %vm3696_vm7, %v3237_v29, %v1317_v24  ;;  %v728_v55 = vshll.u32 %v186_v53, 16  ;;  %v1327_v63 = vrot.slane %v183_v22, 5 }
  0x2a   : > { %v1419_v44 = vunpack.c.l.b16 %v1318_v38  ;;  %v720_v50 = vrot.slane %v718_v42, 5  ;;  %v1334_v42 = vrot.slane %v186_v53, 5 }
  0x2b   : > { %v730_v3 = vrot.slane %v728_v55, 5 }
  0x33   : > { %3208 = vmatmul.msk.bf16.gmra.mxu1 %vm371_vm1, %v3619_v18  ;;  %3212 = vmatmul.msk.bf16.gmra.mxu2 %vm371_vm1, %v3622_v19 }
  0x34   : > { %3216 = vmatmul.msk.bf16.gmra.mxu3 %vm371_vm1, %v3397_v20  ;;  %3204 = vmatmul.msk.bf16.gmra.mxu0 %vm371_vm1, %v3626_v21  ;;  %v635_v20 = vsel %vm3687_vm6, %v630_v2, %v634_v60  ;;  %v3738_v60 = vld [vmem:[%s3585_s27 + $0x28] sm:$0xf] }
  0x35   : > { %v999_v31 = vunpack.c.l.b16 %v635_v20  ;;  %v694_v0 = vshll.u32 %v3738_v60, 16  ;;  %v698_v2 = vshrl.u32 %v3738_v60, 16  ;;  %v1324_v52 = vrot.slane %v3738_v60, 5  ;;  %v3800_v60 = vld [vmem:[%s3585_s27 + $0x3c] sm:$0xf] }
  0x37   : > { %v1030_v43 = vpack.c.b16 %v999_v31, %v998_v30  ;;  %v696_v16 = vrot.slane %v694_v0, 5  ;;  %v700_v20 = vrot.slane %v698_v2, 4  ;;  %v1319_v30 = vrot.slane %v1317_v24, 4  ;;  %v3803_v0 = vld [vmem:[%s3585_s27 + $0x40] sm:$0xf] }
  0x39   : > { %v701_v27 = vor.u32 %v700_v20, %v696_v16  ;;  %v1321_v7 = vsel %vm3696_vm7, %v1319_v30, %v1320_v8 }
  0x3b   : > { %v702_v32 = vrot.slane %v701_v27, 4 }
  0x3d   : > { %v707_v39 = vsel %vm3687_vm6, %v702_v32, %v706_v33  ;;  %v1331_v32 = vrot.slane %v3770_v37, 5 }
  0x3e   : > { %v1005_v47 = vunpack.c.l.b16 %v707_v39 }
  0x43   : > { %3209 = vmatmul.msk.bf16.gmra.mxu1 %vm371_vm1, %v3677_v56  ;;  %3213 = vmatmul.msk.bf16.gmra.mxu2 %vm371_vm1, %v3680_v57 }
  0x44   : > { %3217 = vmatmul.msk.bf16.gmra.mxu3 %vm371_vm1, %v3398_v58  ;;  %3205 = vmatmul.msk.bf16.gmra.mxu0 %vm371_vm1, %v3684_v59  ;;  %v682_v58 = vrot.slane %v680_v48, 5  ;;  %v711_v48 = vrot.slane %v709_v40, 4  ;;  %v3239_v40 = vrot.slane %v3767_v34, 9  ;;  %v3836_v34 = vld [vmem:[%s3585_s27 + $0x4c] sm:$0xf] }
  0x46   : > { %v683_v62 = vsel %vm3687_vm6, %v678_v54, %v682_v58 }
  0x47   : > { %v1003_v9 = vunpack.c.l.b16 %v683_v62  ;;  %v3238_v62 = vrot.slane %v3735_v36, 9 }
  0x49   : > { %v3756_v25 = vpack.c.b16 %v1003_v9, %v1002_v5  ;;  %v1325_v4 = vsel %vm3696_vm7, %v3238_v62, %v1324_v52  ;;  %v733_v9 = vshrl.u32 %v3800_v60, 16 }
  0x4a   : > { %v1421_v22 = vunpack.c.l.b16 %v1325_v4  ;;  %v1338_v4 = vrot.slane %v3803_v0, 5 }
  0x53   : > { %3219 = vmatmul.msk.bf16.vlgmr.msrb.gmra.mxu1 %vm371_vm1, %v1030_v43  ;;  %3252 = vmatmul.msk.bf16.vlgmr.msrb.gmra.mxu2 %vm371_vm1, %v1447_v45  ;;  %v722_v43 = vshrl.u32 %v3770_v37, 16  ;;  %v1420_v45 = vunpack.c.l.b16 %v1321_v7 }
  0x54   : > { %3273 = vmatmul.msk.bf16.vlgmr.msrb.gmra.mxu3 %vm371_vm1, %v3609_v17  ;;  %3290 = vmatmul.msk.bf16.vlgmr.msrb.gmra.mxu0 %vm371_vm1, %v1031_v49  ;;  %v685_v17 = vshrl.u32 %v3735_v36, 16 }
  0x55   : > { %v724_v51 = vrot.slane %v722_v43, 4  ;;  %v3786_v54 = vpack.c.b16 %v1420_v45, %v1419_v44  ;;  %v3833_v45 = vld [vmem:[%s3585_s27 + $0x48] sm:$0xf] }
  0x56   : > { %v687_v12 = vrot.slane %v685_v17, 4  ;;  %v1326_v17 = vrot.slane %v1324_v52, 4  ;;  %v770_v52 = vshrl.u32 %v3836_v34, 16 }
  0x57   : > { %v725_v61 = vor.u32 %v724_v51, %v720_v50  ;;  %v766_v51 = vshll.u32 %v3836_v34, 16 }
  0x58   : > { %v691_v26 = vor.u32 %v690_v13, %v687_v12  ;;  %v1328_v5 = vsel %vm3696_vm7, %v1326_v17, %v1327_v63  ;;  %v742_v12 = vshll.u32 %v3803_v0, 16  ;;  %v746_v13 = vshrl.u32 %v3803_v0, 16 }
  0x59   : > { %v726_v36 = vrot.slane %v725_v61, 4  ;;  %v1422_v24 = vunpack.c.l.b16 %v1328_v5  ;;  %v768_v63 = vrot.slane %v766_v51, 5  ;;  %v3240_v0 = vrot.slane %v3800_v60, 9 }
  0x5a   : > { %v692_v31 = vrot.slane %v691_v26, 4  ;;  %v735_v26 = vrot.slane %v733_v9, 4  ;;  %v744_v28 = vrot.slane %v742_v12, 5  ;;  %v748_v29 = vrot.slane %v746_v13, 4 }
  0x5b   : > { %v731_v20 = vsel %vm3687_vm6, %v726_v36, %v730_v3  ;;  %v3819_v33 = vpack.c.b16 %v1422_v24, %v1421_v22  ;;  %v3851_v36 = vld [vmem:[%s3585_s27 + $0x50] sm:$0x1]  ;;  %v1345_v51 = vrot.slane %v3836_v34, 5  ;;  %v3241_v34 = vrot.slane %v3833_v45, 9 }
  0x5c   : > { %v1007_v8 = vunpack.c.l.b16 %v731_v20  ;;  %v749_v7 = vor.u32 %v748_v29, %v744_v28  ;;  %v776_v13 = vshll.u32 %v3851_v36, 16  ;;  %v1340_v20 = vrot.slane %v1338_v4, 4  ;;  %v3875_v29 = vld [vmem:[%s3585_s27 + $0x54] sm:$0xf] }
  0x5e   : > { %v750_v43 = vrot.slane %v749_v7, 4 }
  0x63   : > { %3220 = vmatmul.msk.bf16.gmra.mxu1 %vm371_vm1, %v1031_v49  ;;  %3253 = vmatmul.msk.bf16.gmra.mxu2 %vm371_vm1, %v3753_v23  ;;  %v714_v49 = vrot.slane %v712_v41, 5  ;;  %v1333_v41 = vrot.slane %v1331_v32, 4 }
  0x64   : > { %3274 = vmatmul.msk.bf16.gmra.mxu3 %vm371_vm1, %v3626_v21  ;;  %3291 = vmatmul.msk.bf16.gmra.mxu0 %vm371_vm1, %v3756_v25  ;;  %v697_v21 = vsel %vm3687_vm6, %v692_v31, %v696_v16  ;;  %v189_v31 = vld [vmem:[%s3585_s27 + $0x44] sm:$0x1] }
  0x65   : > { %v1004_v46 = vunpack.c.l.b16 %v697_v21  ;;  %v715_v35 = vor.u32 %v714_v49, %v711_v48  ;;  %v752_v21 = vshll.u32 %v189_v31, 16  ;;  %v757_v49 = vshrl.u32 %v3833_v45, 16 }
  0x66   : > { %v1341_v22 = vrot.slane %v189_v31, 5 }
  0x67   : > { %v3788_v58 = vpack.c.b16 %v1005_v47, %v1004_v46  ;;  %v716_v2 = vrot.slane %v715_v35, 4  ;;  %v754_v44 = vrot.slane %v752_v21, 5  ;;  %v1332_v46 = vsel %vm3696_vm7, %v3239_v40, %v1331_v32 }
  0x68   : > { %v1335_v47 = vsel %vm3696_vm7, %v1333_v41, %v1334_v42  ;;  %v1423_v53 = vunpack.c.l.b16 %v1332_v46  ;;  %v759_v62 = vrot.slane %v757_v49, 4  ;;  %v1342_v32 = vsel %vm3696_vm7, %v1340_v20, %v1341_v22 }
  0x69   : > { %v721_v16 = vsel %vm3687_vm6, %v716_v2, %v720_v50  ;;  %v760_v50 = vshll.u32 %v3833_v45, 16  ;;  %v1424_v35 = vunpack.c.l.b16 %v1335_v47  ;;  %v772_v2 = vrot.slane %v770_v52, 4  ;;  %v3902_v52 = vld [vmem:[%s3585_s27 + $0x5c] sm:$0x1] }
  0x6a   : > { %v1006_v30 = vunpack.c.l.b16 %v721_v16  ;;  %v781_v21 = vshrl.u32 %v3875_v29, 16  ;;  %v784_v40 = vshll.u32 %v3875_v29, 16  ;;  %v1346_v22 = vsel %vm3696_vm7, %v3241_v34, %v1345_v51 }
  0x6b   : > { %v762_v17 = vrot.slane %v760_v50, 5  ;;  %v3853_v3 = vpack.c.b16 %v1424_v35, %v1423_v53  ;;  %v773_v12 = vor.u32 %v772_v2, %v768_v63  ;;  %v800_v2 = vshll.u32 %v3902_v52, 16 }
  0x6c   : > { %v3821_v39 = vpack.c.b16 %v1007_v8, %v1006_v30  ;;  %v3878_v30 = vld [vmem:[%s3585_s27 + $0x58] sm:$0xf]  ;;  %v783_v47 = vrot.slane %v781_v21, 4 }
  0x6d   : > { %v790_v41 = vshll.u32 %v3878_v30, 16  ;;  %v794_v42 = vshrl.u32 %v3878_v30, 16  ;;  %v802_v20 = vrot.slane %v800_v2, 5 }
  0x6f   : > { %v796_v49 = vrot.slane %v794_v42, 4 }
  0x73   : > { %3221 = vmatmul.msk.bf16.gmra.mxu1 %vm371_vm1, %v3756_v25  ;;  %3254 = vmatmul.msk.bf16.gmra.mxu2 %vm371_vm1, %v3786_v54 }
  0x74   : > { %3275 = vmatmul.msk.bf16.gmra.mxu3 %vm371_vm1, %v3684_v59  ;;  %3292 = vmatmul.msk.bf16.gmra.mxu0 %vm371_vm1, %v3788_v58  ;;  %v736_v59 = vshll.u32 %v3800_v60, 16 }
  0x76   : > { %v738_v27 = vrot.slane %v736_v59, 5  ;;  %v763_v59 = vor.u32 %v762_v17, %v759_v62 }
  0x78   : > { %v739_v38 = vor.u32 %v738_v27, %v735_v26  ;;  %v764_v24 = vrot.slane %v763_v59, 4  ;;  %v774_v26 = vrot.slane %v773_v12, 4  ;;  %v778_v27 = vrot.slane %v776_v13, 5  ;;  %v3926_v12 = vld [vmem:[%s3585_s27 + $0x60] sm:$0xf] }
  0x79   : > { %v1348_v59 = vrot.slane %v3851_v36, 5  ;;  %v3929_v13 = vld [vmem:[%s3585_s27 + $0x64] sm:$0xf] }
  0x7a   : > { %v740_v37 = vrot.slane %v739_v38, 4  ;;  %v769_v31 = vsel %vm3687_vm6, %v764_v24, %v768_v63  ;;  %v779_v38 = vsel %vm3687_vm6, %v774_v26, %v778_v27  ;;  %v808_v27 = vshll.u32 %v3926_v12, 16 }
  0x7b   : > { %v1011_v46 = vunpack.c.l.b16 %v779_v38 }
  0x7c   : > { %v745_v48 = vsel %vm3687_vm6, %v740_v37, %v744_v28 }
  0x7d   : > { %v1008_v61 = vunpack.c.l.b16 %v745_v48  ;;  %v786_v48 = vrot.slane %v784_v40, 5 }
  0x7f   : > { %v787_v17 = vor.u32 %v786_v48, %v783_v47 }
  0x81   : > { %v788_v45 = vrot.slane %v787_v17, 4  ;;  %v1352_v17 = vrot.slane %v3878_v30, 5  ;;  %v1355_v30 = vrot.slane %v3902_v52, 5 }
  0x83   : > { %3222 = vmatmul.msk.bf16.gmra.mxu1 %vm371_vm1, %v3788_v58  ;;  %3255 = vmatmul.msk.bf16.gmra.mxu2 %vm371_vm1, %v3819_v33 }
  0x84   : > { %3276 = vmatmul.msk.bf16.gmra.mxu3 %vm371_vm1, %v3588_v10  ;;  %3293 = vmatmul.msk.bf16.gmra.mxu0 %vm371_vm1, %v3821_v39  ;;  %v755_v10 = vsel %vm3687_vm6, %v750_v43, %v754_v44  ;;  %v1426_v43 = vunpack.c.l.b16 %v1342_v32  ;;  %v1010_v44 = vunpack.c.l.b16 %v769_v31  ;;  %v818_v32 = vshrl.u32 %v3929_v13, 16 }
  0x85   : > { %v1009_v55 = vunpack.c.l.b16 %v755_v10  ;;  %v792_v10 = vrot.slane %v790_v41, 5  ;;  %v1427_v41 = vunpack.c.l.b16 %v1346_v22  ;;  %v1354_v22 = vrot.slane %v1352_v17, 4 }
  0x87   : > { %v3858_v9 = vpack.c.b16 %v1009_v55, %v1008_v61  ;;  %v3910_v55 = vpack.c.b16 %v1011_v46, %v1010_v44  ;;  %v797_v63 = vor.u32 %v796_v49, %v792_v10  ;;  %v793_v21 = vsel %vm3687_vm6, %v788_v45, %v792_v10  ;;  %v3952_v49 = vld [vmem:[%s3585_s27 + $0x68] sm:$0x1] }
  0x88   : > { %v820_v46 = vrot.slane %v818_v32, 4  ;;  %v1012_v47 = vunpack.c.l.b16 %v793_v21 }
  0x89   : > { %4702 = vst [vmem:[#allocation3_spill] sm:$0xff] %v3858_v9 }
  0x8a   : > { %4706 = vst [vmem:[#allocation7_spill] sm:$0xff] %v3910_v55 }
  0x90   : > { %v3856_v5 = vpop.f32.mrf.mxu1 }
  0x91   : > { %v3861_v16 = vpop.f32.mrf.mxu0 }
  0x93   : > { %3223 = vmatmul.msk.bf16.gmra.mxu1 %vm371_vm1, %v3821_v39  ;;  %3256 = vmatmul.msk.bf16.gmra.mxu2 %vm371_vm1, %v3853_v3 }
  0x94   : > { %3277 = vmatmul.msk.bf16.gmra.mxu3 %vm371_vm1, %v3602_v14  ;;  %3294 = vmatmul.msk.bf16.gmra.mxu0 %vm371_vm1, %v3858_v9  ;;  %v1339_v14 = vsel %vm3696_vm7, %v3240_v0, %v1338_v4  ;;  %v1347_v4 = vrot.slane %v1345_v51, 4  ;;  %v798_v0 = vrot.slane %v797_v63, 4 }
  0x95   : > { %v1425_v37 = vunpack.c.l.b16 %v1339_v14  ;;  %v814_v14 = vshll.u32 %v3929_v13, 16 }
  0x96   : > { %v3872_v28 = vpop.f32.mrf.mxu2  ;;  %v1349_v24 = vsel %vm3696_vm7, %v1347_v4, %v1348_v59  ;;  %v803_v40 = vsel %vm3687_vm6, %v798_v0, %v802_v20  ;;  %v824_v4 = vshll.u32 %v3952_v49, 16  ;;  %v3242_v20 = vrot.slane %v3875_v29, 9  ;;  %v3982_v29 = vld [vmem:[%s3585_s27 + $0x70] sm:$0xf] }
  0x97   : > { %v3880_v8 = vpop.f32.mrf.mxu3  ;;  %v3906_v35 = vpack.c.b16 %v1426_v43, %v1425_v37  ;;  %v1428_v42 = vunpack.c.l.b16 %v1349_v24  ;;  %v810_v43 = vrot.slane %v808_v27, 5  ;;  %v816_v44 = vrot.slane %v814_v14, 5  ;;  %v3979_v14 = vld [vmem:[%s3585_s27 + $0x6c] sm:$0xf] }
  0x98   : > { %4703 = vst [vmem:[#allocation4_spill] sm:$0xff] %v3880_v8  ;;  %v3882_v60 = vpop.f32.mrf.mxu1  ;;  %v1013_v48 = vunpack.c.l.b16 %v803_v40  ;;  %v826_v27 = vrot.slane %v824_v4, 5  ;;  %v1353_v52 = vsel %vm3696_vm7, %v3242_v20, %v1352_v17  ;;  %v1356_v40 = vsel %vm3696_vm7, %v1354_v22, %v1355_v30  ;;  %v4061_v8 = vld [vmem:[%s3585_s27 + $0x80] sm:$0x1] }
  0x99   : > { %v3892_v7 = vpop.f32.mrf.mxu0  ;;  %4705 = vst [vmem:[#allocation6_spill] sm:$0xff] %v3906_v35  ;;  %v3959_v10 = vpack.c.b16 %v1428_v42, %v1427_v41  ;;  %v821_v34 = vor.u32 %v820_v46, %v816_v44  ;;  %v838_v46 = vshll.u32 %v3982_v29, 16  ;;  %v1429_v17 = vunpack.c.l.b16 %v1353_v52 }
  0x9a   : > { %v3964_v45 = vpack.c.b16 %v1013_v48, %v1012_v47  ;;  %v842_v47 = vshrl.u32 %v3982_v29, 16  ;;  %v1359_v52 = vrot.slane %v3929_v13, 5 }
  0x9b   : > { %4709 = vst [vmem:[#allocation10_spill] sm:$0xff] %v3959_v10  ;;  %v840_v22 = vrot.slane %v838_v46, 5  ;;  %v3243_v46 = vrot.slane %v3926_v12, 9 }
  0x9c   : > { %4710 = vst [vmem:[#allocation11_spill] sm:$0xff] %v3964_v45  ;;  %v844_v30 = vrot.slane %v842_v47, 4  ;;  %v1361_v13 = vrot.slane %v1359_v52, 4 }
  0x9e   : > { %v3898_v50 = vpop.f32.mrf.mxu2 }
  0x9f   : > { %v3904_v53 = vpop.f32.mrf.mxu3 }
  0xa0   : > { %4704 = vst [vmem:[#allocation5_spill] sm:$0xff] %v3904_v53  ;;  %v3908_v61 = vpop.f32.mrf.mxu1 }
  0xa1   : > { %v3912_v62 = vpop.f32.mrf.mxu0 }
  0xa3   : > { %3224 = vmatmul.msk.bf16.gmra.mxu1 %vm371_vm1, %v3858_v9  ;;  %3257 = vmatmul.msk.bf16.gmra.mxu2 %vm371_vm1, %v3906_v35 }
  0xa4   : > { %3278 = vmatmul.msk.bf16.gmra.mxu3 %vm371_vm1, %v3619_v18  ;;  %3295 = vmatmul.msk.bf16.gmra.mxu0 %vm371_vm1, %v3910_v55  ;;  %v805_v18 = vshrl.u32 %v3926_v12, 16 }
  0xa6   : > { %v3931_v36 = vpop.f32.mrf.mxu2  ;;  %v807_v37 = vrot.slane %v805_v18, 4  ;;  %v822_v18 = vrot.slane %v821_v34, 4 }
  0xa7   : > { %v3937_v26 = vpop.f32.mrf.mxu3 }
  0xa8   : > { %4707 = vst [vmem:[#allocation8_spill] sm:$0xff] %v3937_v26  ;;  %v3943_v31 = vpop.f32.mrf.mxu1  ;;  %v811_v2 = vor.u32 %v810_v43, %v807_v37  ;;  %v827_v41 = vsel %vm3687_vm6, %v822_v18, %v826_v27  ;;  %v829_v37 = vshrl.u32 %v3979_v14, 16  ;;  %v832_v43 = vshll.u32 %v3979_v14, 16 }
  0xa9   : > { %v3945_v38 = vpop.f32.mrf.mxu0 }
  0xaa   : > { %v812_v24 = vrot.slane %v811_v2, 4  ;;  %v1430_v2 = vunpack.c.l.b16 %v1356_v40  ;;  %v831_v4 = vrot.slane %v829_v37, 4  ;;  %v834_v20 = vrot.slane %v832_v43, 5 }
  0xab   : > { %v1362_v43 = vrot.slane %v3952_v49, 5 }
  0xac   : > { %v835_v40 = vor.u32 %v834_v20, %v831_v4  ;;  %v4037_v4 = vld [vmem:[%s3585_s27 + $0x7c] sm:$0xf] }
  0xad   : > { %v1363_v12 = vsel %vm3696_vm7, %v1361_v13, %v1362_v43 }
  0xae   : > { %v3954_v51 = vpop.f32.mrf.mxu2  ;;  %v836_v47 = vrot.slane %v835_v40, 4 }
  0xaf   : > { %v3957_v63 = vpop.f32.mrf.mxu3 }
  0xb0   : > { %4708 = vst [vmem:[#allocation9_spill] sm:$0xff] %v3957_v63  ;;  %v3962_v59 = vpop.f32.mrf.mxu1 }
  0xb1   : > { %v3966_v0 = vpop.f32.mrf.mxu0 }
  0xb3   : > { %3225 = vmatmul.msk.bf16.gmra.mxu1 %vm371_vm1, %v3910_v55  ;;  %3258 = vmatmul.msk.bf16.gmra.mxu2 %vm371_vm1, %v3959_v10 }
  0xb4   : > { %3279 = vmatmul.msk.bf16.gmra.mxu3 %vm371_vm1, %v3677_v56  ;;  %3296 = vmatmul.msk.bf16.gmra.mxu0 %vm371_vm1, %v3964_v45  ;;  %v817_v56 = vsel %vm3687_vm6, %v812_v24, %v816_v44  ;;  %v1015_v44 = vunpack.c.l.b16 %v827_v41  ;;  %v4005_v24 = vld [vmem:[%s3585_s27 + $0x74] sm:$0x1] }
  0xb5   : > { %v1014_v34 = vunpack.c.l.b16 %v817_v56  ;;  %v845_v56 = vor.u32 %v844_v30, %v840_v22  ;;  %v848_v41 = vshll.u32 %v4005_v24, 16  ;;  %v841_v30 = vsel %vm3687_vm6, %v836_v47, %v840_v22 }
  0xb6   : > { %v3984_v32 = vpop.f32.mrf.mxu2  ;;  %v1016_v43 = vunpack.c.l.b16 %v841_v30 }
  0xb7   : > { %4711 = vst [vmem:[#allocation12_spill] sm:$0xff] %v3984_v32  ;;  %v3986_v21 = vpop.f32.mrf.mxu3  ;;  %v4013_v63 = vpack.c.b16 %v1015_v44, %v1014_v34  ;;  %v4034_v44 = vld [vmem:[%s3585_s27 + $0x78] sm:$0xf] }
  0xb8   : > { %4712 = vst [vmem:[#allocation13_spill] sm:$0xff] %v3986_v21  ;;  %v3996_v42 = vpop.f32.mrf.mxu1  ;;  %v4011_v21 = vpack.c.b16 %v1430_v2, %v1429_v17  ;;  %v846_v17 = vrot.slane %v845_v56, 4  ;;  %v850_v2 = vrot.slane %v848_v41, 5  ;;  %v853_v41 = vshrl.u32 %v4034_v44, 16 }
  0xb9   : > { %v4002_v48 = vpop.f32.mrf.mxu0  ;;  %4716 = vst [vmem:[#allocation17_spill] sm:$0xff] %v4013_v63 }
  0xba   : > { %4715 = vst [vmem:[#allocation16_spill] sm:$0xff] %v4011_v21  ;;  %v851_v40 = vsel %vm3687_vm6, %v846_v17, %v850_v2  ;;  %v1366_v2 = vrot.slane %v3982_v29, 5  ;;  %v3244_v29 = vrot.slane %v3979_v14, 9 }
  0xbb   : > { %v1017_v13 = vunpack.c.l.b16 %v851_v40 }
  0xbe   : > { %v4007_v18 = vpop.f32.mrf.mxu2 }
  0xbf   : > { %4713 = vst [vmem:[#allocation14_spill] sm:$0xff] %v4007_v18  ;;  %v4009_v27 = vpop.f32.mrf.mxu3 }
  0xc0   : > { %4714 = vst [vmem:[#allocation15_spill] sm:$0xff] %v4009_v27  ;;  %v4015_v26 = vpop.f32.mrf.mxu1  ;;  %v862_v27 = vshll.u32 %v4037_v4, 16 }
  0xc1   : > { %v4019_v37 = vpop.f32.mrf.mxu0 }
  0xc2   : > { %v864_v47 = vrot.slane %v862_v27, 5 }
  0xc3   : > { %3226 = vmatmul.msk.bf16.gmra.mxu1 %vm371_vm1, %v3964_v45  ;;  %3259 = vmatmul.msk.bf16.gmra.mxu2 %vm371_vm1, %v4011_v21  ;;  %v1432_v21 = vunpack.c.l.b16 %v1363_v12  ;;  %v855_v45 = vrot.slane %v853_v41, 4  ;;  %v4067_v12 = vpack.c.b16 %v1017_v13, %v1016_v43  ;;  %v872_v41 = vshll.u32 %v4061_v8, 16 }
  0xc4   : > { %3280 = vmatmul.msk.bf16.gmra.mxu3 %vm371_vm1, %v3591_v11  ;;  %3297 = vmatmul.msk.bf16.gmra.mxu0 %vm371_vm1, %v4013_v63  ;;  %v1360_v11 = vsel %vm3696_vm7, %v3243_v46, %v1359_v52  ;;  %v866_v52 = vshrl.u32 %v4037_v4, 16 }
  0xc5   : > { %v1431_v46 = vunpack.c.l.b16 %v1360_v11  ;;  %v874_v14 = vrot.slane %v872_v41, 5 }
  0xc6   : > { %v4031_v34 = vpop.f32.mrf.mxu2  ;;  %v868_v53 = vrot.slane %v866_v52, 4  ;;  %v1368_v52 = vrot.slane %v1366_v2, 4 }
  0xc7   : > { %4717 = vst [vmem:[#allocation18_spill] sm:$0xff] %v4031_v34  ;;  %v4039_v20 = vpop.f32.mrf.mxu3  ;;  %v4065_v55 = vpack.c.b16 %v1432_v21, %v1431_v46  ;;  %v4078_v21 = vld [vmem:[%s3585_s27 + $0x84] sm:$0xf]  ;;  %v1367_v46 = vsel %vm3696_vm7, %v3244_v29, %v1366_v2 }
  0xc8   : > { %4718 = vst [vmem:[#allocation19_spill] sm:$0xff] %v4039_v20  ;;  %v4041_v49 = vpop.f32.mrf.mxu1  ;;  %v856_v20 = vshll.u32 %v4034_v44, 16  ;;  %v869_v40 = vor.u32 %v868_v53, %v864_v47  ;;  %v877_v13 = vshrl.u32 %v4078_v21, 16 }
  0xc9   : > { %v4051_v56 = vpop.f32.mrf.mxu0  ;;  %4721 = vst [vmem:[#allocation22_spill] sm:$0xff] %v4065_v55 }
  0xca   : > { %v858_v22 = vrot.slane %v856_v20, 5 }
  0xcc   : > { %v859_v27 = vor.u32 %v858_v22, %v855_v45  ;;  %v870_v45 = vrot.slane %v869_v40, 4 }
  0xce   : > { %v4057_v17 = vpop.f32.mrf.mxu2  ;;  %v860_v53 = vrot.slane %v859_v27, 4 }
  0xcf   : > { %4719 = vst [vmem:[#allocation20_spill] sm:$0xff] %v4057_v17  ;;  %v4063_v10 = vpop.f32.mrf.mxu3  ;;  %v1369_v17 = vrot.slane %v4005_v24, 5 }
  0xd0   : > { %4720 = vst [vmem:[#allocation21_spill] sm:$0xff] %v4063_v10  ;;  %v1106_v11 = vpop.f32.mrf.mxu1  ;;  %v865_v2 = vsel %vm3687_vm6, %v860_v53, %v864_v47  ;;  %v1373_v47 = vrot.slane %v4037_v4, 5  ;;  %v1376_v4 = vrot.slane %v4061_v8, 5  ;;  %v4128_v8 = vld [vmem:[%s3585_s27 + $0x94] sm:$0xf] }
  0xd1   : > { %v1186_v30 = vadd.f32 %v1106_v11, %v3861_v16  ;;  %v1941_v20 = vpop.f32.mrf.mxu0  ;;  %v4085_v16 = vld [vmem:[%s3585_s27 + $0x88] sm:$0xf]  ;;  %v1370_v43 = vsel %vm3696_vm7, %v1368_v52, %v1369_v17  ;;  %v875_v17 = vsel %vm3687_vm6, %v870_v45, %v874_v14  ;;  %v879_v52 = vrot.slane %v877_v13, 4 }
  0xd2   : > { %v886_v10 = vshll.u32 %v4085_v16, 16  ;;  %v1434_v29 = vunpack.c.l.b16 %v1370_v43  ;;  %v1018_v18 = vunpack.c.l.b16 %v865_v2  ;;  %v1019_v32 = vunpack.c.l.b16 %v875_v17 }
  0xd3   : > { %3227 = vmatmul.msk.bf16.gmra.mxu1 %vm371_vm1, %v4013_v63  ;;  %3260 = vmatmul.msk.bf16.gmra.mxu2 %vm371_vm1, %v4065_v55  ;;  %v890_v55 = vshrl.u32 %v4085_v16, 16 }
  0xd4   : > { %3281 = vmatmul.msk.bf16.gmra.mxu3 %vm371_vm1, %v3605_v15  ;;  %3298 = vmatmul.msk.bf16.gmra.mxu0 %vm371_vm1, %v4067_v12  ;;  %v880_v15 = vshll.u32 %v4078_v21, 16  ;;  %v888_v34 = vrot.slane %v886_v10, 5 }
  0xd5   : > { %v892_v35 = vrot.slane %v890_v55, 4  ;;  %v4109_v55 = vpack.c.b16 %v1019_v32, %v1018_v18 }
  0xd6   : > { %v1523_v24 = vpop.f32.mrf.mxu2 }
  0xd7   : > { %v1603_v22 = vadd.f32 %v1523_v24, %v1186_v30  ;;  %v1721_v11 = vpop.f32.mrf.mxu3  ;;  %v1433_v30 = vunpack.c.l.b16 %v1367_v46  ;;  %v882_v24 = vrot.slane %v880_v15, 5  ;;  %v893_v14 = vor.u32 %v892_v35, %v888_v34 }
  0xd8   : > { %v1108_v27 = vpop.f32.mrf.mxu1  ;;  %v3245_v15 = vrot.slane %v4034_v44, 9 }
  0xd9   : > { %v1801_v40 = vadd.f32 %v1721_v11, %v1603_v22  ;;  %v1187_v41 = vadd.f32 %v1108_v27, %v3892_v7  ;;  %v1943_v63 = vpop.f32.mrf.mxu0  ;;  %v4103_v22 = vld [vmem:[%s3585_s27 + $0x8c] sm:$0x1]  ;;  %v4105_v11 = vpack.c.b16 %v1434_v29, %v1433_v30  ;;  %v883_v45 = vor.u32 %v882_v24, %v879_v52 }
  0xda   : > { %v896_v46 = vshll.u32 %v4103_v22, 16  ;;  %v1374_v2 = vsel %vm3696_vm7, %v3245_v15, %v1373_v47 }
  0xdb   : > { %v4100_v9 = vadd.f32 %v1941_v20, %v1801_v40  ;;  %v1375_v40 = vrot.slane %v1373_v47, 4  ;;  %v884_v35 = vrot.slane %v883_v45, 4  ;;  %v914_v47 = vshrl.u32 %v4128_v8, 16 }
  0xdc   : > { %v898_v32 = vrot.slane %v896_v46, 5  ;;  %v1435_v46 = vunpack.c.l.b16 %v1374_v2 }
  0xdd   : > { %4722 = vst [vmem:[#allocation23_spill] sm:$0xff] %v4100_v9  ;;  %v889_v29 = vsel %vm3687_vm6, %v884_v35, %v888_v34  ;;  %v916_v35 = vrot.slane %v914_v47, 4 }
  0xde   : > { %v1525_v7 = vpop.f32.mrf.mxu2  ;;  %v1020_v34 = vunpack.c.l.b16 %v889_v29 }
  0xdf   : > { %v1604_v53 = vadd.f32 %v1525_v7, %v1187_v41  ;;  %v1723_v27 = vpop.f32.mrf.mxu3  ;;  %v894_v41 = vrot.slane %v893_v14, 4 }
  0xe0   : > { %v1111_v43 = vpop.f32.mrf.mxu1 }
  0xe1   : > { %v1802_v10 = vadd.f32 %v1723_v27, %v1604_v53  ;;  %v1188_v20 = vadd.f32 %v1111_v43, %v3912_v62  ;;  %v1946_v13 = vpop.f32.mrf.mxu0  ;;  %v4125_v62 = vld [vmem:[%s3585_s27 + $0x90] sm:$0xf]  ;;  %v910_v53 = vshll.u32 %v4128_v8, 16 }
  0xe2   : > { %v901_v24 = vshrl.u32 %v4125_v62, 16  ;;  %v904_v7 = vshll.u32 %v4125_v62, 16 }
  0xe3   : > { %3228 = vmatmul.msk.bf16.gmra.mxu1 %vm371_vm1, %v4067_v12  ;;  %3261 = vmatmul.msk.bf16.gmra.mxu2 %vm371_vm1, %v4105_v11  ;;  %v4118_v18 = vadd.f32 %v1943_v63, %v1802_v10  ;;  %v1377_v63 = vsel %vm3696_vm7, %v1375_v40, %v1376_v4  ;;  %v912_v4 = vrot.slane %v910_v53, 5 }
  0xe4   : > { %3282 = vmatmul.msk.bf16.gmra.mxu3 %vm371_vm1, %v3622_v19  ;;  %3299 = vmatmul.msk.bf16.gmra.mxu0 %vm371_vm1, %v4109_v55  ;;  %v899_v19 = vsel %vm3687_vm6, %v894_v41, %v898_v32  ;;  %v1436_v43 = vunpack.c.l.b16 %v1377_v63  ;;  %v903_v15 = vrot.slane %v901_v24, 4  ;;  %v906_v40 = vrot.slane %v904_v7, 5  ;;  %v4146_v41 = vld [vmem:[%s3585_s27 + $0x98] sm:$0x1] }
  0xe5   : > { %4723 = vst [vmem:[#allocation24_spill] sm:$0xff] %v4118_v18  ;;  %v1021_v10 = vunpack.c.l.b16 %v899_v19  ;;  %v917_v63 = vor.u32 %v916_v35, %v912_v4  ;;  %v1383_v7 = vrot.slane %v4103_v22, 5 }
  0xe6   : > { %v1528_v44 = vpop.f32.mrf.mxu2  ;;  %v4148_v9 = vpack.c.b16 %v1436_v43, %v1435_v46  ;;  %v4171_v46 = vld [vmem:[%s3585_s27 + $0xa0] sm:$0xf] }
  0xe7   : > { %v1605_v17 = vadd.f32 %v1528_v44, %v1188_v20  ;;  %v1726_v30 = vpop.f32.mrf.mxu3  ;;  %v4151_v2 = vpack.c.b16 %v1021_v10, %v1020_v34 }
  0xe8   : > { %v1113_v52 = vpop.f32.mrf.mxu1 }
  0xe9   : > { %v1803_v27 = vadd.f32 %v1726_v30, %v1605_v17  ;;  %v1189_v45 = vadd.f32 %v1113_v52, %v3945_v38  ;;  %v1948_v14 = vpop.f32.mrf.mxu0  ;;  %v1380_v38 = vrot.slane %v4085_v16, 5  ;;  %v907_v30 = vor.u32 %v906_v40, %v903_v15 }
  0xea   : > { %v3246_v16 = vrot.slane %v4078_v21, 9 }
  0xeb   : > { %v4143_v20 = vadd.f32 %v1946_v13, %v1803_v27  ;;  %v920_v13 = vshll.u32 %v4146_v41, 16  ;;  %v1382_v24 = vrot.slane %v1380_v38, 4  ;;  %v4168_v27 = vld [vmem:[%s3585_s27 + $0x9c] sm:$0xf] }
  0xec   : > { %v1381_v22 = vsel %vm3696_vm7, %v3246_v16, %v1380_v38  ;;  %v925_v15 = vshrl.u32 %v4168_v27, 16  ;;  %v928_v40 = vshll.u32 %v4168_v27, 16  ;;  %v934_v38 = vshll.u32 %v4171_v46, 16 }
  0xed   : > { %v922_v47 = vrot.slane %v920_v13, 5 }
  0xee   : > { %v1530_v32 = vpop.f32.mrf.mxu2  ;;  %v930_v16 = vrot.slane %v928_v40, 5 }
  0xef   : > { %v1606_v44 = vadd.f32 %v1530_v32, %v1189_v45  ;;  %v1728_v18 = vpop.f32.mrf.mxu3 }
  0xf0   : > { %v1116_v17 = vpop.f32.mrf.mxu1 }
  0xf1   : > { %v1804_v29 = vadd.f32 %v1728_v18, %v1606_v44  ;;  %v1190_v19 = vadd.f32 %v1116_v17, %v3966_v0  ;;  %v1951_v52 = vpop.f32.mrf.mxu0  ;;  %v908_v0 = vrot.slane %v907_v30, 4  ;;  %v918_v18 = vrot.slane %v917_v63, 4 }
  0xf2   : > { %v938_v17 = vshrl.u32 %v4171_v46, 16  ;;  %v1437_v30 = vunpack.c.l.b16 %v1381_v22 }
  0xf3   : > { %3229 = vmatmul.msk.bf16.gmra.mxu1 %vm371_vm1, %v4109_v55  ;;  %3262 = vmatmul.msk.bf16.gmra.mxu2 %vm371_vm1, %v4148_v9  ;;  %v4161_v53 = vadd.f32 %v1948_v14, %v1804_v29  ;;  %v1384_v14 = vsel %vm3696_vm7, %v1382_v24, %v1383_v7  ;;  %v913_v34 = vsel %vm3687_vm6, %v908_v0, %v912_v4  ;;  %v936_v24 = vrot.slane %v934_v38, 5 }
  0xf4   : > { %3283 = vmatmul.msk.bf16.gmra.mxu3 %vm371_vm1, %v3680_v57  ;;  %3300 = vmatmul.msk.bf16.gmra.mxu0 %vm371_vm1, %v4151_v2  ;;  %v923_v10 = vsel %vm3687_vm6, %v918_v18, %v922_v47  ;;  %v1438_v63 = vunpack.c.l.b16 %v1384_v14  ;;  %v1022_v4 = vunpack.c.l.b16 %v913_v34  ;;  %v940_v7 = vrot.slane %v938_v17, 4  ;;  %v4190_v47 = vld [vmem:[%s3585_s27 + $0xa4] sm:$0x1] }
  0xf5   : > { %v1023_v29 = vunpack.c.l.b16 %v923_v10  ;;  %v1387_v18 = vrot.slane %v4128_v8, 5  ;;  %v944_v8 = vshll.u32 %v4190_v47, 16 }
  0xf6   : > { %v1533_v45 = vpop.f32.mrf.mxu2  ;;  %v941_v10 = vor.u32 %v940_v7, %v936_v24 }
  0xf7   : > { %v1607_v21 = vadd.f32 %v1533_v45, %v1190_v19  ;;  %v1731_v43 = vpop.f32.mrf.mxu3  ;;  %v927_v19 = vrot.slane %v925_v15, 4  ;;  %v3247_v15 = vrot.slane %v4125_v62, 9  ;;  %v1389_v40 = vrot.slane %v1387_v18, 4  ;;  %v4217_v62 = vld [vmem:[%s3585_s27 + $0xac] sm:$0xf] }
  0xf8   : > { %v1118_v57 = vpop.f32.mrf.mxu1  ;;  %v942_v17 = vrot.slane %v941_v10, 4 }
  0xf9   : > { %v1805_v35 = vadd.f32 %v1731_v43, %v1607_v21  ;;  %v1191_v32 = vadd.f32 %v1118_v57, %v4002_v48  ;;  %v1953_v44 = vpop.f32.mrf.mxu0  ;;  %v4192_v21 = vpack.c.b16 %v1438_v63, %v1437_v30  ;;  %v931_v22 = vor.u32 %v930_v16, %v927_v19 }
  0xfa   : > { %v946_v30 = vrot.slane %v944_v8, 5 }
  0xfb   : > { %v4186_v13 = vadd.f32 %v1951_v52, %v1805_v35  ;;  %v4194_v52 = vpack.c.b16 %v1023_v29, %v1022_v4  ;;  %v1390_v35 = vrot.slane %v4146_v41, 5  ;;  %v932_v41 = vrot.slane %v931_v22, 4 }
  0xfc   : > { %v1388_v4 = vsel %vm3696_vm7, %v3247_v15, %v1387_v18  ;;  %v947_v10 = vsel %vm3687_vm6, %v942_v17, %v946_v30 }
  0xfd   : > { %4724 = vst [vmem:[#allocation25_spill] sm:$0xff] %v4186_v13  ;;  %v937_v18 = vsel %vm3687_vm6, %v932_v41, %v936_v24  ;;  %v1394_v24 = vrot.slane %v4171_v46, 5 }
  0xfe   : > { %v1535_v0 = vpop.f32.mrf.mxu2  ;;  %v1024_v13 = vunpack.c.l.b16 %v937_v18 }
  0xff   : > { %v1608_v48 = vadd.f32 %v1535_v0, %v1191_v32  ;;  %v1733_v45 = vpop.f32.mrf.mxu3  ;;  %v4205_v32 = vld [vmem:[%s3585_s27 + $0xa8] sm:$0xf]  ;;  %v958_v0 = vshll.u32 %v4217_v62, 16 }
 0x100   : > { %v1121_v43 = vpop.f32.mrf.mxu1  ;;  %v949_v29 = vshrl.u32 %v4205_v32, 16  ;;  %v952_v7 = vshll.u32 %v4205_v32, 16 }
 0x101   : > { %v1806_v14 = vadd.f32 %v1733_v45, %v1608_v48  ;;  %v1192_v57 = vadd.f32 %v1121_v43, %v4019_v37  ;;  %v1956_v34 = vpop.f32.mrf.mxu0  ;;  %v4210_v37 = vld [vmem:[%s3585_s27 + $0x90] sm:$0xff]  ;;  %v962_v48 = vshrl.u32 %v4217_v62, 16 }
 0x102   : > { %4726 = vst [vmem:[#allocation27_spill] sm:$0xff] %v4210_v37  ;;  %v951_v15 = vrot.slane %v949_v29, 4 }
 0x103   : > { %3230 = vmatmul.msk.bf16.gmra.mxu1 %vm371_vm1, %v4151_v2  ;;  %3263 = vmatmul.msk.bf16.gmra.mxu2 %vm371_vm1, %v4192_v21  ;;  %v4207_v38 = vadd.f32 %v1953_v44, %v1806_v14  ;;  %v1391_v44 = vsel %vm3696_vm7, %v1389_v40, %v1390_v35  ;;  %v954_v40 = vrot.slane %v952_v7, 5  ;;  %v960_v35 = vrot.slane %v958_v0, 5 }
 0x104   : > { %3284 = vmatmul.msk.bf16.gmra.mxu3 %vm371_vm1, %v4210_v37  ;;  %3301 = vmatmul.msk.bf16.gmra.mxu0 %vm371_vm1, %v4194_v52  ;;  %v1440_v8 = vunpack.c.l.b16 %v1391_v44  ;;  %v1025_v37 = vunpack.c.l.b16 %v947_v10  ;;  %v3248_v0 = vrot.slane %v4168_v27, 9  ;;  %v4263_v10 = vld [vmem:[%s3585_s27 + $0xb8] sm:$0xf] }
 0x105   : > { %4725 = vst [vmem:[#allocation26_spill] sm:$0xff] %v4207_v38  ;;  %v955_v17 = vor.u32 %v954_v40, %v951_v15 }
 0x106   : > { %v1538_v63 = vpop.f32.mrf.mxu2  ;;  %v4241_v29 = vpack.c.b16 %v1025_v37, %v1024_v13  ;;  %v4252_v37 = vld [vmem:[%s3585_s27 + $0x9c] sm:$0xff] }
 0x107   : > { %v1609_v19 = vadd.f32 %v1538_v63, %v1192_v57  ;;  %v1736_v16 = vpop.f32.mrf.mxu3  ;;  %v1439_v57 = vunpack.c.l.b16 %v1388_v4  ;;  %v964_v63 = vrot.slane %v962_v48, 4  ;;  %v1396_v48 = vrot.slane %v1394_v24, 4  ;;  %4729 = vst [vmem:[#allocation30_spill] sm:$0xff] %v4252_v37 }
 0x108   : > { %v1123_v45 = vpop.f32.mrf.mxu1  ;;  %v956_v46 = vrot.slane %v955_v17, 4  ;;  %v982_v17 = vshll.u32 %v4263_v10, 16 }
 0x109   : > { %v1807_v43 = vadd.f32 %v1736_v16, %v1609_v19  ;;  %v1193_v22 = vadd.f32 %v1123_v45, %v4051_v56  ;;  %v1958_v14 = vpop.f32.mrf.mxu0  ;;  %v4235_v19 = vld [vmem:[%s3585_s27 + $0xb0] sm:$0x1]  ;;  %v4237_v16 = vpack.c.b16 %v1440_v8, %v1439_v57  ;;  %v965_v30 = vor.u32 %v964_v63, %v960_v35 }
 0x10a   : > { %v968_v4 = vshll.u32 %v4235_v19, 16  ;;  %v1395_v8 = vsel %vm3696_vm7, %v3248_v0, %v1394_v24  ;;  %v961_v63 = vsel %vm3687_vm6, %v956_v46, %v960_v35  ;;  %v986_v24 = vshrl.u32 %v4263_v10, 16 }
 0x10b   : > { %v4232_v38 = vadd.f32 %v1956_v34, %v1807_v43  ;;  %v1397_v43 = vrot.slane %v4190_v47, 5  ;;  %v4260_v47 = vld [vmem:[%s3585_s27 + $0xb4] sm:$0xf]  ;;  %v1026_v0 = vunpack.c.l.b16 %v961_v63 }
 0x10c   : > { %v970_v18 = vrot.slane %v968_v4, 5 }
 0x10d   : > { %4727 = vst [vmem:[#allocation28_spill] sm:$0xff] %v4232_v38  ;;  %v1398_v40 = vsel %vm3696_vm7, %v1396_v48, %v1397_v43 }
 0x10e   : > { %v1540_v56 = vpop.f32.mrf.mxu2 }
 0x10f   : > { %v1610_v41 = vadd.f32 %v1540_v56, %v1193_v22  ;;  %v1738_v45 = vpop.f32.mrf.mxu3  ;;  %v966_v22 = vrot.slane %v965_v30, 4 }
 0x110   : > { %v1126_v44 = vpop.f32.mrf.mxu1 }
 0x111   : > { %v1808_v34 = vadd.f32 %v1738_v45, %v1610_v41  ;;  %v1961_v7 = vpop.f32.mrf.mxu0  ;;  %v1194_v27 = vadd.f32 %v1126_v44, %v3856_v5  ;;  %v971_v56 = vsel %vm3687_vm6, %v966_v22, %v970_v18  ;;  %v973_v41 = vshrl.u32 %v4260_v47, 16 }
 0x112   : > { %v976_v45 = vshll.u32 %v4260_v47, 16  ;;  %v1441_v44 = vunpack.c.l.b16 %v1395_v8  ;;  %v1027_v48 = vunpack.c.l.b16 %v971_v56  ;;  %v984_v22 = vrot.slane %v982_v17, 5 }
 0x113   : > { %3231 = vmatmul.msk.bf16.gmra.mxu1 %vm371_vm1, %v4194_v52  ;;  %3264 = vmatmul.msk.bf16.gmra.mxu2 %vm371_vm1, %v4237_v16  ;;  %v4249_v13 = vadd.f32 %v1958_v14, %v1808_v34  ;;  %v1442_v34 = vunpack.c.l.b16 %v1398_v40  ;;  %v975_v43 = vrot.slane %v973_v41, 4  ;;  %v988_v18 = vrot.slane %v986_v24, 4 }
 0x114   : > { %3285 = vmatmul.msk.bf16.gmra.mxu3 %vm371_vm1, %v4252_v37  ;;  %3302 = vmatmul.msk.bf16.gmra.mxu0 %vm371_vm1, %v4241_v29  ;;  %v978_v46 = vrot.slane %v976_v45, 5  ;;  %v1401_v8 = vrot.slane %v4217_v62, 5  ;;  %v4286_v40 = vpack.c.b16 %v1027_v48, %v1026_v0  ;;  %v4297_v45 = vld [vmem:[%s3585_s27 + $0xa8] sm:$0xff] }
 0x115   : > { %4728 = vst [vmem:[#allocation29_spill] sm:$0xff] %v4249_v13  ;;  %v989_v63 = vor.u32 %v988_v18, %v984_v22 }
 0x116   : > { %v1543_v57 = vpop.f32.mrf.mxu2  ;;  %v1403_v62 = vrot.slane %v1401_v8, 4 }
 0x117   : > { %v1611_v14 = vadd.f32 %v1543_v57, %v1194_v27  ;;  %v1741_v15 = vpop.f32.mrf.mxu3  ;;  %v4281_v57 = vld [vmem:[%s3585_s27 + $0xbc] sm:$0x1]  ;;  %v990_v17 = vrot.slane %v989_v63, 4 }
 0x118   : > { %v1128_v5 = vpop.f32.mrf.mxu1  ;;  %v992_v56 = vshll.u32 %v4281_v57, 16 }
 0x119   : > { %v1809_v30 = vadd.f32 %v1741_v15, %v1611_v14  ;;  %v1963_v4 = vpop.f32.mrf.mxu0  ;;  %v1195_v27 = vadd.f32 %v1128_v5, %v3882_v60  ;;  %v4283_v14 = vpack.c.b16 %v1442_v34, %v1441_v44  ;;  %v4306_v44 = vld [vmem:[%s3585_s27 + $0xc0] sm:$0xf] }
 0x11a   : > { %v994_v24 = vrot.slane %v992_v56, 5  ;;  %4731 = vst [vmem:[#allocation32_spill] sm:$0xff] %v4306_v44  ;;  %v1898_v18 = vshrl.u32 %v4306_v44, 16 }
 0x11b   : > { %v4277_v35 = vadd.f32 %v1961_v7, %v1809_v30  ;;  %v979_v7 = vor.u32 %v978_v46, %v975_v43 }
 0x11e   : > { %v1545_v13 = vpop.f32.mrf.mxu2 }
 0x11f   : > { %v1612_v38 = vadd.f32 %v1545_v13, %v1195_v27  ;;  %v1743_v37 = vpop.f32.mrf.mxu3  ;;  %v3249_v13 = vrot.slane %v4205_v32, 9 }
 0x120   : > { %v1131_v15 = vpop.f32.mrf.mxu1 }
 0x121   : > { %v1810_v41 = vadd.f32 %v1743_v37, %v1612_v38  ;;  %v1966_v60 = vpop.f32.mrf.mxu0  ;;  %v1404_v38 = vrot.slane %v4235_v19, 5  ;;  %v980_v37 = vrot.slane %v979_v7, 4  ;;  %v1196_v30 = vadd.f32 %v1131_v15, %v3908_v61 }
 0x122   : > { %v1402_v48 = vsel %vm3696_vm7, %v3249_v13, %v1401_v8  ;;  %v995_v61 = vsel %vm3687_vm6, %v990_v17, %v994_v24  ;;  %v1901_v7 = vshll.u32 %v4306_v44, 16 }
 0x123   : > { %3232 = vmatmul.msk.bf16.gmra.mxu1 %vm371_vm1, %v4241_v29  ;;  %3265 = vmatmul.msk.bf16.gmra.mxu2 %vm371_vm1, %v4283_v14  ;;  %v4294_v5 = vadd.f32 %v1963_v4, %v1810_v41  ;;  %v4309_v4 = vld [vmem:[%s3585_s27 + $0xc4] sm:$0xf]  ;;  %v1405_v46 = vsel %vm3696_vm7, %v1403_v62, %v1404_v38  ;;  %v985_v19 = vsel %vm3687_vm6, %v980_v37, %v984_v22  ;;  %v1443_v56 = vunpack.c.l.b16 %v1402_v48 }
 0x124   : > { %3286 = vmatmul.msk.bf16.gmra.mxu3 %vm371_vm1, %v4297_v45  ;;  %3303 = vmatmul.msk.bf16.gmra.mxu0 %vm371_vm1, %v4286_v40  ;;  %v1907_v63 = vshll.u32 %v4309_v4, 16  ;;  %v1911_v8 = vshrl.u32 %v4309_v4, 16  ;;  %v1444_v41 = vunpack.c.l.b16 %v1405_v46  ;;  %v1028_v62 = vunpack.c.l.b16 %v985_v19 }
 0x125   : > { %4730 = vst [vmem:[#allocation31_spill] sm:$0xff] %v4294_v5  ;;  %v1029_v22 = vunpack.c.l.b16 %v995_v61  ;;  %v1900_v38 = vrot.slane %v1898_v18, 4  ;;  %v1903_v17 = vrot.slane %v1901_v7, 5  ;;  %v4342_v7 = vld [vmem:[%s3585_s27 + $0xb4] sm:$0xff] }
 0x126   : > { %v1548_v32 = vpop.f32.mrf.mxu2  ;;  %v1909_v24 = vrot.slane %v1907_v63, 5  ;;  %v4329_v5 = vpack.c.b16 %v1444_v41, %v1443_v56  ;;  %v1411_v63 = vrot.slane %v4281_v57, 5 }
 0x127   : > { %v1613_v34 = vadd.f32 %v1548_v32, %v1196_v30  ;;  %v1746_v0 = vpop.f32.mrf.mxu3  ;;  %v1913_v30 = vrot.slane %v1911_v8, 4  ;;  %v4331_v46 = vpack.c.b16 %v1029_v22, %v1028_v62  ;;  %v1904_v18 = vor.u32 %v1903_v17, %v1900_v38 }
 0x128   : > { %v1133_v43 = vpop.f32.mrf.mxu1 }
 0x129   : > { %v1811_v27 = vadd.f32 %v1746_v0, %v1613_v34  ;;  %v1968_v15 = vpop.f32.mrf.mxu0  ;;  %v1197_v37 = vadd.f32 %v1133_v43, %v3943_v31  ;;  %v4327_v34 = vld [vmem:[%s3585_s27 + $0xc8] sm:$0x1]  ;;  %v1914_v31 = vor.u32 %v1913_v30, %v1909_v24  ;;  %v1905_v56 = vrot.slane %v1904_v18, 4 }
 0x12a   : > { %v1917_v43 = vshll.u32 %v4327_v34, 16 }
 0x12b   : > { %v4323_v13 = vadd.f32 %v1966_v60, %v1811_v27  ;;  %v1408_v60 = vrot.slane %v4263_v10, 5  ;;  %v3250_v10 = vrot.slane %v4260_v47, 9  ;;  %v1915_v41 = vrot.slane %v1914_v31, 4 }
 0x12c   : > { %v1919_v62 = vrot.slane %v1917_v43, 5  ;;  %v1910_v57 = vsel %vm3687_vm6, %v1905_v56, %v1909_v24 }
 0x12d   : > { %v1409_v17 = vsel %vm3696_vm7, %v3250_v10, %v1408_v60  ;;  %v1923_v18 = vunpack.c.l.b16 %v1910_v57 }
 0x12e   : > { %v1550_v32 = vpop.f32.mrf.mxu2 }
 0x12f   : > { %v1614_v0 = vadd.f32 %v1550_v32, %v1197_v37  ;;  %v1748_v44 = vpop.f32.mrf.mxu3 }
 0x130   : > { %v1136_v48 = vpop.f32.mrf.mxu1 }
 0x131   : > { %v1812_v19 = vadd.f32 %v1748_v44, %v1614_v0  ;;  %v1971_v61 = vpop.f32.mrf.mxu0  ;;  %v1410_v44 = vrot.slane %v1408_v60, 4  ;;  %v1198_v8 = vadd.f32 %v1136_v48, %v3962_v59  ;;  %v1920_v59 = vsel %vm3687_vm6, %v1915_v41, %v1919_v62 }
 0x132   : > { %v1445_v0 = vunpack.c.l.b16 %v1409_v17  ;;  %v1924_v31 = vunpack.c.l.b16 %v1920_v59 }
 0x133   : > { %3233 = vmatmul.msk.bf16.gmra.mxu1 %vm371_vm1, %v4286_v40  ;;  %3266 = vmatmul.msk.bf16.gmra.mxu2 %vm371_vm1, %v4329_v5  ;;  %v4339_v27 = vadd.f32 %v1968_v15, %v1812_v19  ;;  %v1412_v30 = vsel %vm3696_vm7, %v1410_v44, %v1411_v63 }
 0x134   : > { %3287 = vmatmul.msk.bf16.gmra.mxu3 %vm371_vm1, %v4342_v7  ;;  %3304 = vmatmul.msk.bf16.gmra.mxu0 %vm371_vm1, %v4331_v46  ;;  %v1446_v48 = vunpack.c.l.b16 %v1412_v30  ;;  %v4367_v24 = vpack.c.b16 %v1924_v31, %v1923_v18 }
 0x136   : > { %v1553_v15 = vpop.f32.mrf.mxu2  ;;  %v4362_v63 = vpack.c.b16 %v1446_v48, %v1445_v0 }
 0x137   : > { %v1615_v22 = vadd.f32 %v1553_v15, %v1198_v8  ;;  %v1751_v38 = vpop.f32.mrf.mxu3  ;;  %v4365_v15 = vld [vmem:[%s3585_s27 + $0xc0] sm:$0xff] }
 0x138   : > { %v1138_v37 = vpop.f32.mrf.mxu1 }
 0x139   : > { %v1813_v47 = vadd.f32 %v1751_v38, %v1615_v22  ;;  %v1973_v32 = vpop.f32.mrf.mxu0  ;;  %v1199_v60 = vadd.f32 %v1138_v37, %v3996_v42 }
 0x13b   : > { %v4359_v19 = vadd.f32 %v1971_v61, %v1813_v47 }
 0x13e   : > { %v1555_v43 = vpop.f32.mrf.mxu2 }
 0x13f   : > { %v1616_v10 = vadd.f32 %v1555_v43, %v1199_v60  ;;  %v1753_v44 = vpop.f32.mrf.mxu3 }
 0x140   : > { %v1141_v8 = vpop.f32.mrf.mxu1 }
 0x141   : > { %v1814_v56 = vadd.f32 %v1753_v44, %v1616_v10  ;;  %v1976_v41 = vpop.f32.mrf.mxu0  ;;  %v1200_v42 = vadd.f32 %v1141_v8, %v4015_v26  ;;  %v3513_v26 = vld [vmem:[%s3585_s27 + $0x18] sm:$0xff] }
 0x143   : > { %3234 = vmatmul.msk.bf16.gmra.mxu1 %vm371_vm1, %v4331_v46  ;;  %3267 = vmatmul.msk.bf16.gmra.mxu2 %vm371_vm1, %v4362_v63  ;;  %v4373_v61 = vadd.f32 %v1973_v32, %v1814_v56 }
 0x144   : > { %3288 = vmatmul.msk.bf16.gmra.mxu3 %vm371_vm1, %v4365_v15  ;;  %3305 = vmatmul.msk.bf16.gmra.mxu0 %vm371_vm1, %v4367_v24 }
 0x146   : > { %v1558_v62 = vpop.f32.mrf.mxu2 }
 0x147   : > { %v1617_v22 = vadd.f32 %v1558_v62, %v1200_v42  ;;  %v1756_v38 = vpop.f32.mrf.mxu3 }
 0x148   : > { %v1143_v37 = vpop.f32.mrf.mxu1 }
 0x149   : > { %v1815_v17 = vadd.f32 %v1756_v38, %v1617_v22  ;;  %v1978_v30 = vpop.f32.mrf.mxu0  ;;  %v1201_v32 = vadd.f32 %v1143_v37, %v4041_v49 }
 0x14b   : > { %v4380_v47 = vadd.f32 %v1976_v41, %v1815_v17 }
 0x14e   : > { %v1560_v57 = vpop.f32.mrf.mxu2 }
 0x14f   : > { %v1618_v59 = vadd.f32 %v1560_v57, %v1201_v32  ;;  %v1758_v0 = vpop.f32.mrf.mxu3 }
 0x150   : > { %v1146_v48 = vpop.f32.mrf.mxu1 }
 0x151   : > { %v1816_v18 = vadd.f32 %v1758_v0, %v1618_v59  ;;  %v1981_v31 = vpop.f32.mrf.mxu0  ;;  %v1202_v49 = vadd.f32 %v1146_v48, %v3872_v28  ;;  %v3514_v28 = vld [vmem:[%s3585_s27 + $0x24] sm:$0xff] }
 0x153   : > { %3308 = vmatmul.msk.bf16.vlgmr.msra.gmra.mxu1 %vm371_vm1, %v3753_v23  ;;  %3329 = vmatmul.msk.bf16.vlgmr.msra.gmra.mxu2 %vm371_vm1, %v3513_v26  ;;  %v4387_v60 = vadd.f32 %v1978_v30, %v1816_v18 }
 0x154   : > { %3346 = vmatmul.msk.bf16.vlgmr.msra.gmra.mxu3 %vm371_vm1, %v3756_v25  ;;  %3364 = vmatmul.msk.bf16.vlgmr.msra.gmra.mxu0 %vm371_vm1, %v3786_v54 }
 0x156   : > { %v1563_v43 = vpop.f32.mrf.mxu2 }
 0x157   : > { %v1619_v10 = vadd.f32 %v1563_v43, %v1202_v49  ;;  %v1761_v44 = vpop.f32.mrf.mxu3 }
 0x158   : > { %v1148_v8 = vpop.f32.mrf.mxu1 }
 0x159   : > { %v1817_v56 = vadd.f32 %v1761_v44, %v1619_v10  ;;  %v1983_v23 = vpop.f32.mrf.mxu0  ;;  %v1203_v42 = vadd.f32 %v1148_v8, %v3898_v50 }
 0x15b   : > { %v4394_v41 = vadd.f32 %v1981_v31, %v1817_v56 }
 0x15e   : > { %v1565_v62 = vpop.f32.mrf.mxu2 }
 0x15f   : > { %v1620_v22 = vadd.f32 %v1565_v62, %v1203_v42  ;;  %v1763_v38 = vpop.f32.mrf.mxu3 }
 0x160   : > { %v1151_v25 = vpop.f32.mrf.mxu1 }
 0x161   : > { %v1818_v37 = vadd.f32 %v1763_v38, %v1620_v22  ;;  %v1986_v17 = vpop.f32.mrf.mxu0  ;;  %v1204_v50 = vadd.f32 %v1151_v25, %v3931_v36  ;;  %v3515_v36 = vld [vmem:[%s3585_s27 + $0x30] sm:$0xff] }
 0x163   : > { %3309 = vmatmul.msk.bf16.gmra.mxu1 %vm371_vm1, %v3786_v54  ;;  %3330 = vmatmul.msk.bf16.gmra.mxu2 %vm371_vm1, %v3514_v28  ;;  %v4401_v30 = vadd.f32 %v1983_v23, %v1818_v37  ;;  %v4733_v37 = vld [vmem:[#allocation14_spill] sm:$0xff] }
 0x164   : > { %3347 = vmatmul.msk.bf16.gmra.mxu3 %vm371_vm1, %v3788_v58  ;;  %3365 = vmatmul.msk.bf16.gmra.mxu0 %vm371_vm1, %v3819_v33 }
 0x166   : > { %v1568_v32 = vpop.f32.mrf.mxu2 }
 0x167   : > { %v1621_v57 = vadd.f32 %v1568_v32, %v1204_v50  ;;  %v1766_v59 = vpop.f32.mrf.mxu3 }
 0x168   : > { %v1153_v0 = vpop.f32.mrf.mxu1 }
 0x169   : > { %v1819_v48 = vadd.f32 %v1766_v59, %v1621_v57  ;;  %v1988_v54 = vpop.f32.mrf.mxu0  ;;  %v1205_v31 = vadd.f32 %v1153_v0, %v3954_v51  ;;  %v4732_v51 = vld [vmem:[#allocation12_spill] sm:$0xff]  ;;  %v3516_v0 = vld [vmem:[%s3585_s27 + $0x3c] sm:$0xff] }
 0x16b   : > { %v4408_v18 = vadd.f32 %v1986_v17, %v1819_v48 }
 0x16e   : > { %v1570_v26 = vpop.f32.mrf.mxu2 }
 0x16f   : > { %v1622_v49 = vadd.f32 %v1570_v26, %v1205_v31  ;;  %v1768_v43 = vpop.f32.mrf.mxu3  ;;  %v4735_v31 = vld [vmem:[#allocation6_spill] sm:$0xff] }
 0x170   : > { %v1156_v58 = vpop.f32.mrf.mxu1  ;;  %v4736_v26 = vld [vmem:[#allocation18_spill] sm:$0xff] }
 0x171   : > { %v1820_v10 = vadd.f32 %v1768_v43, %v1622_v49  ;;  %v1991_v44 = vpop.f32.mrf.mxu0  ;;  %v1206_v56 = vadd.f32 %v1156_v58, %v4732_v51 }
 0x173   : > { %3310 = vmatmul.msk.bf16.gmra.mxu1 %vm371_vm1, %v3819_v33  ;;  %3331 = vmatmul.msk.bf16.gmra.mxu2 %vm371_vm1, %v3515_v36  ;;  %v4415_v8 = vadd.f32 %v1988_v54, %v1820_v10  ;;  %v4734_v54 = vld [vmem:[#allocation3_spill] sm:$0xff] }
 0x174   : > { %3348 = vmatmul.msk.bf16.gmra.mxu3 %vm371_vm1, %v3821_v39  ;;  %3366 = vmatmul.msk.bf16.gmra.mxu0 %vm371_vm1, %v3853_v3 }
 0x176   : > { %v1573_v23 = vpop.f32.mrf.mxu2 }
 0x177   : > { %v1623_v42 = vadd.f32 %v1573_v23, %v1206_v56  ;;  %v1771_v62 = vpop.f32.mrf.mxu3  ;;  %v4737_v56 = vld [vmem:[#allocation20_spill] sm:$0xff] }
 0x178   : > { %v1158_v22 = vpop.f32.mrf.mxu1 }
 0x179   : > { %v1821_v38 = vadd.f32 %v1771_v62, %v1623_v42  ;;  %v1993_v33 = vpop.f32.mrf.mxu0  ;;  %v1207_v17 = vadd.f32 %v1158_v22, %v4733_v37 }
 0x17b   : > { %v4422_v25 = vadd.f32 %v1991_v44, %v1821_v38 }
 0x17e   : > { %v1575_v28 = vpop.f32.mrf.mxu2 }
 0x17f   : > { %v1624_v50 = vadd.f32 %v1575_v28, %v1207_v17  ;;  %v1773_v32 = vpop.f32.mrf.mxu3  ;;  %v3517_v17 = vld [vmem:[%s3585_s27 + $0x48] sm:$0xff] }
 0x180   : > { %v1161_v39 = vpop.f32.mrf.mxu1 }
 0x181   : > { %v1822_v57 = vadd.f32 %v1773_v32, %v1624_v50  ;;  %v1996_v59 = vpop.f32.mrf.mxu0  ;;  %v1208_v49 = vadd.f32 %v1161_v39, %v4736_v26  ;;  %v4738_v50 = vld [vmem:[#allocation7_spill] sm:$0xff]  ;;  %v4739_v32 = vld [vmem:[#allocation10_spill] sm:$0xff]  ;;  %v4740_v39 = vld [vmem:[#allocation4_spill] sm:$0xff] }
 0x183   : > { %3311 = vmatmul.msk.bf16.gmra.mxu1 %vm371_vm1, %v3853_v3  ;;  %3332 = vmatmul.msk.bf16.gmra.mxu2 %vm371_vm1, %v3516_v0  ;;  %v4429_v48 = vadd.f32 %v1993_v33, %v1822_v57 }
 0x184   : > { %3349 = vmatmul.msk.bf16.gmra.mxu3 %vm371_vm1, %v4734_v54  ;;  %3367 = vmatmul.msk.bf16.gmra.mxu0 %vm371_vm1, %v4735_v31 }
 0x186   : > { %v1578_v43 = vpop.f32.mrf.mxu2 }
 0x187   : > { %v1625_v58 = vadd.f32 %v1578_v43, %v1208_v49  ;;  %v1776_v10 = vpop.f32.mrf.mxu3 }
 0x188   : > { %v1163_v44 = vpop.f32.mrf.mxu1 }
 0x189   : > { %v1823_v36 = vadd.f32 %v1776_v10, %v1625_v58  ;;  %v1998_v3 = vpop.f32.mrf.mxu0  ;;  %v1209_v23 = vadd.f32 %v1163_v44, %v4737_v56  ;;  %v4741_v58 = vld [vmem:[#allocation5_spill] sm:$0xff] }
 0x18b   : > { %v4436_v51 = vadd.f32 %v1996_v59, %v1823_v36 }
 0x18e   : > { %v1580_v42 = vpop.f32.mrf.mxu2 }
 0x18f   : > { %v1626_v62 = vadd.f32 %v1580_v42, %v1209_v23  ;;  %v1778_v22 = vpop.f32.mrf.mxu3 }
 0x190   : > { %v1166_v38 = vpop.f32.mrf.mxu1 }
 0x191   : > { %v1824_v33 = vadd.f32 %v1778_v22, %v1626_v62  ;;  %v2001_v37 = vpop.f32.mrf.mxu0  ;;  %v1210_v57 = vadd.f32 %v1166_v38, %v4740_v39  ;;  %v3518_v62 = vld [vmem:[%s3585_s27 + $0x54] sm:$0xff]  ;;  %v4742_v38 = vld [vmem:[#allocation11_spill] sm:$0xff] }
 0x193   : > { %3312 = vmatmul.msk.bf16.gmra.mxu1 %vm371_vm1, %v4735_v31  ;;  %3333 = vmatmul.msk.bf16.gmra.mxu2 %vm371_vm1, %v3517_v17  ;;  %v4443_v28 = vadd.f32 %v1998_v3, %v1824_v33  ;;  %v4743_v33 = vld [vmem:[#allocation16_spill] sm:$0xff] }
 0x194   : > { %3350 = vmatmul.msk.bf16.gmra.mxu3 %vm371_vm1, %v4738_v50  ;;  %3368 = vmatmul.msk.bf16.gmra.mxu0 %vm371_vm1, %v4739_v32 }
 0x196   : > { %v1583_v59 = vpop.f32.mrf.mxu2 }
 0x197   : > { %v1627_v0 = vadd.f32 %v1583_v59, %v1210_v57  ;;  %v1781_v54 = vpop.f32.mrf.mxu3 }
 0x198   : > { %v1168_v26 = vpop.f32.mrf.mxu1 }
 0x199   : > { %v1825_v49 = vadd.f32 %v1781_v54, %v1627_v0  ;;  %v2003_v31 = vpop.f32.mrf.mxu0  ;;  %v1211_v10 = vadd.f32 %v1168_v26, %v4741_v58  ;;  %v4745_v26 = vld [vmem:[#allocation9_spill] sm:$0xff] }
 0x19b   : > { %v4450_v43 = vadd.f32 %v2001_v37, %v1825_v49  ;;  %v4744_v37 = vld [vmem:[#allocation8_spill] sm:$0xff] }
 0x19e   : > { %v1585_v44 = vpop.f32.mrf.mxu2 }
 0x19f   : > { %v1628_v36 = vadd.f32 %v1585_v44, %v1211_v10  ;;  %v1783_v3 = vpop.f32.mrf.mxu3 }
 0x1a0   : > { %v1171_v56 = vpop.f32.mrf.mxu1 }
 0x1a1   : > { %v1826_v23 = vadd.f32 %v1783_v3, %v1628_v36  ;;  %v2006_v42 = vpop.f32.mrf.mxu0  ;;  %v1212_v17 = vadd.f32 %v1171_v56, %v4744_v37  ;;  %v3519_v56 = vld [vmem:[%s3585_s27 + $0x60] sm:$0xff] }
 0x1a3   : > { %3313 = vmatmul.msk.bf16.gmra.mxu1 %vm371_vm1, %v4739_v32  ;;  %3334 = vmatmul.msk.bf16.gmra.mxu2 %vm371_vm1, %v3518_v62  ;;  %v4457_v22 = vadd.f32 %v2003_v31, %v1826_v23  ;;  %v4746_v62 = vld [vmem:[#allocation17_spill] sm:$0xff] }
 0x1a4   : > { %3351 = vmatmul.msk.bf16.gmra.mxu3 %vm371_vm1, %v4742_v38  ;;  %3369 = vmatmul.msk.bf16.gmra.mxu0 %vm371_vm1, %v4743_v33  ;;  %v4748_v38 = vld [vmem:[#allocation13_spill] sm:$0xff] }
 0x1a6   : > { %v1588_v50 = vpop.f32.mrf.mxu2 }
 0x1a7   : > { %v1629_v39 = vadd.f32 %v1588_v50, %v1212_v17  ;;  %v1786_v57 = vpop.f32.mrf.mxu3 }
 0x1a8   : > { %v1173_v59 = vpop.f32.mrf.mxu1 }
 0x1a9   : > { %v1827_v0 = vadd.f32 %v1786_v57, %v1629_v39  ;;  %v2008_v32 = vpop.f32.mrf.mxu0  ;;  %v1213_v49 = vadd.f32 %v1173_v59, %v4745_v26  ;;  %v4749_v26 = vld [vmem:[#allocation15_spill] sm:$0xff] }
 0x1ab   : > { %v4464_v54 = vadd.f32 %v2006_v42, %v1827_v0  ;;  %v4747_v42 = vld [vmem:[#allocation22_spill] sm:$0xff] }
 0x1ae   : > { %v1590_v31 = vpop.f32.mrf.mxu2 }
 0x1af   : > { %v1630_v58 = vadd.f32 %v1590_v31, %v1213_v49  ;;  %v1788_v10 = vpop.f32.mrf.mxu3 }
 0x1b0   : > { %v1176_v44 = vpop.f32.mrf.mxu1 }
 0x1b1   : > { %v1828_v36 = vadd.f32 %v1788_v10, %v1630_v58  ;;  %v2011_v3 = vpop.f32.mrf.mxu0  ;;  %v1214_v37 = vadd.f32 %v1176_v44, %v4748_v38  ;;  %v3520_v44 = vld [vmem:[%s3585_s27 + $0x6c] sm:$0xff] }
 0x1b3   : > { %3314 = vmatmul.msk.bf16.gmra.mxu1 %vm371_vm1, %v4743_v33  ;;  %3335 = vmatmul.msk.bf16.gmra.mxu2 %vm371_vm1, %v3519_v56  ;;  %v4471_v23 = vadd.f32 %v2008_v32, %v1828_v36 }
 0x1b4   : > { %3352 = vmatmul.msk.bf16.gmra.mxu3 %vm371_vm1, %v4746_v62  ;;  %3370 = vmatmul.msk.bf16.gmra.mxu0 %vm371_vm1, %v4747_v42 }
 0x1b6   : > { %v1593_v17 = vpop.f32.mrf.mxu2 }
 0x1b7   : > { %v1631_v50 = vadd.f32 %v1593_v17, %v1214_v37  ;;  %v1791_v39 = vpop.f32.mrf.mxu3 }
 0x1b8   : > { %v1178_v57 = vpop.f32.mrf.mxu1 }
 0x1b9   : > { %v1829_v59 = vadd.f32 %v1791_v39, %v1631_v50  ;;  %v2013_v33 = vpop.f32.mrf.mxu0  ;;  %v1215_v32 = vadd.f32 %v1178_v57, %v4749_v26  ;;  %v4751_v26 = vld [vmem:[#allocation21_spill] sm:$0xff] }
 0x1bb   : > { %v4478_v0 = vadd.f32 %v2011_v3, %v1829_v59  ;;  %v4750_v3 = vld [vmem:[#allocation19_spill] sm:$0xff] }
 0x1be   : > { %v1595_v49 = vpop.f32.mrf.mxu2 }
 0x1bf   : > { %v1632_v31 = vadd.f32 %v1595_v49, %v1215_v32  ;;  %v1793_v58 = vpop.f32.mrf.mxu3 }
 0x1c0   : > { %v1181_v10 = vpop.f32.mrf.mxu1 }
 0x1c1   : > { %v1830_v36 = vadd.f32 %v1793_v58, %v1632_v31  ;;  %v2016_v56 = vpop.f32.mrf.mxu0  ;;  %v1216_v38 = vadd.f32 %v1181_v10, %v4750_v3  ;;  %v3521_v10 = vld [vmem:[%s3585_s27 + $0x78] sm:$0xff] }
 0x1c3   : > { %3315 = vmatmul.msk.bf16.gmra.mxu1 %vm371_vm1, %v4747_v42  ;;  %3336 = vmatmul.msk.bf16.gmra.mxu2 %vm371_vm1, %v3520_v44  ;;  %v4485_v62 = vadd.f32 %v2013_v33, %v1830_v36 }
 0x1c4   : > { %3353 = vmatmul.msk.bf16.gmra.mxu3 %vm371_vm1, %v4067_v12  ;;  %3371 = vmatmul.msk.bf16.gmra.mxu0 %vm371_vm1, %v4105_v11 }
 0x1c6   : > { %v1598_v37 = vpop.f32.mrf.mxu2 }
 0x1c7   : > { %v1633_v17 = vadd.f32 %v1598_v37, %v1216_v38  ;;  %v1796_v50 = vpop.f32.mrf.mxu3 }
 0x1c8   : > { %v1183_v39 = vpop.f32.mrf.mxu1 }
 0x1c9   : > { %v1831_v57 = vadd.f32 %v1796_v50, %v1633_v17  ;;  %v2018_v42 = vpop.f32.mrf.mxu0  ;;  %v1217_v33 = vadd.f32 %v1183_v39, %v4751_v26 }
 0x1cb   : > { %v4492_v59 = vadd.f32 %v2016_v56, %v1831_v57  ;;  %v4752_v56 = vld [vmem:[#allocation23_spill] sm:$0xff]  ;;  %v4753_v57 = vld [vmem:[#allocation24_spill] sm:$0xff] }
 0x1ce   : > { %v1600_v32 = vpop.f32.mrf.mxu2 }
 0x1cf   : > { %v1634_v49 = vadd.f32 %v1600_v32, %v1217_v33  ;;  %v1798_v31 = vpop.f32.mrf.mxu3 }
 0x1d0   : > { %v2145_v12 = vpop.f32.mrf.mxu1 }
 0x1d1   : > { %v1832_v58 = vadd.f32 %v1798_v31, %v1634_v49  ;;  %v2767_v36 = vpop.f32.mrf.mxu0  ;;  %v2225_v3 = vadd.f32 %v2145_v12, %v4752_v56 }
 0x1d3   : > { %3316 = vmatmul.msk.bf16.gmra.mxu1 %vm371_vm1, %v4105_v11  ;;  %3337 = vmatmul.msk.bf16.gmra.mxu2 %vm371_vm1, %v3521_v10  ;;  %v4499_v44 = vadd.f32 %v2018_v42, %v1832_v58 }
 0x1d4   : > { %3354 = vmatmul.msk.bf16.gmra.mxu3 %vm371_vm1, %v4109_v55  ;;  %3372 = vmatmul.msk.bf16.gmra.mxu0 %vm371_vm1, %v4148_v9  ;;  %v4510_v55 = vld [vmem:[%s4681_s2] ss:$0 sm:$0xff] }
 0x1d6   : > { %v2343_v38 = vpop.f32.mrf.mxu2 }
 0x1d7   : > { %v2423_v37 = vadd.f32 %v2343_v38, %v2225_v3  ;;  %v2563_v17 = vpop.f32.mrf.mxu3  ;;  %v3522_v3 = vld [vmem:[%s3585_s27 + $0x84] sm:$0xff] }
 0x1d8   : > { %v2147_v50 = vpop.f32.mrf.mxu1 }
 0x1d9   : > { %v2769_v39 = vpop.f32.mrf.mxu0  ;;  %v2643_v11 = vadd.f32 %v2563_v17, %v2423_v37  ;;  %v2226_v26 = vadd.f32 %v2147_v50, %v4753_v57 }
 0x1db   : > { %v2847_v33 = vadd.f32 %v2767_v36, %v2643_v11 }
 0x1dd   : > { %v2947_v10 = vadd.f32 %v4510_v55, %v2847_v33 }
 0x1de   : > { %v2345_v42 = vpop.f32.mrf.mxu2 }
 0x1df   : > { %v2424_v32 = vadd.f32 %v2345_v42, %v2226_v26  ;;  %v2565_v49 = vpop.f32.mrf.mxu3  ;;  %v2979_v17 = vmax.f32 %v2947_v10, 0.0 }
 0x1e0   : > { %v2150_v31 = vpop.f32.mrf.mxu1 }
 0x1e1   : > { %v2644_v12 = vadd.f32 %v2565_v49, %v2424_v32  ;;  %v2772_v58 = vpop.f32.mrf.mxu0  ;;  %v2227_v38 = vadd.f32 %v2150_v31, %v4143_v20 }
 0x1e3   : > { %v2848_v56 = vadd.f32 %v2769_v39, %v2644_v12  ;;  %3317 = vmatmul.msk.bf16.gmra.mxu1 %vm371_vm1, %v4148_v9  ;;  %3338 = vmatmul.msk.bf16.gmra.mxu2 %vm371_vm1, %v3522_v3 }
 0x1e4   : > { %3355 = vmatmul.msk.bf16.gmra.mxu3 %vm371_vm1, %v4151_v2  ;;  %3373 = vmatmul.msk.bf16.gmra.mxu0 %vm371_vm1, %v4192_v21 }
 0x1e5   : > { %v2948_v36 = vadd.f32 %v4510_v55, %v2848_v56 }
 0x1e6   : > { %v2348_v37 = vpop.f32.mrf.mxu2 }
 0x1e7   : > { %v2980_v50 = vmax.f32 %v2948_v36, 0.0  ;;  %v2425_v39 = vadd.f32 %v2348_v37, %v2227_v38  ;;  %v2568_v11 = vpop.f32.mrf.mxu3  ;;  %v4754_v36 = vld [vmem:[#allocation27_spill] sm:$0xff] }
 0x1e8   : > { %v2152_v9 = vpop.f32.mrf.mxu1 }
 0x1e9   : > { %v3404_v2 = vpack.c.bf16 %v2980_v50, %v2979_v17  ;;  %v2774_v57 = vpop.f32.mrf.mxu0  ;;  %v2645_v26 = vadd.f32 %v2568_v11, %v2425_v39  ;;  %v2228_v42 = vadd.f32 %v2152_v9, %v4161_v53 }
 0x1eb   : > { %3405 = vst [vmem:[%s4527_s16] sm:$0xff] %v3404_v2   ;;  %v2849_v20 = vadd.f32 %v2772_v58, %v2645_v26  ;;  %v4755_v58 = vld [vmem:[#allocation25_spill] sm:$0xff]  ;;  %v4756_v26 = vld [vmem:[#allocation26_spill] sm:$0xff] }
 0x1ed   : > { %v2949_v56 = vadd.f32 %v4510_v55, %v2849_v20 }
 0x1ee   : > { %v2350_v33 = vpop.f32.mrf.mxu2 }
 0x1ef   : > { %v2426_v32 = vadd.f32 %v2350_v33, %v2228_v42  ;;  %v2570_v49 = vpop.f32.mrf.mxu3  ;;  %v2981_v17 = vmax.f32 %v2949_v56, 0.0 }
 0x1f0   : > { %v2155_v31 = vpop.f32.mrf.mxu1 }
 0x1f1   : > { %v2646_v12 = vadd.f32 %v2570_v49, %v2426_v32  ;;  %v2777_v10 = vpop.f32.mrf.mxu0  ;;  %v2229_v38 = vadd.f32 %v2155_v31, %v4755_v58 }
 0x1f3   : > { %v2850_v3 = vadd.f32 %v2774_v57, %v2646_v12  ;;  %3318 = vmatmul.msk.bf16.gmra.mxu1 %vm371_vm1, %v4192_v21  ;;  %3339 = vmatmul.msk.bf16.gmra.mxu2 %vm371_vm1, %v4754_v36  ;;  %v4757_v36 = vld [vmem:[#allocation30_spill] sm:$0xff] }
 0x1f4   : > { %3356 = vmatmul.msk.bf16.gmra.mxu3 %vm371_vm1, %v4194_v52  ;;  %3374 = vmatmul.msk.bf16.gmra.mxu0 %vm371_vm1, %v4237_v16 }
 0x1f5   : > { %v2950_v53 = vadd.f32 %v4510_v55, %v2850_v3 }
 0x1f6   : > { %v2353_v37 = vpop.f32.mrf.mxu2 }
 0x1f7   : > { %v2982_v50 = vmax.f32 %v2950_v53, 0.0  ;;  %v2427_v39 = vadd.f32 %v2353_v37, %v2229_v38  ;;  %v2573_v11 = vpop.f32.mrf.mxu3  ;;  %v4758_v53 = vld [vmem:[#allocation28_spill] sm:$0xff] }
 0x1f8   : > { %v2157_v9 = vpop.f32.mrf.mxu1 }
 0x1f9   : > { %v3409_v21 = vpack.c.bf16 %v2982_v50, %v2981_v17  ;;  %v2779_v2 = vpop.f32.mrf.mxu0  ;;  %v2647_v57 = vadd.f32 %v2573_v11, %v2427_v39  ;;  %v2230_v42 = vadd.f32 %v2157_v9, %v4756_v26 }
 0x1fb   : > { %3481 = vst [vmem:[%s4527_s16 + $0x8] sm:$0xff] %v3409_v21   ;;  %v2851_v33 = vadd.f32 %v2777_v10, %v2647_v57 }
 0x1fd   : > { %v2951_v31 = vadd.f32 %v4510_v55, %v2851_v33 }
 0x1fe   : > { %v2355_v52 = vpop.f32.mrf.mxu2 }
 0x1ff   : > { %v2428_v20 = vadd.f32 %v2355_v52, %v2230_v42  ;;  %v2575_v32 = vpop.f32.mrf.mxu3  ;;  %v2983_v37 = vmax.f32 %v2951_v31, 0.0 }
 0x200   : > { %v2160_v49 = vpop.f32.mrf.mxu1 }
 0x201   : > { %v2648_v12 = vadd.f32 %v2575_v32, %v2428_v20  ;;  %v2782_v3 = vpop.f32.mrf.mxu0  ;;  %v2231_v58 = vadd.f32 %v2160_v49, %v4758_v53 }
 0x203   : > { %v2852_v56 = vadd.f32 %v2779_v2, %v2648_v12  ;;  %3319 = vmatmul.msk.bf16.gmra.mxu1 %vm371_vm1, %v4237_v16  ;;  %3340 = vmatmul.msk.bf16.gmra.mxu2 %vm371_vm1, %v4757_v36  ;;  %v4759_v2 = vld [vmem:[#allocation29_spill] sm:$0xff] }
 0x204   : > { %3357 = vmatmul.msk.bf16.gmra.mxu3 %vm371_vm1, %v4241_v29  ;;  %3375 = vmatmul.msk.bf16.gmra.mxu0 %vm371_vm1, %v4283_v14 }
 0x205   : > { %v2952_v10 = vadd.f32 %v4510_v55, %v2852_v56 }
 0x206   : > { %v2358_v38 = vpop.f32.mrf.mxu2 }
 0x207   : > { %v2984_v17 = vmax.f32 %v2952_v10, 0.0  ;;  %v2429_v50 = vadd.f32 %v2358_v38, %v2231_v58  ;;  %v2578_v39 = vpop.f32.mrf.mxu3 }
 0x208   : > { %v2162_v11 = vpop.f32.mrf.mxu1 }
 0x209   : > { %v3414_v16 = vpack.c.bf16 %v2984_v17, %v2983_v37  ;;  %v2784_v9 = vpop.f32.mrf.mxu0  ;;  %v2649_v21 = vadd.f32 %v2578_v39, %v2429_v50  ;;  %v2232_v57 = vadd.f32 %v2162_v11, %v4759_v2  ;;  %v4760_v17 = vld [vmem:[#allocation31_spill] sm:$0xff] }
 0x20b   : > { %3482 = vst [vmem:[%s4527_s16 + $0x10] sm:$0xff] %v3414_v16   ;;  %v2853_v26 = vadd.f32 %v2782_v3, %v2649_v21 }
 0x20d   : > { %v2953_v49 = vadd.f32 %v4510_v55, %v2853_v26 }
 0x20e   : > { %v2360_v29 = vpop.f32.mrf.mxu2 }
 0x20f   : > { %v2430_v42 = vadd.f32 %v2360_v29, %v2232_v57  ;;  %v2580_v52 = vpop.f32.mrf.mxu3  ;;  %v2985_v36 = vmax.f32 %v2953_v49, 0.0  ;;  %v4761_v57 = vld [vmem:[#allocation32_spill] sm:$0xff] }
 0x210   : > { %v2165_v33 = vpop.f32.mrf.mxu1  ;;  %v3306_v29 = vrot.slane %v4761_v57, 9 }
 0x211   : > { %v2650_v20 = vadd.f32 %v2580_v52, %v2430_v42  ;;  %v2787_v32 = vpop.f32.mrf.mxu0  ;;  %v2233_v31 = vadd.f32 %v2165_v33, %v4277_v35  ;;  %v2123_v33 = vrot.slane %v4327_v34, 5 }
 0x213   : > { %v2854_v12 = vadd.f32 %v2784_v9, %v2650_v20  ;;  %3320 = vmatmul.msk.bf16.gmra.mxu1 %vm371_vm1, %v4283_v14  ;;  %3341 = vmatmul.msk.bf16.gmra.mxu2 %vm371_vm1, %v4297_v45  ;;  %v2120_v9 = vrot.slane %v4309_v4, 5 }
 0x214   : > { %3358 = vmatmul.msk.bf16.gmra.mxu3 %vm371_vm1, %v4286_v40  ;;  %3376 = vmatmul.msk.bf16.gmra.mxu0 %vm371_vm1, %v4329_v5 }
 0x215   : > { %v2954_v3 = vadd.f32 %v4510_v55, %v2854_v12  ;;  %v2122_v52 = vrot.slane %v2120_v9, 4 }
 0x216   : > { %v2363_v56 = vpop.f32.mrf.mxu2 }
 0x217   : > { %v2986_v10 = vmax.f32 %v2954_v3, 0.0  ;;  %v2431_v53 = vadd.f32 %v2363_v56, %v2233_v31  ;;  %v2583_v58 = vpop.f32.mrf.mxu3  ;;  %v2124_v31 = vsel %vm3696_vm7, %v2122_v52, %v2123_v33 }
 0x218   : > { %v2167_v38 = vpop.f32.mrf.mxu1 }
 0x219   : > { %v3419_v14 = vpack.c.bf16 %v2986_v10, %v2985_v36  ;;  %v2789_v37 = vpop.f32.mrf.mxu0  ;;  %v2651_v45 = vadd.f32 %v2583_v58, %v2431_v53  ;;  %v2234_v50 = vadd.f32 %v2167_v38, %v4760_v17 }
 0x21b   : > { %3483 = vst [vmem:[%s4527_s16 + $0x18] sm:$0xff] %v3419_v14   ;;  %v2855_v39 = vadd.f32 %v2787_v32, %v2651_v45  ;;  %v4585_v32 = vld [vmem:[%s3585_s27 + $0xcc] sm:$0xf]  ;;  %v2128_v45 = vunpack.c.l.b16 %v2124_v31 }
 0x21c   : > { %v2523_v36 = vshll.u32 %v4585_v32, 16 }
 0x21d   : > { %v2955_v26 = vadd.f32 %v4510_v55, %v2855_v39 }
 0x21e   : > { %v2365_v40 = vpop.f32.mrf.mxu2 }
 0x21f   : > { %v2432_v11 = vadd.f32 %v2365_v40, %v2234_v50  ;;  %v2585_v16 = vpop.f32.mrf.mxu3  ;;  %v2987_v34 = vmax.f32 %v2955_v26, 0.0  ;;  %v2525_v50 = vrot.slane %v2523_v36, 5 }
 0x220   : > { %v2170_v35 = vpop.f32.mrf.mxu1 }
 0x221   : > { %v2652_v21 = vadd.f32 %v2585_v16, %v2432_v11  ;;  %v2792_v2 = vpop.f32.mrf.mxu0  ;;  %v2235_v20 = vadd.f32 %v2170_v35, %v4323_v13  ;;  %v2520_v13 = vshrl.u32 %v4585_v32, 16  ;;  %v225_v16 = vld [vmem:[%s3585_s27 + $0xd4] sm:$0x1] }
 0x222   : > { %v2539_v33 = vshll.u32 %v225_v16, 16 }
 0x223   : > { %v2856_v42 = vadd.f32 %v2789_v37, %v2652_v21  ;;  %3321 = vmatmul.msk.bf16.gmra.mxu1 %vm371_vm1, %v4329_v5  ;;  %3342 = vmatmul.msk.bf16.gmra.mxu2 %vm371_vm1, %v4342_v7  ;;  %v4588_v5 = vld [vmem:[%s3585_s27 + $0xd0] sm:$0xf]  ;;  %v2121_v7 = vsel %vm3696_vm7, %v3306_v29, %v2120_v9  ;;  %v2522_v17 = vrot.slane %v2520_v13, 4 }
 0x224   : > { %3359 = vmatmul.msk.bf16.gmra.mxu3 %vm371_vm1, %v4331_v46  ;;  %3377 = vmatmul.msk.bf16.gmra.mxu0 %vm371_vm1, %v4362_v63  ;;  %v2529_v10 = vshll.u32 %v4588_v5, 16  ;;  %v2533_v53 = vshrl.u32 %v4588_v5, 16  ;;  %v2127_v37 = vunpack.c.l.b16 %v2121_v7 }
 0x225   : > { %v2956_v4 = vadd.f32 %v4510_v55, %v2856_v42  ;;  %v2526_v42 = vor.u32 %v2525_v50, %v2522_v17 }
 0x226   : > { %v2368_v49 = vpop.f32.mrf.mxu2  ;;  %v2531_v40 = vrot.slane %v2529_v10, 5  ;;  %v2535_v39 = vrot.slane %v2533_v53, 4  ;;  %v2129_v26 = vpack.c.b16 %v2128_v45, %v2127_v37 }
 0x227   : > { %v2988_v12 = vmax.f32 %v2956_v4, 0.0  ;;  %v2433_v3 = vadd.f32 %v2368_v49, %v2235_v20  ;;  %v2588_v46 = vpop.f32.mrf.mxu3  ;;  %v2742_v49 = vrot.slane %v4588_v5, 5 }
 0x228   : > { %v2172_v56 = vpop.f32.mrf.mxu1  ;;  %v2536_v52 = vor.u32 %v2535_v39, %v2531_v40 }
 0x229   : > { %v3424_v58 = vpack.c.bf16 %v2988_v12, %v2987_v34  ;;  %v2794_v38 = vpop.f32.mrf.mxu0  ;;  %v2653_v14 = vadd.f32 %v2588_v46, %v2433_v3  ;;  %v2236_v11 = vadd.f32 %v2172_v56, %v4339_v27  ;;  %v2527_v27 = vrot.slane %v2526_v42, 4 }
 0x22a   : > { %v2541_v12 = vrot.slane %v2539_v33, 5  ;;  %v3362_v3 = vrot.slane %v4585_v32, 9  ;;  %v2744_v31 = vrot.slane %v2742_v49, 4 }
 0x22b   : > { %3484 = vst [vmem:[%s4527_s16 + $0x20] sm:$0xff] %v3424_v58   ;;  %v2857_v35 = vadd.f32 %v2792_v2, %v2653_v14  ;;  %v2537_v2 = vrot.slane %v2536_v52, 4  ;;  %v2532_v53 = vsel %vm3687_vm6, %v2527_v27, %v2531_v40 }
 0x22c   : > { %v2545_v45 = vunpack.c.l.b16 %v2532_v53 }
 0x22d   : > { %v2957_v7 = vadd.f32 %v4510_v55, %v2857_v35  ;;  %v2542_v32 = vsel %vm3687_vm6, %v2537_v2, %v2541_v12 }
 0x22e   : > { %v2370_v9 = vpop.f32.mrf.mxu2  ;;  %v2546_v17 = vunpack.c.l.b16 %v2542_v32 }
 0x22f   : > { %v2434_v21 = vadd.f32 %v2370_v9, %v2236_v11  ;;  %v2590_v57 = vpop.f32.mrf.mxu3  ;;  %v2989_v13 = vmax.f32 %v2957_v7, 0.0 }
 0x230   : > { %v2175_v29 = vpop.f32.mrf.mxu1 }
 0x231   : > { %v2654_v4 = vadd.f32 %v2590_v57, %v2434_v21  ;;  %v2797_v20 = vpop.f32.mrf.mxu0  ;;  %v2237_v46 = vadd.f32 %v2175_v29, %v4359_v19  ;;  %v2743_v19 = vsel %vm3696_vm7, %v3362_v3, %v2742_v49  ;;  %v2547_v57 = vpack.c.b16 %v2546_v17, %v2545_v45 }
 0x232   : > { %v2749_v50 = vunpack.c.l.b16 %v2743_v19 }
 0x233   : > { %v2858_v34 = vadd.f32 %v2794_v38, %v2654_v4  ;;  %3322 = vmatmul.msk.bf16.gmra.mxu1 %vm371_vm1, %v4362_v63  ;;  %3343 = vmatmul.msk.bf16.gmra.mxu2 %vm371_vm1, %v4365_v15  ;;  %v2745_v63 = vrot.slane %v225_v16, 5 }
 0x234   : > { %3360 = vmatmul.msk.bf16.gmra.mxu3 %vm371_vm1, %v4367_v24  ;;  %3378 = vmatmul.msk.bf16.gmra.mxu0 %vm371_vm1, %v2129_v26 }
 0x235   : > { %v2958_v5 = vadd.f32 %v4510_v55, %v2858_v34  ;;  %v2746_v14 = vsel %vm3696_vm7, %v2744_v31, %v2745_v63 }
 0x236   : > { %v2373_v56 = vpop.f32.mrf.mxu2  ;;  %v2750_v39 = vunpack.c.l.b16 %v2746_v14 }
 0x237   : > { %v2990_v15 = vmax.f32 %v2958_v5, 0.0  ;;  %v2435_v36 = vadd.f32 %v2373_v56, %v2237_v46  ;;  %v2593_v10 = vpop.f32.mrf.mxu3 }
 0x238   : > { %v2177_v24 = vpop.f32.mrf.mxu1  ;;  %v2751_v29 = vpack.c.b16 %v2750_v39, %v2749_v50 }
 0x239   : > { %v3429_v58 = vpack.c.bf16 %v2990_v15, %v2989_v13  ;;  %v2799_v38 = vpop.f32.mrf.mxu0  ;;  %v2655_v37 = vadd.f32 %v2593_v10, %v2435_v36  ;;  %v2238_v40 = vadd.f32 %v2177_v24, %v4373_v61 }
 0x23b   : > { %3485 = vst [vmem:[%s4527_s16 + $0x28] sm:$0xff] %v3429_v58   ;;  %v2859_v16 = vadd.f32 %v2797_v20, %v2655_v37 }
 0x23d   : > { %v2959_v6 = vadd.f32 %v4510_v55, %v2859_v16 }
 0x23e   : > { %v2375_v11 = vpop.f32.mrf.mxu2 }
 0x23f   : > { %v2436_v9 = vadd.f32 %v2375_v11, %v2238_v40  ;;  %v2595_v35 = vpop.f32.mrf.mxu3  ;;  %v2991_v49 = vmax.f32 %v2959_v6, 0.0 }
 0x240   : > { %v2180_v21 = vpop.f32.mrf.mxu1 }
 0x241   : > { %v2656_v42 = vadd.f32 %v2595_v35, %v2436_v9  ;;  %v2802_v52 = vpop.f32.mrf.mxu0  ;;  %v2239_v4 = vadd.f32 %v2180_v21, %v4380_v47 }
 0x243   : > { %v2860_v33 = vadd.f32 %v2799_v38, %v2656_v42  ;;  %3323 = vmatmul.msk.bf16.gmra.mxu1 %vm371_vm1, %v2129_v26  ;;  %3344 = vmatmul.msk.bf16.gmra.mxu2 %vm371_vm1, %v3400_v1 }
 0x244   : > { %3361 = vmatmul.msk.bf16.gmra.mxu3 %vm371_vm1, %v2547_v57  ;;  %3379 = vmatmul.msk.bf16.gmra.mxu0 %vm371_vm1, %v2751_v29 }
 0x245   : > { %v2960_v61 = vadd.f32 %v4510_v55, %v2860_v33 }
 0x246   : > { %v2378_v20 = vpop.f32.mrf.mxu2 }
 0x247   : > { %v2992_v7 = vmax.f32 %v2960_v61, 0.0  ;;  %v2437_v34 = vadd.f32 %v2378_v20, %v2239_v4  ;;  %v2598_v27 = vpop.f32.mrf.mxu3 }
 0x248   : > { %v2182_v2 = vpop.f32.mrf.mxu1 }
 0x249   : > { %v3434_v12 = vpack.c.bf16 %v2992_v7, %v2991_v49  ;;  %v2804_v3 = vpop.f32.mrf.mxu0  ;;  %v2657_v26 = vadd.f32 %v2598_v27, %v2437_v34  ;;  %v2240_v5 = vadd.f32 %v2182_v2, %v4387_v60 }
 0x24b   : > { %3486 = vst [vmem:[%s4527_s16 + $0x30] sm:$0xff] %v3434_v12   ;;  %v2861_v31 = vadd.f32 %v2802_v52, %v2657_v26 }
 0x24d   : > { %v2961_v36 = vadd.f32 %v4510_v55, %v2861_v31 }
 0x24e   : > { %v2380_v46 = vpop.f32.mrf.mxu2 }
 0x24f   : > { %v2438_v63 = vadd.f32 %v2380_v46, %v2240_v5  ;;  %v2600_v56 = vpop.f32.mrf.mxu3  ;;  %v2993_v38 = vmax.f32 %v2961_v36, 0.0 }
 0x250   : > { %v2185_v13 = vpop.f32.mrf.mxu1 }
 0x251   : > { %v2658_v15 = vadd.f32 %v2600_v56, %v2438_v63  ;;  %v2807_v47 = vpop.f32.mrf.mxu0  ;;  %v2241_v53 = vadd.f32 %v2185_v13, %v4394_v41 }
 0x253   : > { %v2862_v10 = vadd.f32 %v2804_v3, %v2658_v15 }
 0x255   : > { %v2962_v24 = vadd.f32 %v4510_v55, %v2862_v10 }
 0x256   : > { %v2383_v58 = vpop.f32.mrf.mxu2 }
 0x257   : > { %v2994_v32 = vmax.f32 %v2962_v24, 0.0  ;;  %v2439_v19 = vadd.f32 %v2383_v58, %v2241_v53  ;;  %v2603_v60 = vpop.f32.mrf.mxu3 }
 0x258   : > { %v2187_v14 = vpop.f32.mrf.mxu1 }
 0x259   : > { %v3439_v37 = vpack.c.bf16 %v2994_v32, %v2993_v38  ;;  %v2809_v45 = vpop.f32.mrf.mxu0  ;;  %v2659_v17 = vadd.f32 %v2603_v60, %v2439_v19  ;;  %v2242_v50 = vadd.f32 %v2187_v14, %v4401_v30 }
 0x25b   : > { %3487 = vst [vmem:[%s4527_s16 + $0x38] sm:$0xff] %v3439_v37   ;;  %v2863_v40 = vadd.f32 %v2807_v47, %v2659_v17 }
 0x25d   : > { %v2963_v1 = vadd.f32 %v4510_v55, %v2863_v40 }
 0x25e   : > { %v2385_v39 = vpop.f32.mrf.mxu2 }
 0x25f   : > { %v2440_v11 = vadd.f32 %v2385_v39, %v2242_v50  ;;  %v2605_v16 = vpop.f32.mrf.mxu3  ;;  %v2995_v52 = vmax.f32 %v2963_v1, 0.0 }
 0x260   : > { %v2190_v9 = vpop.f32.mrf.mxu1 }
 0x261   : > { %v2660_v35 = vadd.f32 %v2605_v16, %v2440_v11  ;;  %v2812_v41 = vpop.f32.mrf.mxu0  ;;  %v2243_v29 = vadd.f32 %v2190_v9, %v4408_v18 }
 0x263   : > { %v2864_v21 = vadd.f32 %v2809_v45, %v2660_v35 }
 0x265   : > { %v2964_v57 = vadd.f32 %v4510_v55, %v2864_v21 }
 0x266   : > { %v2388_v42 = vpop.f32.mrf.mxu2 }
 0x267   : > { %v2996_v6 = vmax.f32 %v2964_v57, 0.0  ;;  %v2441_v33 = vadd.f32 %v2388_v42, %v2243_v29  ;;  %v2608_v30 = vpop.f32.mrf.mxu3 }
 0x268   : > { %v2192_v61 = vpop.f32.mrf.mxu1 }
 0x269   : > { %v3444_v4 = vpack.c.bf16 %v2996_v6, %v2995_v52  ;;  %v2814_v20 = vpop.f32.mrf.mxu0  ;;  %v2661_v49 = vadd.f32 %v2608_v30, %v2441_v33  ;;  %v2244_v7 = vadd.f32 %v2192_v61, %v4415_v8 }
 0x26b   : > { %3488 = vst [vmem:[%s4527_s16 + $0x40] sm:$0xff] %v3444_v4   ;;  %v2865_v27 = vadd.f32 %v2812_v41, %v2661_v49 }
 0x26d   : > { %v2965_v5 = vadd.f32 %v4510_v55, %v2865_v27 }
 0x26e   : > { %v2390_v34 = vpop.f32.mrf.mxu2 }
 0x26f   : > { %v2442_v2 = vadd.f32 %v2390_v34, %v2244_v7  ;;  %v2610_v12 = vpop.f32.mrf.mxu3  ;;  %v2997_v13 = vmax.f32 %v2965_v5, 0.0 }
 0x270   : > { %v2195_v3 = vpop.f32.mrf.mxu1 }
 0x271   : > { %v2662_v26 = vadd.f32 %v2610_v12, %v2442_v2  ;;  %v2817_v18 = vpop.f32.mrf.mxu0  ;;  %v2245_v63 = vadd.f32 %v2195_v3, %v4422_v25 }
 0x273   : > { %v2866_v46 = vadd.f32 %v2814_v20, %v2662_v26 }
 0x275   : > { %v2966_v31 = vadd.f32 %v4510_v55, %v2866_v46 }
 0x276   : > { %v2393_v56 = vpop.f32.mrf.mxu2 }
 0x277   : > { %v2998_v15 = vmax.f32 %v2966_v31, 0.0  ;;  %v2443_v47 = vadd.f32 %v2393_v56, %v2245_v63  ;;  %v2613_v8 = vpop.f32.mrf.mxu3 }
 0x278   : > { %v2197_v36 = vpop.f32.mrf.mxu1 }
 0x279   : > { %v3449_v10 = vpack.c.bf16 %v2998_v15, %v2997_v13  ;;  %v2819_v24 = vpop.f32.mrf.mxu0  ;;  %v2663_v53 = vadd.f32 %v2613_v8, %v2443_v47  ;;  %v2246_v58 = vadd.f32 %v2197_v36, %v4429_v48 }
 0x27b   : > { %3489 = vst [vmem:[%s4527_s16 + $0x48] sm:$0xff] %v3449_v10   ;;  %v2867_v32 = vadd.f32 %v2817_v18, %v2663_v53 }
 0x27d   : > { %v2967_v45 = vadd.f32 %v4510_v55, %v2867_v32 }
 0x27e   : > { %v2395_v38 = vpop.f32.mrf.mxu2 }
 0x27f   : > { %v2444_v19 = vadd.f32 %v2395_v38, %v2246_v58  ;;  %v2615_v60 = vpop.f32.mrf.mxu3  ;;  %v2999_v11 = vmax.f32 %v2967_v45, 0.0 }
 0x280   : > { %v2200_v14 = vpop.f32.mrf.mxu1 }
 0x281   : > { %v2664_v37 = vadd.f32 %v2615_v60, %v2444_v19  ;;  %v2822_v25 = vpop.f32.mrf.mxu0  ;;  %v2247_v39 = vadd.f32 %v2200_v14, %v4436_v51 }
 0x283   : > { %v2868_v17 = vadd.f32 %v2819_v24, %v2664_v37 }
 0x285   : > { %v2968_v50 = vadd.f32 %v4510_v55, %v2868_v17 }
 0x286   : > { %v2398_v40 = vpop.f32.mrf.mxu2 }
 0x287   : > { %v3000_v16 = vmax.f32 %v2968_v50, 0.0  ;;  %v2445_v9 = vadd.f32 %v2398_v40, %v2247_v39  ;;  %v2618_v48 = vpop.f32.mrf.mxu3 }
 0x288   : > { %v2202_v35 = vpop.f32.mrf.mxu1 }
 0x289   : > { %v3454_v41 = vpack.c.bf16 %v3000_v16, %v2999_v11  ;;  %v2824_v1 = vpop.f32.mrf.mxu0  ;;  %v2665_v21 = vadd.f32 %v2618_v48, %v2445_v9  ;;  %v2248_v57 = vadd.f32 %v2202_v35, %v4443_v28 }
 0x28b   : > { %3490 = vst [vmem:[%s4527_s16 + $0x50] sm:$0xff] %v3454_v41   ;;  %v2869_v42 = vadd.f32 %v2822_v25, %v2665_v21 }
 0x28d   : > { %v2969_v61 = vadd.f32 %v4510_v55, %v2869_v42 }
 0x28e   : > { %v2400_v29 = vpop.f32.mrf.mxu2 }
 0x28f   : > { %v2446_v52 = vadd.f32 %v2400_v29, %v2248_v57  ;;  %v2620_v6 = vpop.f32.mrf.mxu3  ;;  %v3001_v34 = vmax.f32 %v2969_v61, 0.0 }
 0x290   : > { %v2205_v33 = vpop.f32.mrf.mxu1 }
 0x291   : > { %v2666_v30 = vadd.f32 %v2620_v6, %v2446_v52  ;;  %v2827_v51 = vpop.f32.mrf.mxu0  ;;  %v2249_v49 = vadd.f32 %v2205_v33, %v4450_v43 }
 0x293   : > { %v2870_v4 = vadd.f32 %v2824_v1, %v2666_v30 }
 0x295   : > { %v2970_v20 = vadd.f32 %v4510_v55, %v2870_v4 }
 0x296   : > { %v2403_v7 = vpop.f32.mrf.mxu2 }
 0x297   : > { %v3002_v27 = vmax.f32 %v2970_v20, 0.0  ;;  %v2447_v2 = vadd.f32 %v2403_v7, %v2249_v49  ;;  %v2623_v28 = vpop.f32.mrf.mxu3 }
 0x298   : > { %v2207_v12 = vpop.f32.mrf.mxu1 }
 0x299   : > { %v3459_v3 = vpack.c.bf16 %v3002_v27, %v3001_v34  ;;  %v2829_v26 = vpop.f32.mrf.mxu0  ;;  %v2667_v18 = vadd.f32 %v2623_v28, %v2447_v2  ;;  %v2250_v5 = vadd.f32 %v2207_v12, %v4457_v22 }
 0x29b   : > { %3491 = vst [vmem:[%s4527_s16 + $0x58] sm:$0xff] %v3459_v3   ;;  %v2871_v31 = vadd.f32 %v2827_v51, %v2667_v18 }
 0x29d   : > { %v2971_v47 = vadd.f32 %v4510_v55, %v2871_v31 }
 0x29e   : > { %v2405_v46 = vpop.f32.mrf.mxu2 }
 0x29f   : > { %v2448_v63 = vadd.f32 %v2405_v46, %v2250_v5  ;;  %v2625_v56 = vpop.f32.mrf.mxu3  ;;  %v3003_v53 = vmax.f32 %v2971_v47, 0.0 }
 0x2a0   : > { %v2210_v13 = vpop.f32.mrf.mxu1 }
 0x2a1   : > { %v2668_v15 = vadd.f32 %v2625_v56, %v2448_v63  ;;  %v2832_v43 = vpop.f32.mrf.mxu0  ;;  %v2251_v10 = vadd.f32 %v2210_v13, %v4464_v54 }
 0x2a3   : > { %v2872_v8 = vadd.f32 %v2829_v26, %v2668_v15 }
 0x2a5   : > { %v2972_v36 = vadd.f32 %v4510_v55, %v2872_v8 }
 0x2a6   : > { %v2408_v24 = vpop.f32.mrf.mxu2 }
 0x2a7   : > { %v3004_v58 = vmax.f32 %v2972_v36, 0.0  ;;  %v2449_v38 = vadd.f32 %v2408_v24, %v2251_v10  ;;  %v2628_v22 = vpop.f32.mrf.mxu3 }
 0x2a8   : > { %v2212_v32 = vpop.f32.mrf.mxu1 }
 0x2a9   : > { %v3464_v19 = vpack.c.bf16 %v3004_v58, %v3003_v53  ;;  %v2834_v60 = vpop.f32.mrf.mxu0  ;;  %v2669_v14 = vadd.f32 %v2628_v22, %v2449_v38  ;;  %v2252_v37 = vadd.f32 %v2212_v32, %v4471_v23 }
 0x2ab   : > { %3492 = vst [vmem:[%s4527_s16 + $0x60] sm:$0xff] %v3464_v19   ;;  %v2873_v45 = vadd.f32 %v2832_v43, %v2669_v14 }
 0x2ad   : > { %v2973_v54 = vadd.f32 %v4510_v55, %v2873_v45 }
 0x2ae   : > { %v2410_v25 = vpop.f32.mrf.mxu2 }
 0x2af   : > { %v2450_v17 = vadd.f32 %v2410_v25, %v2252_v37  ;;  %v2630_v50 = vpop.f32.mrf.mxu3  ;;  %v3005_v41 = vmax.f32 %v2973_v54, 0.0 }
 0x2b0   : > { %v2215_v39 = vpop.f32.mrf.mxu1 }
 0x2b1   : > { %v2670_v40 = vadd.f32 %v2630_v50, %v2450_v17  ;;  %v2837_v16 = vpop.f32.mrf.mxu0  ;;  %v2253_v48 = vadd.f32 %v2215_v39, %v4478_v0 }
 0x2b3   : > { %v2874_v11 = vadd.f32 %v2834_v60, %v2670_v40 }
 0x2b5   : > { %v2974_v9 = vadd.f32 %v4510_v55, %v2874_v11 }
 0x2b6   : > { %v2413_v35 = vpop.f32.mrf.mxu2 }
 0x2b7   : > { %v3006_v1 = vmax.f32 %v2974_v9, 0.0  ;;  %v2451_v21 = vadd.f32 %v2413_v35, %v2253_v48  ;;  %v2633_v23 = vpop.f32.mrf.mxu3 }
 0x2b8   : > { %v2217_v57 = vpop.f32.mrf.mxu1 }
 0x2b9   : > { %v3469_v29 = vpack.c.bf16 %v3006_v1, %v3005_v41  ;;  %v2671_v42 = vadd.f32 %v2633_v23, %v2451_v21  ;;  %v2254_v52 = vadd.f32 %v2217_v57, %v4485_v62  ;;  %v2839_v6 = vpop.f32.mrf.mxu0 }
 0x2bb   : > { %3493 = vst [vmem:[%s4527_s16 + $0x68] sm:$0xff] %v3469_v29   ;;  %v2875_v30 = vadd.f32 %v2837_v16, %v2671_v42 }
 0x2bd   : > { %v2975_v0 = vadd.f32 %v4510_v55, %v2875_v30 }
 0x2be   : > { %v2415_v33 = vpop.f32.mrf.mxu2 }
 0x2bf   : > { %v2452_v51 = vadd.f32 %v2415_v33, %v2254_v52  ;;  %v2635_v61 = vpop.f32.mrf.mxu3  ;;  %v3007_v2 = vmax.f32 %v2975_v0, 0.0 }
 0x2c0   : > { %v2220_v4 = vpop.f32.mrf.mxu1 }
 0x2c1   : > { %v2672_v20 = vadd.f32 %v2635_v61, %v2452_v51  ;;  %v2255_v34 = vadd.f32 %v2220_v4, %v4492_v59  ;;  %v2842_v3 = vpop.f32.mrf.mxu0 }
 0x2c3   : > { %v2876_v49 = vadd.f32 %v2839_v6, %v2672_v20 }
 0x2c5   : > { %v2976_v7 = vadd.f32 %v4510_v55, %v2876_v49 }
 0x2c6   : > { %v2418_v27 = vpop.f32.mrf.mxu2 }
 0x2c7   : > { %v3008_v28 = vmax.f32 %v2976_v7, 0.0  ;;  %v2453_v12 = vadd.f32 %v2418_v27, %v2255_v34  ;;  %v2638_v62 = vpop.f32.mrf.mxu3 }
 0x2c8   : > { %v2222_v18 = vpop.f32.mrf.mxu1 }
 0x2c9   : > { %v3474_v26 = vpack.c.bf16 %v3008_v28, %v3007_v2  ;;  %v2673_v5 = vadd.f32 %v2638_v62, %v2453_v12  ;;  %v2256_v46 = vadd.f32 %v2222_v18, %v4499_v44  ;;  %v2844_v43 = vpop.f32.mrf.mxu0 }
 0x2cb   : > { %3494 = vst [vmem:[%s4527_s16 + $0x70] sm:$0xff] %v3474_v26   ;;  %v2877_v63 = vadd.f32 %v2842_v3, %v2673_v5 }
 0x2cd   : > { %v2977_v59 = vadd.f32 %v4510_v55, %v2877_v63 }
 0x2ce   : > { %v2420_v31 = vpop.f32.mrf.mxu2 }
 0x2cf   : > { %v2454_v56 = vadd.f32 %v2420_v31, %v2256_v46  ;;  %v2640_v13 = vpop.f32.mrf.mxu3  ;;  %v3009_v36 = vmax.f32 %v2977_v59, 0.0 }
 0x2d1   : > { %v2674_v15 = vadd.f32 %v2640_v13, %v2454_v56 }
 0x2d3   : > { %v2878_v47 = vadd.f32 %v2844_v43, %v2674_v15 }
 0x2d5   : > { %v2978_v8 = vadd.f32 %v4510_v55, %v2878_v47 }
 0x2d7   : > { %v3010_v10 = vmax.f32 %v2978_v8, 0.0 }
 0x2d9   : > { %v3479_v24 = vpack.c.bf16 %v3010_v10, %v3009_v36 }
 0x2db   : > { %3495 = vst [vmem:[%s4527_s16 + $0x78] sm:$0xff] %v3479_v24  }
 0x2dc PF: > { %s13_s12 = sadd.s32 1, %s3529_s12  }
 0x2dd   : > { %p10_p4 = scmp.ge.s32.totalorder %s13_s12, 4  }
 0x2df   :  { %12 = sbr.rel (!%p10_p4) target bundleno = 1 (0x1), region = 70 }

// kernel: unet_down_block.3
= control target key start
LH: loop header
LB: loop body
LE: loop exit
PB: predicated region body
PF: predicated region fallthrough
CT: control target
= control target key end

     0   :  { %s4210_s12 = smov 0   ;;  %s5406_s0 = inlined_call_operand.vmem [shape: bf16[2,18,18,128], index: 0, kind: input, shape index: {}]   ;;  %s5407_s1 = inlined_call_operand.vmem [shape: bf16[9,128,128], index: 1, kind: input, shape index: {}]   ;;  %s5408_s2 = inlined_call_operand.vmem [shape: f32[1,128], index: 2, kind: input, shape index: {}]   ;;  %s5409_s3 = inlined_call_operand.vmem [shape: f32[2,16,16,128], index: 3, kind: output, shape index: {}]  }
   0x1 LB: > { %s3527_s13 = sadd.s32 4294967295, %s4188_s12   ;;  %p3531_p0 = scmp.ge.s32.totalorder %s4188_s12, 1  ;;  %s4188_s12 = sphi %s4210_s12, %s13_s12  }
   0x2   : > { %p137_p1 = scmp.lt.s32.totalorder %s4188_s12, 3 }
   0x4   : > { %p138_p2 = pnand %p3531_p0, %p137_p1 }
   0x6   : > { %141 = sbr.rel (%p138_p2) target bundleno = 754 (0x2f2), region = 32 }
   0xb   : > { %v4069_v0 = vld [vmem:[%s5407_s1 + $0x38] sm:$0xff]  ;;  %v4068_v1 = vld [vmem:[%s5407_s1 + $0x30] sm:$0xff]  ;;  %v4067_v2 = vld [vmem:[%s5407_s1 + $0x28] sm:$0xff]  ;;  %p161_p3 = scmp.lt.s32.totalorder %s3527_s13, 1  ;;  %vm634_vm0 = vsmask.f32 3328 }
   0xc   : > { %4134 = vmatpush.bf16.msra.mxu1 %v4069_v0  ;;  %4135 = vmatpush.bf16.msra.mxu2 %v4069_v0  ;;  %v4066_v3 = vld [vmem:[%s5407_s1 + $0x20] sm:$0xff]  ;;  %v4065_v4 = vld [vmem:[%s5407_s1 + $0x18] sm:$0xff]  ;;  %v4064_v5 = vld [vmem:[%s5407_s1 + $0x10] sm:$0xff]  ;;  %vm635_vm1 = vsmask.f32 7440  ;;  %vm1351_vm2 = vcmask 1042432  }
   0xd   : > { %4136 = vmatpush.bf16.msra.mxu3 %v4069_v0  ;;  %449 = vmatpush.bf16.msra.mxu0 %v4069_v0  ;;  %s5497_s13 = smov (!%p161_p3, %s3527_s13), 1  ;;  %v4063_v6 = vld [vmem:[%s5407_s1 + $0x8] sm:$0xff]  ;;  %v4062_v7 = vld [vmem:[%s5407_s1] sm:$0xff]  ;;  %v4085_v8 = vld [vmem:[%s5407_s1 + $0xb8] sm:$0xff]  ;;  %vm1352_vm3 = vcmask 1046532  }
   0xe   : > { %s4158_s28 = smul.u32 216, %s5497_s13  ;;  %v4093_v9 = vld [vmem:[%s5407_s1 + $0xf8] sm:$0xff]  ;;  %v4084_v16 = vld [vmem:[%s5407_s1 + $0xb0] sm:$0xff]  ;;  %v4083_v20 = vld [vmem:[%s5407_s1 + $0xa8] sm:$0xff]  ;;  %s4043_s19 = sshll.u32 %s5497_s13, 8 }
   0xf   : > { %v4077_v14 = vld [vmem:[%s5407_s1 + $0x78] sm:$0xff]  ;;  %v4092_v17 = vld [vmem:[%s5407_s1 + $0xf0] sm:$0xff]  ;;  %v4091_v21 = vld [vmem:[%s5407_s1 + $0xe8] sm:$0xff]  ;;  %s5256_s22 = scalar_lea.vmem %s5409_s3, %s4043_s19 }
  0x10   : > { %4137 = vmatpush.bf16.msra.mxu1 %v4068_v1  ;;  %4138 = vmatpush.bf16.msra.mxu2 %v4068_v1  ;;  %s4252_s6 = scalar_lea.vmem %s5406_s0, %s4158_s28  ;;  %v4101_v15 = vld [vmem:[%s5407_s1 + $0x138] sm:$0xff]  ;;  %v4076_v18 = vld [vmem:[%s5407_s1 + $0x70] sm:$0xff]  ;;  %v4075_v22 = vld [vmem:[%s5407_s1 + $0x68] sm:$0xff] }
  0x11   : > { %4139 = vmatpush.bf16.msra.mxu3 %v4068_v1  ;;  %450 = vmatpush.bf16.msra.mxu0 %v4068_v1  ;;  %v4261_v10 = vld [vmem:[%s4252_s6 + $0x30] sm:$0xff]  ;;  %v4264_v11 = vld [vmem:[%s4252_s6 + $0x60] sm:$0xff]  ;;  %v4099_v23 = vld [vmem:[%s5407_s1 + $0x128] sm:$0xff] }
  0x12   : > { %v4056_v12 = vld [vmem:[%s4252_s6 + $0x90] sm:$0xff]  ;;  %v4044_v13 = vld [vmem:[%s4252_s6] sm:$0xff]  ;;  %v4081_v28 = vld [vmem:[%s5407_s1 + $0x98] sm:$0xff] }
  0x13   : > { %v4100_v19 = vld [vmem:[%s5407_s1 + $0x130] sm:$0xff]  ;;  %v4082_v24 = vld [vmem:[%s5407_s1 + $0xa0] sm:$0xff]  ;;  %v4089_v29 = vld [vmem:[%s5407_s1 + $0xd8] sm:$0xff] }
  0x14   : > { %4140 = vmatpush.bf16.msra.mxu1 %v4067_v2  ;;  %4141 = vmatpush.bf16.msra.mxu2 %v4067_v2  ;;  %v4090_v25 = vld [vmem:[%s5407_s1 + $0xe0] sm:$0xff]  ;;  %v4322_v31 = vld [vmem:[%s4252_s6 + $0x6c] sm:$0xff]  ;;  %v4073_v34 = vld [vmem:[%s5407_s1 + $0x58] sm:$0xff] }
  0x15   : > { %4142 = vmatpush.bf16.msra.mxu3 %v4067_v2  ;;  %451 = vmatpush.bf16.msra.mxu0 %v4067_v2  ;;  %v4074_v26 = vld [vmem:[%s5407_s1 + $0x60] sm:$0xff]  ;;  %v4326_v33 = vld [vmem:[%s4252_s6 + $0xc] sm:$0xff]  ;;  %v4097_v35 = vld [vmem:[%s5407_s1 + $0x118] sm:$0xff] }
  0x16   : > { %v4098_v27 = vld [vmem:[%s5407_s1 + $0x120] sm:$0xff]  ;;  %v4080_v36 = vld [vmem:[%s5407_s1 + $0x90] sm:$0xff]  ;;  %v4079_v40 = vld [vmem:[%s5407_s1 + $0x88] sm:$0xff] }
  0x17   : > { %v4319_v30 = vld [vmem:[%s4252_s6 + $0x3c] sm:$0xff]  ;;  %v4088_v37 = vld [vmem:[%s5407_s1 + $0xd0] sm:$0xff]  ;;  %v4087_v41 = vld [vmem:[%s5407_s1 + $0xc8] sm:$0xff] }
  0x18   : > { %4143 = vmatpush.bf16.msra.mxu1 %v4066_v3  ;;  %4144 = vmatpush.bf16.msra.mxu2 %v4066_v3  ;;  %v4057_v32 = vld [vmem:[%s4252_s6 + $0x9c] sm:$0xff]  ;;  %v4072_v38 = vld [vmem:[%s5407_s1 + $0x50] sm:$0xff]  ;;  %v4071_v42 = vld [vmem:[%s5407_s1 + $0x48] sm:$0xff] }
  0x19   : > { %4145 = vmatpush.bf16.msra.mxu3 %v4066_v3  ;;  %452 = vmatpush.bf16.msra.mxu0 %v4066_v3  ;;  %v4096_v39 = vld [vmem:[%s5407_s1 + $0x110] sm:$0xff]  ;;  %v4095_v43 = vld [vmem:[%s5407_s1 + $0x108] sm:$0xff]  ;;  %v4078_v44 = vld [vmem:[%s5407_s1 + $0x80] sm:$0xff] }
  0x1a   : > { %v4086_v45 = vld [vmem:[%s5407_s1 + $0xc0] sm:$0xff]  ;;  %v4374_v48 = vld [vmem:[%s4252_s6 + $0x48] sm:$0xff]  ;;  %v4054_v49 = vld [vmem:[%s4252_s6 + $0x78] sm:$0xff] }
  0x1b   : > { %v4070_v46 = vld [vmem:[%s5407_s1 + $0x40] sm:$0xff]  ;;  %v4058_v50 = vld [vmem:[%s4252_s6 + $0xa8] sm:$0xff]  ;;  %v4379_v51 = vld [vmem:[%s4252_s6 + $0x18] sm:$0xff] }
  0x1c   : > { %4146 = vmatpush.bf16.msra.mxu1 %v4065_v4  ;;  %4147 = vmatpush.bf16.msra.mxu2 %v4065_v4  ;;  %v4094_v47 = vld [vmem:[%s5407_s1 + $0x100] sm:$0xff]  ;;  %v4117_v54 = vld [vmem:[%s5407_s1 + $0x1b8] sm:$0xff]  ;;  %v4406_v62 = vld [vmem:[%s4252_s6 + $0xc] sm:$0xf] }
  0x1d   : > { %4148 = vmatpush.bf16.msra.mxu3 %v4065_v4  ;;  %453 = vmatpush.bf16.msra.mxu0 %v4065_v4  ;;  %v4382_v52 = vld [vmem:[%s4252_s6] sm:$0xf]  ;;  %v4386_v53 = vld [vmem:[%s4252_s6 + $0x4] sm:$0xf]  ;;  %v4125_v55 = vld [vmem:[%s5407_s1 + $0x1f8] sm:$0xff]  ;;  %v662_v1 = vshrl.u32 %v4406_v62, 16 }
  0x1e   : > { %v4109_v56 = vld [vmem:[%s5407_s1 + $0x178] sm:$0xff]  ;;  %v638_v57 = vshrl.u32 %v4382_v52, 16  ;;  %v641_v58 = vshll.u32 %v4382_v52, 16  ;;  %v647_v60 = vshll.u32 %v4386_v53, 16  ;;  %v651_v61 = vshrl.u32 %v4386_v53, 16  ;;  %vm4430_vm4 = vmor %vm634_vm0, %vm635_vm1 }
  0x1f   : > { %v4133_v59 = vld [vmem:[%s5407_s1 + $0x238] sm:$0xff]  ;;  %v4409_v63 = vld [vmem:[%s4252_s6 + $0x10] sm:$0xf]  ;;  %v173_v0 = vld [vmem:[%s4252_s6 + $0x8] sm:$0x1]  ;;  %v665_v2 = vshll.u32 %v4406_v62, 16 }
  0x20   : > { %4149 = vmatpush.bf16.msra.mxu1 %v4064_v5  ;;  %4150 = vmatpush.bf16.msra.mxu2 %v4064_v5  ;;  %v671_v3 = vshll.u32 %v4409_v63, 16  ;;  %v675_v4 = vshrl.u32 %v4409_v63, 16  ;;  %vm4435_vm5 = vmor %vm1351_vm2, %vm1352_vm3 }
  0x21   : > { %4151 = vmatpush.bf16.msra.mxu3 %v4064_v5  ;;  %454 = vmatpush.bf16.msra.mxu0 %v4064_v5  ;;  %v640_v5 = vrot.slane %v638_v57, 4 }
  0x24   : > { %4152 = vmatpush.bf16.msra.mxu1 %v4063_v6  ;;  %4153 = vmatpush.bf16.msra.mxu2 %v4063_v6 }
  0x25   : > { %4154 = vmatpush.bf16.msra.mxu3 %v4063_v6  ;;  %455 = vmatpush.bf16.msra.mxu0 %v4063_v6  ;;  %v643_v6 = vrot.slane %v641_v58, 5 }
  0x28   : > { %4155 = vmatpush.bf16.msra.mxu1 %v4062_v7  ;;  %4156 = vmatpush.bf16.msra.mxu2 %v4062_v7 }
  0x29   : > { %4157 = vmatpush.bf16.msra.mxu3 %v4062_v7  ;;  %456 = vmatpush.bf16.msra.mxu0 %v4062_v7  ;;  %v649_v7 = vrot.slane %v647_v60, 5 }
  0x2b   : > { %477 = vmatmul.bf16.vlgmr.msra.gmra.mxu1 %v4261_v10  ;;  %497 = vmatmul.bf16.vlgmr.msra.gmra.mxu2 %v4264_v11 }
  0x2c   : > { %1595 = vmatpush.bf16.msrb.mxu2 %v4085_v8  ;;  %517 = vmatmul.bf16.vlgmr.msra.gmra.mxu3 %v4056_v12  ;;  %v653_v8 = vrot.slane %v651_v61, 4  ;;  %v664_v12 = vrot.slane %v662_v1, 4 }
  0x2d   : > { %1851 = vmatpush.bf16.msrb.mxu3 %v4093_v9  ;;  %457 = vmatmul.bf16.vlgmr.msra.gmra.mxu0 %v4044_v13  ;;  %v657_v9 = vshll.u32 %v173_v0, 16  ;;  %v667_v13 = vrot.slane %v665_v2, 5 }
  0x2e   : > { %1150 = vmatpush.bf16.msrb.mxu1 %v4077_v14  ;;  %2129 = vmatpush.bf16.msrb.mxu0 %v4101_v15  ;;  %v673_v14 = vrot.slane %v671_v3, 5  ;;  %v677_v15 = vrot.slane %v675_v4, 4  ;;  %v4463_v3 = vld [vmem:[%s4252_s6 + $0x20] sm:$0x1] }
  0x30   : > { %1596 = vmatpush.bf16.msrb.mxu2 %v4084_v16  ;;  %v644_v16 = vor.u32 %v643_v6, %v640_v5  ;;  %v1363_v5 = vrot.slane %v4409_v63, 5  ;;  %v4116_v63 = vld [vmem:[%s5407_s1 + $0x1b0] sm:$0xff] }
  0x31   : > { %1852 = vmatpush.bf16.msrb.mxu3 %v4092_v17  ;;  %v654_v17 = vor.u32 %v653_v8, %v649_v7 }
  0x32   : > { %1151 = vmatpush.bf16.msrb.mxu1 %v4076_v18  ;;  %2130 = vmatpush.bf16.msrb.mxu0 %v4100_v19  ;;  %v1356_v18 = vrot.slane %v4386_v53, 5  ;;  %v4418_v19 = vld [vmem:[%s4252_s6 + $0x14] sm:$0x1] }
  0x34   : > { %1597 = vmatpush.bf16.msrb.mxu2 %v4083_v20  ;;  %v4421_v20 = vld [vmem:[%s4252_s6 + $0x54] sm:$0xff] }
  0x35   : > { %1853 = vmatpush.bf16.msrb.mxu3 %v4091_v21  ;;  %v4055_v21 = vld [vmem:[%s4252_s6 + $0x84] sm:$0xff] }
  0x36   : > { %1152 = vmatpush.bf16.msrb.mxu1 %v4075_v22  ;;  %2131 = vmatpush.bf16.msrb.mxu0 %v4099_v23  ;;  %v4059_v22 = vld [vmem:[%s4252_s6 + $0xb4] sm:$0xff]  ;;  %v4426_v23 = vld [vmem:[%s4252_s6 + $0x24] sm:$0xff] }
  0x38   : > { %1598 = vmatpush.bf16.msrb.mxu2 %v4082_v24  ;;  %v659_v24 = vrot.slane %v657_v9, 5  ;;  %v705_v9 = vshll.u32 %v4463_v3, 16 }
  0x39   : > { %1854 = vmatpush.bf16.msrb.mxu3 %v4090_v25  ;;  %v3679_v25 = vrot.slane %v4382_v52, 9 }
  0x3a   : > { %1153 = vmatpush.bf16.msrb.mxu1 %v4074_v26  ;;  %2132 = vmatpush.bf16.msrb.mxu0 %v4098_v27  ;;  %v668_v26 = vor.u32 %v667_v13, %v664_v12  ;;  %v678_v27 = vor.u32 %v677_v15, %v673_v14  ;;  %v3680_v13 = vrot.slane %v4406_v62, 9  ;;  %v1366_v15 = vrot.slane %v4418_v19, 5  ;;  %v4108_v62 = vld [vmem:[%s5407_s1 + $0x170] sm:$0xff] }
  0x3b   : > { %482 = vmatmul.bf16.gmra.mxu1 %v4319_v30  ;;  %502 = vmatmul.bf16.gmra.mxu2 %v4322_v31 }
  0x3c   : > { %1599 = vmatpush.bf16.msrb.mxu2 %v4081_v28  ;;  %522 = vmatmul.bf16.gmra.mxu3 %v4057_v32  ;;  %v681_v28 = vshll.u32 %v4418_v19, 16  ;;  %v645_v32 = vrot.slane %v644_v16, 4  ;;  %v4483_v19 = vld [vmem:[%s4252_s6 + $0x28] sm:$0xf] }
  0x3d   : > { %1855 = vmatpush.bf16.msrb.mxu3 %v4089_v29  ;;  %462 = vmatmul.bf16.gmra.mxu0 %v4326_v33 }
  0x3e   : > { %1154 = vmatpush.bf16.msrb.mxu1 %v4073_v34  ;;  %2133 = vmatpush.bf16.msrb.mxu0 %v4097_v35  ;;  %v655_v34 = vrot.slane %v654_v17, 4  ;;  %v1358_v35 = vrot.slane %v1356_v18, 4 }
  0x40   : > { %1600 = vmatpush.bf16.msrb.mxu2 %v4080_v36  ;;  %v1359_v36 = vrot.slane %v173_v0, 5 }
  0x41   : > { %1856 = vmatpush.bf16.msrb.mxu3 %v4088_v37 }
  0x42   : > { %1155 = vmatpush.bf16.msrb.mxu1 %v4072_v38  ;;  %2134 = vmatpush.bf16.msrb.mxu0 %v4096_v39  ;;  %v4441_v38 = vld [vmem:[%s4252_s6 + $0x18] sm:$0xf]  ;;  %v4444_v39 = vld [vmem:[%s4252_s6 + $0x1c] sm:$0xf] }
  0x43   : > { %v699_v52 = vshrl.u32 %v4444_v39, 16 }
  0x44   : > { %1601 = vmatpush.bf16.msrb.mxu2 %v4079_v40  ;;  %v669_v40 = vrot.slane %v668_v26, 4 }
  0x45   : > { %1857 = vmatpush.bf16.msrb.mxu3 %v4087_v41  ;;  %v679_v41 = vrot.slane %v678_v27, 4  ;;  %v701_v0 = vrot.slane %v699_v52, 4 }
  0x46   : > { %1156 = vmatpush.bf16.msrb.mxu1 %v4071_v42  ;;  %2135 = vmatpush.bf16.msrb.mxu0 %v4095_v43  ;;  %v683_v42 = vrot.slane %v681_v28, 5  ;;  %v650_v43 = vsel %vm4430_vm4, %v645_v32, %v649_v7  ;;  %v674_v53 = vsel %vm4430_vm4, %v669_v40, %v673_v14  ;;  %v1365_v14 = vrot.slane %v1363_v5, 4 }
  0x47   : > { %v1040_v1 = vunpack.c.l.b16 %v674_v53 }
  0x48   : > { %1602 = vmatpush.bf16.msrb.mxu2 %v4078_v44  ;;  %v660_v44 = vsel %vm4430_vm4, %v655_v34, %v659_v24  ;;  %v1364_v24 = vsel %vm4435_vm5, %v3680_v13, %v1363_v5  ;;  %v719_v34 = vshll.u32 %v4483_v19, 16 }
  0x49   : > { %1858 = vmatpush.bf16.msrb.mxu3 %v4086_v45  ;;  %v1357_v45 = vsel %vm4435_vm5, %v3679_v25, %v1356_v18  ;;  %v707_v18 = vrot.slane %v705_v9, 5  ;;  %v1367_v25 = vsel %vm4435_vm5, %v1365_v14, %v1366_v15 }
  0x4a   : > { %1157 = vmatpush.bf16.msrb.mxu1 %v4070_v46  ;;  %2136 = vmatpush.bf16.msrb.mxu0 %v4094_v47  ;;  %v1360_v46 = vsel %vm4435_vm5, %v1358_v35, %v1359_v36  ;;  %v686_v47 = vshrl.u32 %v4441_v38, 16  ;;  %v1483_v57 = vunpack.c.l.b16 %v1357_v45  ;;  %v723_v35 = vshrl.u32 %v4483_v19, 16 }
  0x4b   : > { %487 = vmatmul.bf16.gmra.mxu1 %v4374_v48  ;;  %507 = vmatmul.bf16.gmra.mxu2 %v4054_v49  ;;  %v689_v49 = vshll.u32 %v4441_v38, 16  ;;  %v1484_v58 = vunpack.c.l.b16 %v1360_v46  ;;  %v1485_v36 = vunpack.c.l.b16 %v1364_v24  ;;  %v1486_v40 = vunpack.c.l.b16 %v1367_v25 }
  0x4c   : > { %527 = vmatmul.bf16.gmra.mxu3 %v4058_v50  ;;  %2647 = vmatpush.bf16.msra.mxu2 %v4117_v54  ;;  %v695_v50 = vshll.u32 %v4444_v39, 16  ;;  %v684_v54 = vsel %vm4430_vm4, %v679_v41, %v683_v42  ;;  %v721_v45 = vrot.slane %v719_v34, 5  ;;  %v725_v46 = vrot.slane %v723_v35, 4 }
  0x4d   : > { %467 = vmatmul.bf16.gmra.mxu0 %v4379_v51  ;;  %2925 = vmatpush.bf16.msra.mxu3 %v4125_v55  ;;  %v1038_v55 = vunpack.c.l.b16 %v650_v43  ;;  %v691_v60 = vrot.slane %v689_v49, 5  ;;  %v1041_v2 = vunpack.c.l.b16 %v684_v54  ;;  %v1515_v6 = vpack.c.b16 %v1484_v58, %v1483_v57 }
  0x4e   : > { %2391 = vmatpush.bf16.msra.mxu1 %v4109_v56  ;;  %3187 = vmatpush.bf16.msra.mxu0 %v4133_v59  ;;  %v1039_v56 = vunpack.c.l.b16 %v660_v44  ;;  %v688_v59 = vrot.slane %v686_v47, 4  ;;  %v697_v61 = vrot.slane %v695_v50, 5  ;;  %v182_v47 = vld [vmem:[%s4252_s6 + $0x2c] sm:$0x1]  ;;  %v4501_v49 = vpack.c.b16 %v1486_v40, %v1485_v36 }
  0x4f   : > { %v1071_v12 = vpack.c.b16 %v1041_v2, %v1040_v1  ;;  %v1370_v50 = vrot.slane %v4444_v39, 5  ;;  %v726_v54 = vor.u32 %v725_v46, %v721_v45  ;;  %v1373_v58 = vrot.slane %v4463_v3, 5 }
  0x50   : > { %v1070_v4 = vpack.c.b16 %v1039_v56, %v1038_v55  ;;  %v692_v7 = vor.u32 %v691_v60, %v688_v59  ;;  %v702_v8 = vor.u32 %v701_v0, %v697_v61  ;;  %2648 = vmatpush.bf16.msra.mxu2 %v4116_v63  ;;  %v729_v55 = vshll.u32 %v182_v47, 16  ;;  %v4515_v0 = vld [vmem:[%s4252_s6 + $0x34] sm:$0xf] }
  0x51   : > { %v3681_v56 = vrot.slane %v4441_v38, 9  ;;  %v1372_v57 = vrot.slane %v1370_v50, 4  ;;  %v727_v39 = vrot.slane %v726_v54, 4  ;;  %v743_v5 = vshll.u32 %v4515_v0, 16 }
  0x52   : > { %v693_v16 = vrot.slane %v692_v7, 4  ;;  %v703_v17 = vrot.slane %v702_v8, 4  ;;  %2392 = vmatpush.bf16.msra.mxu1 %v4108_v62  ;;  %v731_v60 = vrot.slane %v729_v55, 5 }
  0x53   : > { %v1371_v1 = vsel %vm4435_vm5, %v3681_v56, %v1370_v50  ;;  %v1374_v38 = vsel %vm4435_vm5, %v1372_v57, %v1373_v58  ;;  %v745_v15 = vrot.slane %v743_v5, 5  ;;  %v4131_v50 = vld [vmem:[%s5407_s1 + $0x228] sm:$0xff] }
  0x54   : > { %v698_v26 = vsel %vm4430_vm4, %v693_v16, %v697_v61  ;;  %v708_v27 = vsel %vm4430_vm4, %v703_v17, %v707_v18  ;;  %v4512_v61 = vld [vmem:[%s4252_s6 + $0x30] sm:$0xf]  ;;  %v732_v2 = vsel %vm4430_vm4, %v727_v39, %v731_v60  ;;  %v1487_v7 = vunpack.c.l.b16 %v1371_v1  ;;  %v4531_v18 = vld [vmem:[%s4252_s6 + $0x38] sm:$0x1]  ;;  %v4574_v60 = vld [vmem:[%s4252_s6 + $0x44] sm:$0x1] }
  0x55   : > { %v1042_v41 = vunpack.c.l.b16 %v698_v26  ;;  %v1043_v42 = vunpack.c.l.b16 %v708_v27  ;;  %v734_v3 = vshrl.u32 %v4512_v61, 16  ;;  %v1488_v8 = vunpack.c.l.b16 %v1374_v38 }
  0x56   : > { %v1377_v17 = vrot.slane %v4483_v19, 5  ;;  %v753_v24 = vshll.u32 %v4531_v18, 16  ;;  %v1380_v27 = vrot.slane %v182_v47, 5  ;;  %v4542_v19 = vld [vmem:[%s4252_s6 + $0x3c] sm:$0xf]  ;;  %v1384_v1 = vrot.slane %v4515_v0, 5 }
  0x57   : > { %v4504_v52 = vpack.c.b16 %v1043_v42, %v1042_v41  ;;  %v736_v13 = vrot.slane %v734_v3, 4  ;;  %v4533_v63 = vpack.c.b16 %v1488_v8, %v1487_v7  ;;  %v758_v41 = vshrl.u32 %v4542_v19, 16 }
  0x58   : > { %v1379_v26 = vrot.slane %v1377_v17, 4  ;;  %v755_v36 = vrot.slane %v753_v24, 5  ;;  %v761_v42 = vshll.u32 %v4542_v19, 16  ;;  %v777_v3 = vshll.u32 %v4574_v60, 16 }
  0x59   : > { %v760_v55 = vrot.slane %v758_v41, 4  ;;  %v3683_v5 = vrot.slane %v4512_v61, 9  ;;  %v1387_v7 = vrot.slane %v4531_v18, 5 }
  0x5a   : > { %v763_v56 = vrot.slane %v761_v42, 5 }
  0x5b   : > { %492 = vmatmul.bf16.gmra.mxu1 %v4421_v20  ;;  %512 = vmatmul.bf16.gmra.mxu2 %v4055_v21  ;;  %v4124_v21 = vld [vmem:[%s5407_s1 + $0x1f0] sm:$0xff] }
  0x5c   : > { %532 = vmatmul.bf16.gmra.mxu3 %v4059_v22  ;;  %v4480_v22 = vld [vmem:[%s4252_s6 + $0x24] sm:$0xf] }
  0x5d   : > { %472 = vmatmul.bf16.gmra.mxu0 %v4426_v23  ;;  %2926 = vmatpush.bf16.msra.mxu3 %v4124_v21  ;;  %v710_v28 = vshrl.u32 %v4480_v22, 16  ;;  %v713_v32 = vshll.u32 %v4480_v22, 16  ;;  %v3682_v25 = vrot.slane %v4480_v22, 9  ;;  %v4123_v22 = vld [vmem:[%s5407_s1 + $0x1e8] sm:$0xff] }
  0x5f   : > { %v712_v43 = vrot.slane %v710_v28, 4  ;;  %v715_v44 = vrot.slane %v713_v32, 5  ;;  %v4115_v28 = vld [vmem:[%s5407_s1 + $0x1a8] sm:$0xff]  ;;  %v4550_v32 = vld [vmem:[%s4252_s6 + $0x40] sm:$0xf]  ;;  %v1378_v40 = vsel %vm4435_vm5, %v3682_v25, %v1377_v17 }
  0x60   : > { %2649 = vmatpush.bf16.msra.mxu2 %v4115_v28 }
  0x61   : > { %v716_v53 = vor.u32 %v715_v44, %v712_v43  ;;  %2927 = vmatpush.bf16.msra.mxu3 %v4123_v22  ;;  %v767_v43 = vshll.u32 %v4550_v32, 16  ;;  %v771_v44 = vshrl.u32 %v4550_v32, 16 }
  0x63   : > { %v717_v59 = vrot.slane %v716_v53, 4  ;;  %v1489_v53 = vunpack.c.l.b16 %v1378_v40  ;;  %v769_v57 = vrot.slane %v767_v43, 5  ;;  %v773_v58 = vrot.slane %v771_v44, 4 }
  0x64   : > { %v1391_v40 = vrot.slane %v4550_v32, 5  ;;  %v1394_v32 = vrot.slane %v4574_v60, 5 }
  0x6b   : > { %1158 = vmatmul.bf16.vlgmr.msrb.gmra.mxu1 %v1070_v4  ;;  %1603 = vmatmul.bf16.vlgmr.msrb.gmra.mxu2 %v1515_v6  ;;  %v737_v4 = vshll.u32 %v4512_v61, 16  ;;  %v747_v6 = vshrl.u32 %v4515_v0, 16  ;;  %v1385_v61 = vsel %vm4435_vm5, %v3683_v5, %v1384_v1 }
  0x6c   : > { %1859 = vmatmul.bf16.vlgmr.msrb.gmra.mxu3 %v4326_v33  ;;  %v4132_v33 = vld [vmem:[%s5407_s1 + $0x230] sm:$0xff] }
  0x6d   : > { %2137 = vmatmul.bf16.vlgmr.msrb.gmra.mxu0 %v1071_v12  ;;  %v739_v14 = vrot.slane %v737_v4, 5  ;;  %v749_v16 = vrot.slane %v747_v6, 4  ;;  %v1386_v6 = vrot.slane %v1384_v1, 4 }
  0x6e   : > { %3188 = vmatpush.bf16.msra.mxu0 %v4132_v33 }
  0x6f   : > { %v740_v62 = vor.u32 %v739_v14, %v736_v13  ;;  %v750_v33 = vor.u32 %v749_v16, %v745_v15  ;;  %v4592_v13 = vld [vmem:[%s4252_s6 + $0x4c] sm:$0xf]  ;;  %v1388_v14 = vsel %vm4435_vm5, %v1386_v6, %v1387_v7 }
  0x70   : > { %v791_v18 = vshll.u32 %v4592_v13, 16  ;;  %v1492_v24 = vunpack.c.l.b16 %v1388_v14 }
  0x71   : > { %v741_v34 = vrot.slane %v740_v62, 4  ;;  %v751_v35 = vrot.slane %v750_v33, 4  ;;  %v795_v62 = vshrl.u32 %v4592_v13, 16  ;;  %v1491_v33 = vunpack.c.l.b16 %v1385_v61 }
  0x72   : > { %3189 = vmatpush.bf16.msra.mxu0 %v4131_v50  ;;  %v793_v22 = vrot.slane %v791_v18, 5 }
  0x73   : > { %v746_v46 = vsel %vm4430_vm4, %v741_v34, %v745_v15  ;;  %v756_v47 = vsel %vm4430_vm4, %v751_v35, %v755_v36  ;;  %v797_v34 = vrot.slane %v795_v62, 4  ;;  %v4607_v35 = vld [vmem:[%s4252_s6 + $0x50] sm:$0x1]  ;;  %v4609_v36 = vpack.c.b16 %v1492_v24, %v1491_v33  ;;  %v4667_v24 = vld [vmem:[%s4252_s6 + $0x5c] sm:$0x1] }
  0x74   : > { %v1047_v39 = vunpack.c.l.b16 %v756_v47  ;;  %v801_v44 = vshll.u32 %v4607_v35, 16  ;;  %v1393_v47 = vrot.slane %v1391_v40, 4  ;;  %v1398_v33 = vrot.slane %v4592_v13, 5 }
  0x75   : > { %v798_v43 = vor.u32 %v797_v34, %v793_v22 }
  0x76   : > { %v1395_v1 = vsel %vm4435_vm5, %v1393_v47, %v1394_v32  ;;  %v4690_v47 = vld [vmem:[%s4252_s6 + $0x64] sm:$0xf] }
  0x77   : > { %v1494_v61 = vunpack.c.l.b16 %v1395_v1 }
  0x7b   : > { %1163 = vmatmul.bf16.gmra.mxu1 %v1071_v12  ;;  %1608 = vmatmul.bf16.gmra.mxu2 %v4501_v49  ;;  %v1045_v12 = vunpack.c.l.b16 %v732_v2  ;;  %v774_v2 = vor.u32 %v773_v58, %v769_v57 }
  0x7c   : > { %1864 = vmatmul.bf16.gmra.mxu3 %v4379_v51  ;;  %v722_v51 = vsel %vm4430_vm4, %v717_v59, %v721_v45  ;;  %v4107_v45 = vld [vmem:[%s5407_s1 + $0x168] sm:$0xff]  ;;  %v1046_v59 = vunpack.c.l.b16 %v746_v46  ;;  %v3684_v46 = vrot.slane %v4542_v19, 9  ;;  %v4634_v19 = vld [vmem:[%s4252_s6 + $0x54] sm:$0xf] }
  0x7d   : > { %2142 = vmatmul.bf16.gmra.mxu0 %v4504_v52  ;;  %v1044_v9 = vunpack.c.l.b16 %v722_v51  ;;  %2393 = vmatpush.bf16.msra.mxu1 %v4107_v45  ;;  %v764_v51 = vor.u32 %v763_v56, %v760_v55  ;;  %v775_v8 = vrot.slane %v774_v2, 4  ;;  %v4114_v55 = vld [vmem:[%s5407_s1 + $0x1a0] sm:$0xff]  ;;  %v806_v5 = vshrl.u32 %v4634_v19, 16 }
  0x7e   : > { %v4580_v4 = vpack.c.b16 %v1047_v39, %v1046_v59  ;;  %v4122_v56 = vld [vmem:[%s5407_s1 + $0x1e0] sm:$0xff]  ;;  %2650 = vmatpush.bf16.msra.mxu2 %v4114_v55  ;;  %v1392_v60 = vsel %vm4435_vm5, %v3684_v46, %v1391_v40  ;;  %v809_v6 = vshll.u32 %v4634_v19, 16 }
  0x7f   : > { %v4535_v21 = vpack.c.b16 %v1045_v12, %v1044_v9  ;;  %v765_v0 = vrot.slane %v764_v51, 4  ;;  %v779_v9 = vrot.slane %v777_v3, 5  ;;  %v4589_v12 = vld [vmem:[%s4252_s6 + $0x48] sm:$0xf]  ;;  %2928 = vmatpush.bf16.msra.mxu3 %v4122_v56  ;;  %v4106_v59 = vld [vmem:[%s5407_s1 + $0x160] sm:$0xff] }
  0x80   : > { %v785_v17 = vshll.u32 %v4589_v12, 16  ;;  %v3685_v13 = vrot.slane %v4589_v12, 9  ;;  %v4687_v46 = vld [vmem:[%s4252_s6 + $0x60] sm:$0xf] }
  0x81   : > { %v770_v15 = vsel %vm4430_vm4, %v765_v0, %v769_v57  ;;  %v780_v16 = vsel %vm4430_vm4, %v775_v8, %v779_v9  ;;  %2394 = vmatpush.bf16.msra.mxu1 %v4106_v59  ;;  %v4130_v8 = vld [vmem:[%s5407_s1 + $0x220] sm:$0xff]  ;;  %v1493_v9 = vunpack.c.l.b16 %v1392_v60  ;;  %v833_v56 = vshll.u32 %v4687_v46, 16 }
  0x82   : > { %v1048_v25 = vunpack.c.l.b16 %v770_v15  ;;  %v787_v28 = vrot.slane %v785_v17, 5  ;;  %3190 = vmatpush.bf16.msra.mxu0 %v4130_v8  ;;  %v839_v59 = vshll.u32 %v4690_v47, 16  ;;  %v843_v60 = vshrl.u32 %v4690_v47, 16 }
  0x83   : > { %v835_v8 = vrot.slane %v833_v56, 5  ;;  %v4742_v56 = vld [vmem:[%s4252_s6 + $0x6c] sm:$0xf] }
  0x8b   : > { %1168 = vmatmul.bf16.gmra.mxu1 %v4504_v52  ;;  %1613 = vmatmul.bf16.gmra.mxu2 %v4533_v63 }
  0x8c   : > { %1869 = vmatmul.bf16.gmra.mxu3 %v4426_v23  ;;  %v1381_v23 = vsel %vm4435_vm5, %v1379_v26, %v1380_v27  ;;  %v1049_v26 = vunpack.c.l.b16 %v780_v16  ;;  %v808_v16 = vrot.slane %v806_v5, 4 }
  0x8d   : > { %2147 = vmatmul.bf16.gmra.mxu0 %v4535_v21  ;;  %v1490_v54 = vunpack.c.l.b16 %v1381_v23 }
  0x8e   : > { %v4614_v41 = vpack.c.b16 %v1049_v26, %v1048_v25  ;;  %v4671_v26 = vpack.c.b16 %v1494_v61, %v1493_v9  ;;  %v841_v9 = vrot.slane %v839_v59, 5  ;;  %v845_v61 = vrot.slane %v843_v60, 4  ;;  %v4745_v59 = vld [vmem:[%s4252_s6 + $0x70] sm:$0xf] }
  0x8f   : > { %v4577_v38 = vpack.c.b16 %v1490_v54, %v1489_v53  ;;  %v799_v53 = vrot.slane %v798_v43, 4  ;;  %v803_v54 = vrot.slane %v801_v44, 5  ;;  %v1400_v43 = vrot.slane %v1398_v33, 4 }
  0x90   : > { %5434 = vst [vmem:[#allocation5_spill] sm:$0xff] %v4671_v26  ;;  %v1401_v44 = vrot.slane %v4607_v35, 5 }
  0x91   : > { %v804_v2 = vsel %vm4430_vm4, %v799_v53, %v803_v54 }
  0x92   : > { %v1051_v15 = vunpack.c.l.b16 %v804_v2  ;;  %v1402_v35 = vsel %vm4435_vm5, %v1400_v43, %v1401_v44 }
  0x9b   : > { %1173 = vmatmul.bf16.gmra.mxu1 %v4535_v21  ;;  %1618 = vmatmul.bf16.gmra.mxu2 %v4577_v38 }
  0x9c   : > { %1874 = vmatmul.bf16.gmra.mxu3 %v4261_v10  ;;  %v782_v10 = vshrl.u32 %v4589_v12, 16  ;;  %v1399_v12 = vsel %vm4435_vm5, %v3685_v13, %v1398_v33 }
  0x9d   : > { %2152 = vmatmul.bf16.gmra.mxu0 %v4580_v4 }
  0x9e   : > { %v784_v27 = vrot.slane %v782_v10, 4  ;;  %v811_v10 = vrot.slane %v809_v6, 5  ;;  %v1495_v6 = vunpack.c.l.b16 %v1399_v12 }
  0xa0   : > { %v788_v42 = vor.u32 %v787_v28, %v784_v27  ;;  %v812_v34 = vor.u32 %v811_v10, %v808_v16  ;;  %v4713_v16 = vld [vmem:[%s4252_s6 + $0x68] sm:$0x1] }
  0xa2   : > { %v789_v50 = vrot.slane %v788_v42, 4  ;;  %v825_v42 = vshll.u32 %v4667_v24, 16  ;;  %v813_v32 = vrot.slane %v812_v34, 4 }
  0xa4   : > { %v794_v51 = vsel %vm4430_vm4, %v789_v50, %v793_v22  ;;  %v827_v53 = vrot.slane %v825_v42, 5  ;;  %v849_v42 = vshll.u32 %v4713_v16, 16 }
  0xa5   : > { %v1050_v14 = vunpack.c.l.b16 %v794_v51 }
  0xa7   : > { %v4675_v28 = vpack.c.b16 %v1051_v15, %v1050_v14 }
  0xa8   : > { %v4612_v23 = vpop.f32.mrf.mxu1 }
  0xa9   : > { %5435 = vst [vmem:[#allocation6_spill] sm:$0xff] %v4675_v28 }
  0xaa   : > { %v4617_v45 = vpop.f32.mrf.mxu0 }
  0xab   : > { %1178 = vmatmul.bf16.gmra.mxu1 %v4580_v4  ;;  %1623 = vmatmul.bf16.gmra.mxu2 %v4609_v36 }
  0xac   : > { %1879 = vmatmul.bf16.gmra.mxu3 %v4319_v30  ;;  %v4637_v30 = vld [vmem:[%s4252_s6 + $0x58] sm:$0xf] }
  0xad   : > { %2157 = vmatmul.bf16.gmra.mxu0 %v4614_v41  ;;  %v815_v7 = vshll.u32 %v4637_v30, 16  ;;  %v819_v0 = vshrl.u32 %v4637_v30, 16 }
  0xae   : > { %v4631_v57 = vpop.f32.mrf.mxu2 }
  0xaf   : > { %v4639_v58 = vpop.f32.mrf.mxu3  ;;  %v817_v17 = vrot.slane %v815_v7, 5  ;;  %v821_v18 = vrot.slane %v819_v0, 4  ;;  %v1496_v7 = vunpack.c.l.b16 %v1402_v35  ;;  %v851_v35 = vrot.slane %v849_v42, 5 }
  0xb0   : > { %5432 = vst [vmem:[#allocation3_spill] sm:$0xff] %v4639_v58  ;;  %v4644_v39 = vpop.f32.mrf.mxu1 }
  0xb1   : > { %v822_v40 = vor.u32 %v821_v18, %v817_v17  ;;  %v818_v2 = vsel %vm4430_vm4, %v813_v32, %v817_v17  ;;  %v1405_v18 = vrot.slane %v4637_v30, 5  ;;  %v4720_v17 = vpack.c.b16 %v1496_v7, %v1495_v6 }
  0xb2   : > { %v4654_v3 = vpop.f32.mrf.mxu0  ;;  %v1052_v14 = vunpack.c.l.b16 %v818_v2  ;;  %v3686_v32 = vrot.slane %v4634_v19, 9  ;;  %v1408_v30 = vrot.slane %v4667_v24, 5  ;;  %v4121_v19 = vld [vmem:[%s5407_s1 + $0x1d8] sm:$0xff] }
  0xb3   : > { %v823_v50 = vrot.slane %v822_v40, 4  ;;  %5438 = vst [vmem:[#allocation9_spill] sm:$0xff] %v4720_v17  ;;  %v846_v40 = vor.u32 %v845_v61, %v841_v9  ;;  %2929 = vmatpush.bf16.msra.mxu3 %v4121_v19  ;;  %v863_v61 = vshll.u32 %v4745_v59, 16 }
  0xb5   : > { %v828_v5 = vsel %vm4430_vm4, %v823_v50, %v827_v53  ;;  %v1407_v50 = vrot.slane %v1405_v18, 4  ;;  %v847_v12 = vrot.slane %v846_v40, 4 }
  0xb6   : > { %v4663_v62 = vpop.f32.mrf.mxu2  ;;  %v1053_v15 = vunpack.c.l.b16 %v828_v5 }
  0xb7   : > { %v4669_v25 = vpop.f32.mrf.mxu3  ;;  %v1409_v2 = vsel %vm4435_vm5, %v1407_v50, %v1408_v30  ;;  %v852_v6 = vsel %vm4430_vm4, %v847_v12, %v851_v35  ;;  %v4774_v35 = vld [vmem:[%s4252_s6 + $0x74] sm:$0x1] }
  0xb8   : > { %5433 = vst [vmem:[#allocation4_spill] sm:$0xff] %v4669_v25  ;;  %v4673_v27 = vpop.f32.mrf.mxu1  ;;  %v4725_v43 = vpack.c.b16 %v1053_v15, %v1052_v14  ;;  %v867_v14 = vshrl.u32 %v4745_v59, 16  ;;  %v1498_v40 = vunpack.c.l.b16 %v1409_v2 }
  0xba   : > { %v4677_v22 = vpop.f32.mrf.mxu0  ;;  %5439 = vst [vmem:[#allocation10_spill] sm:$0xff] %v4725_v43  ;;  %v869_v12 = vrot.slane %v867_v14, 4 }
  0xbb   : > { %1183 = vmatmul.bf16.gmra.mxu1 %v4614_v41  ;;  %1628 = vmatmul.bf16.gmra.mxu2 %v4671_v26 }
  0xbc   : > { %1884 = vmatmul.bf16.gmra.mxu3 %v4374_v48  ;;  %v830_v48 = vshrl.u32 %v4687_v46, 16 }
  0xbd   : > { %2162 = vmatmul.bf16.gmra.mxu0 %v4675_v28 }
  0xbe   : > { %v4692_v54 = vpop.f32.mrf.mxu2  ;;  %v832_v0 = vrot.slane %v830_v48, 4  ;;  %v4113_v48 = vld [vmem:[%s5407_s1 + $0x198] sm:$0xff] }
  0xbf   : > { %v4698_v55 = vpop.f32.mrf.mxu3  ;;  %2651 = vmatpush.bf16.msra.mxu2 %v4113_v48 }
  0xc0   : > { %5436 = vst [vmem:[#allocation7_spill] sm:$0xff] %v4698_v55  ;;  %v4704_v1 = vpop.f32.mrf.mxu1  ;;  %v836_v34 = vor.u32 %v835_v8, %v832_v0  ;;  %v854_v0 = vshrl.u32 %v4742_v56, 16  ;;  %v857_v8 = vshll.u32 %v4742_v56, 16 }
  0xc2   : > { %v4706_v51 = vpop.f32.mrf.mxu0  ;;  %v837_v53 = vrot.slane %v836_v34, 4  ;;  %v856_v50 = vrot.slane %v854_v0, 4  ;;  %v859_v30 = vrot.slane %v857_v8, 5  ;;  %v873_v0 = vshll.u32 %v4774_v35, 16 }
  0xc4   : > { %v842_v5 = vsel %vm4430_vm4, %v837_v53, %v841_v9  ;;  %v4105_v9 = vld [vmem:[%s5407_s1 + $0x158] sm:$0xff]  ;;  %v865_v53 = vrot.slane %v863_v61, 5  ;;  %v3687_v61 = vrot.slane %v4687_v46, 9 }
  0xc5   : > { %v1054_v42 = vunpack.c.l.b16 %v842_v5  ;;  %2395 = vmatpush.bf16.msra.mxu1 %v4105_v9  ;;  %v860_v5 = vor.u32 %v859_v30, %v856_v50 }
  0xc6   : > { %v4715_v10 = vpop.f32.mrf.mxu2 }
  0xc7   : > { %v4718_v33 = vpop.f32.mrf.mxu3  ;;  %v861_v9 = vrot.slane %v860_v5, 4 }
  0xc8   : > { %5437 = vst [vmem:[#allocation8_spill] sm:$0xff] %v4718_v33  ;;  %v4723_v13 = vpop.f32.mrf.mxu1  ;;  %v1412_v33 = vrot.slane %v4690_v47, 5  ;;  %v1415_v47 = vrot.slane %v4713_v16, 5 }
  0xc9   : > { %v866_v16 = vsel %vm4430_vm4, %v861_v9, %v865_v53 }
  0xca   : > { %v4727_v44 = vpop.f32.mrf.mxu0  ;;  %v1414_v14 = vrot.slane %v1412_v33, 4 }
  0xcb   : > { %1188 = vmatmul.bf16.gmra.mxu1 %v4675_v28  ;;  %1633 = vmatmul.bf16.gmra.mxu2 %v4720_v17 }
  0xcc   : > { %1889 = vmatmul.bf16.gmra.mxu3 %v4421_v20  ;;  %v1406_v20 = vsel %vm4435_vm5, %v3686_v32, %v1405_v18  ;;  %v4129_v18 = vld [vmem:[%s5407_s1 + $0x218] sm:$0xff]  ;;  %v1055_v32 = vunpack.c.l.b16 %v852_v6  ;;  %v870_v6 = vor.u32 %v869_v12, %v865_v53  ;;  %v1416_v46 = vsel %vm4435_vm5, %v1414_v14, %v1415_v47 }
  0xcd   : > { %2167 = vmatmul.bf16.gmra.mxu0 %v4725_v43  ;;  %v1497_v34 = vunpack.c.l.b16 %v1406_v20  ;;  %v1056_v14 = vunpack.c.l.b16 %v866_v16 }
  0xce   : > { %v4747_v24 = vpop.f32.mrf.mxu2  ;;  %3191 = vmatpush.bf16.msra.mxu0 %v4129_v18  ;;  %v4785_v2 = vpack.c.b16 %v1055_v32, %v1054_v42  ;;  %v871_v18 = vrot.slane %v870_v6, 4  ;;  %v4799_v42 = vld [vmem:[%s4252_s6 + $0x78] sm:$0xf]  ;;  %v4802_v32 = vld [vmem:[%s4252_s6 + $0x7c] sm:$0xf] }
  0xcf   : > { %v4749_v60 = vpop.f32.mrf.mxu3  ;;  %v878_v6 = vshrl.u32 %v4799_v42, 16 }
  0xd0   : > { %5440 = vst [vmem:[#allocation11_spill] sm:$0xff] %v4749_v60  ;;  %v4759_v7 = vpop.f32.mrf.mxu1  ;;  %v4780_v60 = vpack.c.b16 %v1498_v40, %v1497_v34  ;;  %v875_v34 = vrot.slane %v873_v0, 5  ;;  %v881_v0 = vshll.u32 %v4799_v42, 16 }
  0xd1   : > { %5443 = vst [vmem:[#allocation14_spill] sm:$0xff] %v4785_v2  ;;  %v880_v55 = vrot.slane %v878_v6, 4 }
  0xd2   : > { %v4765_v15 = vpop.f32.mrf.mxu0  ;;  %5442 = vst [vmem:[#allocation13_spill] sm:$0xff] %v4780_v60  ;;  %v876_v12 = vsel %vm4430_vm4, %v871_v18, %v875_v34  ;;  %v883_v53 = vrot.slane %v881_v0, 5  ;;  %v1419_v34 = vrot.slane %v4745_v59, 5  ;;  %v3688_v59 = vrot.slane %v4742_v56, 9 }
  0xd3   : > { %v1057_v47 = vunpack.c.l.b16 %v876_v12 }
  0xd4   : > { %v1421_v0 = vrot.slane %v1419_v34, 4 }
  0xd6   : > { %v4776_v48 = vpop.f32.mrf.mxu2 }
  0xd7   : > { %v4778_v19 = vpop.f32.mrf.mxu3 }
  0xd8   : > { %5441 = vst [vmem:[#allocation12_spill] sm:$0xff] %v4778_v19  ;;  %v4783_v20 = vpop.f32.mrf.mxu1  ;;  %v1500_v19 = vunpack.c.l.b16 %v1416_v46 }
  0xda   : > { %v4788_v8 = vpop.f32.mrf.mxu0 }
  0xdb   : > { %1193 = vmatmul.bf16.gmra.mxu1 %v4725_v43  ;;  %1638 = vmatmul.bf16.gmra.mxu2 %v4780_v60  ;;  %v4826_v43 = vld [vmem:[%s4252_s6 + $0x80] sm:$0x1] }
  0xdc   : > { %1894 = vmatmul.bf16.gmra.mxu3 %v4264_v11  ;;  %v1413_v11 = vsel %vm4435_vm5, %v3687_v61, %v1412_v33  ;;  %v891_v33 = vshrl.u32 %v4802_v32, 16  ;;  %v897_v6 = vshll.u32 %v4826_v43, 16 }
  0xdd   : > { %2172 = vmatmul.bf16.gmra.mxu0 %v4785_v2  ;;  %v1499_v61 = vunpack.c.l.b16 %v1413_v11  ;;  %v4832_v11 = vpack.c.b16 %v1057_v47, %v1056_v14  ;;  %v1420_v14 = vsel %vm4435_vm5, %v3688_v59, %v1419_v34 }
  0xde   : > { %v4796_v40 = vpop.f32.mrf.mxu2  ;;  %v893_v60 = vrot.slane %v891_v33, 4  ;;  %v1422_v33 = vrot.slane %v4774_v35, 5  ;;  %v899_v35 = vrot.slane %v897_v6, 5 }
  0xdf   : > { %5444 = vst [vmem:[#allocation15_spill] sm:$0xff] %v4796_v40  ;;  %v4804_v50 = vpop.f32.mrf.mxu3  ;;  %v4830_v58 = vpack.c.b16 %v1500_v19, %v1499_v61  ;;  %v4841_v19 = vld [vmem:[%s4252_s6 + $0x84] sm:$0xf]  ;;  %v1426_v40 = vrot.slane %v4802_v32, 5 }
  0xe0   : > { %5445 = vst [vmem:[#allocation16_spill] sm:$0xff] %v4804_v50  ;;  %v4806_v30 = vpop.f32.mrf.mxu1  ;;  %v887_v50 = vshll.u32 %v4802_v32, 16  ;;  %v902_v47 = vshrl.u32 %v4841_v19, 16 }
  0xe1   : > { %5448 = vst [vmem:[#allocation19_spill] sm:$0xff] %v4830_v58 }
  0xe2   : > { %v4816_v5 = vpop.f32.mrf.mxu0  ;;  %v889_v9 = vrot.slane %v887_v50, 5  ;;  %5449 = vst [vmem:[#allocation20_spill] sm:$0xff] %v4832_v11  ;;  %v884_v50 = vor.u32 %v883_v53, %v880_v55  ;;  %v4849_v55 = vld [vmem:[%s4252_s6 + $0x88] sm:$0xf] }
  0xe4   : > { %v894_v12 = vor.u32 %v893_v60, %v889_v9  ;;  %v885_v56 = vrot.slane %v884_v50, 4  ;;  %v915_v50 = vshrl.u32 %v4849_v55, 16 }
  0xe6   : > { %v4822_v18 = vpop.f32.mrf.mxu2  ;;  %v895_v60 = vrot.slane %v894_v12, 4  ;;  %v890_v59 = vsel %vm4430_vm4, %v885_v56, %v889_v9 }
  0xe7   : > { %5446 = vst [vmem:[#allocation17_spill] sm:$0xff] %v4822_v18  ;;  %v4828_v25 = vpop.f32.mrf.mxu3  ;;  %v1058_v56 = vunpack.c.l.b16 %v890_v59 }
  0xe8   : > { %5447 = vst [vmem:[#allocation18_spill] sm:$0xff] %v4828_v25  ;;  %v1159_v17 = vpop.f32.mrf.mxu1 }
  0xe9   : > { %v1239_v46 = vadd.f32 %v1159_v17, %v4617_v45  ;;  %v4112_v45 = vld [vmem:[%s5407_s1 + $0x190] sm:$0xff] }
  0xea   : > { %v2138_v16 = vpop.f32.mrf.mxu0  ;;  %v4120_v17 = vld [vmem:[%s5407_s1 + $0x1d0] sm:$0xff]  ;;  %2652 = vmatpush.bf16.msra.mxu2 %v4112_v45  ;;  %v1501_v45 = vunpack.c.l.b16 %v1420_v14 }
  0xeb   : > { %1198 = vmatmul.bf16.gmra.mxu1 %v4785_v2  ;;  %1643 = vmatmul.bf16.gmra.mxu2 %v4830_v58  ;;  %v905_v58 = vshll.u32 %v4841_v19, 16  ;;  %v911_v2 = vshll.u32 %v4849_v55, 16 }
  0xec   : > { %1899 = vmatmul.bf16.gmra.mxu3 %v4322_v31  ;;  %v1423_v31 = vsel %vm4435_vm5, %v1421_v0, %v1422_v33  ;;  %v900_v0 = vsel %vm4430_vm4, %v895_v60, %v899_v35  ;;  %v4128_v33 = vld [vmem:[%s5407_s1 + $0x210] sm:$0xff]  ;;  %v4876_v35 = vld [vmem:[%s4252_s6 + $0x8c] sm:$0x1] }
  0xed   : > { %2177 = vmatmul.bf16.gmra.mxu0 %v4832_v11  ;;  %2930 = vmatpush.bf16.msra.mxu3 %v4120_v17  ;;  %v904_v17 = vrot.slane %v902_v47, 4  ;;  %v1059_v60 = vunpack.c.l.b16 %v900_v0  ;;  %v3689_v0 = vrot.slane %v4799_v42, 9 }
  0xee   : > { %v1604_v61 = vpop.f32.mrf.mxu2  ;;  %3192 = vmatpush.bf16.msra.mxu0 %v4128_v33 }
  0xef   : > { %v1684_v53 = vadd.f32 %v1604_v61, %v1239_v46  ;;  %v1860_v25 = vpop.f32.mrf.mxu3  ;;  %v4104_v46 = vld [vmem:[%s5407_s1 + $0x150] sm:$0xff]  ;;  %v913_v61 = vrot.slane %v911_v2, 5  ;;  %v1427_v42 = vsel %vm4435_vm5, %v3689_v0, %v1426_v40 }
  0xf0   : > { %v1161_v12 = vpop.f32.mrf.mxu1  ;;  %2396 = vmatpush.bf16.msra.mxu1 %v4104_v46  ;;  %v1428_v46 = vrot.slane %v1426_v40, 4 }
  0xf1   : > { %v1940_v6 = vadd.f32 %v1860_v25, %v1684_v53  ;;  %v1240_v28 = vadd.f32 %v1161_v12, %v4654_v3  ;;  %v1502_v25 = vunpack.c.l.b16 %v1423_v31  ;;  %v907_v3 = vrot.slane %v905_v58, 5 }
  0xf2   : > { %v2140_v34 = vpop.f32.mrf.mxu0  ;;  %v917_v53 = vrot.slane %v915_v50, 4  ;;  %v921_v58 = vshll.u32 %v4876_v35, 16  ;;  %v4882_v50 = vpack.c.b16 %v1059_v60, %v1058_v56 }
  0xf3   : > { %v4873_v9 = vadd.f32 %v2138_v16, %v1940_v6  ;;  %v4878_v18 = vpack.c.b16 %v1502_v25, %v1501_v45  ;;  %v908_v31 = vor.u32 %v907_v3, %v904_v17  ;;  %v4892_v17 = vld [vmem:[%s4252_s6 + $0x78] sm:$0xff] }
  0xf4   : > { %v918_v47 = vor.u32 %v917_v53, %v913_v61  ;;  %v923_v45 = vrot.slane %v921_v58, 5  ;;  %5453 = vst [vmem:[#allocation24_spill] sm:$0xff] %v4892_v17 }
  0xf5   : > { %5450 = vst [vmem:[#allocation21_spill] sm:$0xff] %v4873_v9  ;;  %v909_v32 = vrot.slane %v908_v31, 4 }
  0xf6   : > { %v1606_v12 = vpop.f32.mrf.mxu2  ;;  %5451 = vst [vmem:[#allocation22_spill] sm:$0xff] %v4878_v18  ;;  %v919_v33 = vrot.slane %v918_v47, 4 }
  0xf7   : > { %v1685_v26 = vadd.f32 %v1606_v12, %v1240_v28  ;;  %v1862_v14 = vpop.f32.mrf.mxu3  ;;  %v1429_v28 = vrot.slane %v4826_v43, 5  ;;  %v914_v56 = vsel %vm4430_vm4, %v909_v32, %v913_v61 }
  0xf8   : > { %v1164_v2 = vpop.f32.mrf.mxu1  ;;  %v924_v60 = vsel %vm4430_vm4, %v919_v33, %v923_v45  ;;  %v1060_v61 = vunpack.c.l.b16 %v914_v56 }
  0xf9   : > { %v1941_v16 = vadd.f32 %v1862_v14, %v1685_v26  ;;  %v1241_v6 = vadd.f32 %v1164_v2, %v4677_v22  ;;  %v4897_v26 = vld [vmem:[%s4252_s6 + $0x90] sm:$0xf]  ;;  %v4900_v22 = vld [vmem:[%s4252_s6 + $0x94] sm:$0xf] }
  0xfa   : > { %v2143_v59 = vpop.f32.mrf.mxu0  ;;  %v926_v14 = vshrl.u32 %v4897_v26, 16  ;;  %v929_v31 = vshll.u32 %v4897_v26, 16  ;;  %v935_v47 = vshll.u32 %v4900_v22, 16  ;;  %v939_v40 = vshrl.u32 %v4900_v22, 16 }
  0xfb   : > { %1203 = vmatmul.bf16.gmra.mxu1 %v4832_v11  ;;  %1648 = vmatmul.bf16.gmra.mxu2 %v4878_v18  ;;  %v4889_v25 = vadd.f32 %v2140_v34, %v1941_v16  ;;  %v1430_v34 = vsel %vm4435_vm5, %v1428_v46, %v1429_v28  ;;  %v1061_v46 = vunpack.c.l.b16 %v924_v60 }
  0xfc   : > { %1904 = vmatmul.bf16.gmra.mxu3 %v4892_v17  ;;  %v1504_v0 = vunpack.c.l.b16 %v1430_v34  ;;  %v928_v32 = vrot.slane %v926_v14, 4  ;;  %v931_v33 = vrot.slane %v929_v31, 5  ;;  %v937_v45 = vrot.slane %v935_v47, 5  ;;  %v4934_v47 = vld [vmem:[%s4252_s6 + $0x84] sm:$0xff] }
  0xfd   : > { %5452 = vst [vmem:[#allocation23_spill] sm:$0xff] %v4889_v25  ;;  %2182 = vmatmul.bf16.gmra.mxu0 %v4882_v50  ;;  %v4918_v25 = vld [vmem:[%s4252_s6 + $0x98] sm:$0x1]  ;;  %v1436_v14 = vrot.slane %v4876_v35, 5  ;;  %v4945_v35 = vld [vmem:[%s4252_s6 + $0x9c] sm:$0xf] }
  0xfe   : > { %v1609_v43 = vpop.f32.mrf.mxu2  ;;  %v945_v34 = vshll.u32 %v4918_v25, 16 }
  0xff   : > { %v1686_v3 = vadd.f32 %v1609_v43, %v1241_v6  ;;  %v1865_v53 = vpop.f32.mrf.mxu3  ;;  %v1503_v6 = vunpack.c.l.b16 %v1427_v42  ;;  %v941_v43 = vrot.slane %v939_v40, 4  ;;  %v4111_v40 = vld [vmem:[%s5407_s1 + $0x188] sm:$0xff] }
 0x100   : > { %v1166_v12 = vpop.f32.mrf.mxu1  ;;  %2653 = vmatpush.bf16.msra.mxu2 %v4111_v40 }
 0x101   : > { %v1942_v58 = vadd.f32 %v1865_v53, %v1686_v3  ;;  %v1242_v2 = vadd.f32 %v1166_v12, %v4706_v51  ;;  %v4920_v11 = vpack.c.b16 %v1504_v0, %v1503_v6  ;;  %v1433_v51 = vrot.slane %v4849_v55, 5 }
 0x102   : > { %v2145_v16 = vpop.f32.mrf.mxu0  ;;  %v4923_v3 = vpack.c.b16 %v1061_v46, %v1060_v61  ;;  %v932_v53 = vor.u32 %v931_v33, %v928_v32 }
 0x103   : > { %v4915_v28 = vadd.f32 %v2143_v59, %v1942_v58  ;;  %v942_v59 = vor.u32 %v941_v43, %v937_v45  ;;  %v1435_v55 = vrot.slane %v1433_v51, 4  ;;  %v950_v43 = vshrl.u32 %v4945_v35, 16 }
 0x105   : > { %5454 = vst [vmem:[#allocation25_spill] sm:$0xff] %v4915_v28  ;;  %v1437_v61 = vsel %vm4435_vm5, %v1435_v55, %v1436_v14 }
 0x106   : > { %v1611_v9 = vpop.f32.mrf.mxu2  ;;  %v1506_v55 = vunpack.c.l.b16 %v1437_v61 }
 0x107   : > { %v1687_v17 = vadd.f32 %v1611_v9, %v1242_v2  ;;  %v1867_v18 = vpop.f32.mrf.mxu3  ;;  %v3690_v9 = vrot.slane %v4841_v19, 9  ;;  %v4119_v19 = vld [vmem:[%s5407_s1 + $0x1c8] sm:$0xff]  ;;  %v4948_v2 = vld [vmem:[%s4252_s6 + $0xa0] sm:$0xf] }
 0x108   : > { %v1169_v42 = vpop.f32.mrf.mxu1  ;;  %2931 = vmatpush.bf16.msra.mxu3 %v4119_v19 }
 0x109   : > { %v1943_v56 = vadd.f32 %v1867_v18, %v1687_v17  ;;  %v1243_v60 = vadd.f32 %v1169_v42, %v4727_v44  ;;  %v933_v44 = vrot.slane %v932_v53, 4  ;;  %v943_v18 = vrot.slane %v942_v59, 4 }
 0x10a   : > { %v2148_v12 = vpop.f32.mrf.mxu0  ;;  %v947_v17 = vrot.slane %v945_v34, 5  ;;  %v1434_v0 = vsel %vm4435_vm5, %v3690_v9, %v1433_v51  ;;  %v953_v42 = vshll.u32 %v4945_v35, 16  ;;  %v959_v51 = vshll.u32 %v4948_v2, 16 }
 0x10b   : > { %1208 = vmatmul.bf16.gmra.mxu1 %v4882_v50  ;;  %1653 = vmatmul.bf16.gmra.mxu2 %v4920_v11  ;;  %v4931_v31 = vadd.f32 %v2145_v16, %v1943_v56  ;;  %v938_v32 = vsel %vm4430_vm4, %v933_v44, %v937_v45  ;;  %v963_v56 = vshrl.u32 %v4948_v2, 16  ;;  %v4103_v45 = vld [vmem:[%s5407_s1 + $0x148] sm:$0xff]  ;;  %v1505_v9 = vunpack.c.l.b16 %v1434_v0 }
 0x10c   : > { %1909 = vmatmul.bf16.gmra.mxu3 %v4934_v47  ;;  %v948_v33 = vsel %vm4430_vm4, %v943_v18, %v947_v17  ;;  %2397 = vmatpush.bf16.msra.mxu1 %v4103_v45  ;;  %v952_v18 = vrot.slane %v950_v43, 4  ;;  %v955_v17 = vrot.slane %v953_v42, 5  ;;  %v961_v40 = vrot.slane %v959_v51, 5  ;;  %v4986_v45 = vld [vmem:[%s4252_s6 + $0xa8] sm:$0xf] }
 0x10d   : > { %5455 = vst [vmem:[#allocation26_spill] sm:$0xff] %v4931_v31  ;;  %2187 = vmatmul.bf16.gmra.mxu0 %v4923_v3  ;;  %v1063_v44 = vunpack.c.l.b16 %v948_v33  ;;  %v965_v19 = vrot.slane %v963_v56, 4  ;;  %v4975_v0 = vpack.c.b16 %v1506_v55, %v1505_v9  ;;  %v3691_v51 = vrot.slane %v4897_v26, 9 }
 0x10e   : > { %v1614_v58 = vpop.f32.mrf.mxu2  ;;  %v1443_v56 = vrot.slane %v4918_v25, 5 }
 0x10f   : > { %v1688_v16 = vadd.f32 %v1614_v58, %v1243_v60  ;;  %v1870_v6 = vpop.f32.mrf.mxu3  ;;  %v4127_v60 = vld [vmem:[%s5407_s1 + $0x208] sm:$0xff] }
 0x110   : > { %v1171_v46 = vpop.f32.mrf.mxu1  ;;  %3193 = vmatpush.bf16.msra.mxu0 %v4127_v60 }
 0x111   : > { %v1944_v53 = vadd.f32 %v1870_v6, %v1688_v16  ;;  %v1244_v59 = vadd.f32 %v1171_v46, %v4765_v15  ;;  %v1062_v15 = vunpack.c.l.b16 %v938_v32  ;;  %v1440_v16 = vrot.slane %v4900_v22, 5  ;;  %v4973_v6 = vld [vmem:[%s4252_s6 + $0xa4] sm:$0x1] }
 0x112   : > { %v2150_v34 = vpop.f32.mrf.mxu0  ;;  %v956_v32 = vor.u32 %v955_v17, %v952_v18  ;;  %v969_v22 = vshll.u32 %v4973_v6, 16 }
 0x113   : > { %v4969_v14 = vadd.f32 %v2148_v12, %v1944_v53  ;;  %v4977_v12 = vpack.c.b16 %v1063_v44, %v1062_v15  ;;  %v966_v53 = vor.u32 %v965_v19, %v961_v40  ;;  %v1441_v15 = vsel %vm4435_vm5, %v3691_v51, %v1440_v16 }
 0x114   : > { %v957_v26 = vrot.slane %v956_v32, 4  ;;  %v971_v55 = vrot.slane %v969_v22, 5  ;;  %v977_v19 = vshll.u32 %v4986_v45, 16 }
 0x115   : > { %5456 = vst [vmem:[#allocation27_spill] sm:$0xff] %v4969_v14  ;;  %v967_v9 = vrot.slane %v966_v53, 4 }
 0x116   : > { %v1616_v58 = vpop.f32.mrf.mxu2 }
 0x117   : > { %v1689_v46 = vadd.f32 %v1616_v58, %v1244_v59  ;;  %v1872_v31 = vpop.f32.mrf.mxu3  ;;  %v1442_v59 = vrot.slane %v1440_v16, 4  ;;  %v962_v16 = vsel %vm4430_vm4, %v957_v26, %v961_v40  ;;  %v972_v22 = vsel %vm4430_vm4, %v967_v9, %v971_v55 }
 0x118   : > { %v1174_v61 = vpop.f32.mrf.mxu1  ;;  %v1065_v28 = vunpack.c.l.b16 %v972_v22  ;;  %v1447_v40 = vrot.slane %v4948_v2, 5  ;;  %v5041_v22 = vld [vmem:[%s4252_s6 + $0xb4] sm:$0xf] }
 0x119   : > { %v1945_v33 = vadd.f32 %v1872_v31, %v1689_v46  ;;  %v1245_v43 = vadd.f32 %v1174_v61, %v4788_v8  ;;  %v4991_v31 = vld [vmem:[%s4252_s6 + $0x90] sm:$0xff]  ;;  %v4996_v8 = vld [vmem:[%s4252_s6 + $0xac] sm:$0xf]  ;;  %v1444_v44 = vsel %vm4435_vm5, %v1442_v59, %v1443_v56  ;;  %v979_v56 = vrot.slane %v977_v19, 5 }
 0x11a   : > { %v2153_v42 = vpop.f32.mrf.mxu0  ;;  %5458 = vst [vmem:[#allocation29_spill] sm:$0xff] %v4991_v31  ;;  %v983_v58 = vshll.u32 %v4996_v8, 16  ;;  %v987_v46 = vshrl.u32 %v4996_v8, 16  ;;  %v1508_v51 = vunpack.c.l.b16 %v1444_v44 }
 0x11b   : > { %1213 = vmatmul.bf16.gmra.mxu1 %v4923_v3  ;;  %1658 = vmatmul.bf16.gmra.mxu2 %v4975_v0  ;;  %v4988_v60 = vadd.f32 %v2150_v34, %v1945_v33  ;;  %v974_v34 = vshrl.u32 %v4986_v45, 16 }
 0x11c   : > { %1914 = vmatmul.bf16.gmra.mxu3 %v4991_v31  ;;  %v1064_v31 = vunpack.c.l.b16 %v962_v16 }
 0x11d   : > { %5457 = vst [vmem:[#allocation28_spill] sm:$0xff] %v4988_v60  ;;  %2192 = vmatmul.bf16.gmra.mxu0 %v4977_v12  ;;  %v976_v59 = vrot.slane %v974_v34, 4  ;;  %v989_v60 = vrot.slane %v987_v46, 4  ;;  %v1449_v46 = vrot.slane %v1447_v40, 4 }
 0x11e   : > { %v1619_v25 = vpop.f32.mrf.mxu2  ;;  %v5020_v34 = vpack.c.b16 %v1065_v28, %v1064_v31  ;;  %v5029_v28 = vld [vmem:[%s4252_s6 + $0x9c] sm:$0xff] }
 0x11f   : > { %v1690_v18 = vadd.f32 %v1619_v25, %v1245_v43  ;;  %v1875_v17 = vpop.f32.mrf.mxu3  ;;  %v1507_v43 = vunpack.c.l.b16 %v1441_v15  ;;  %v985_v25 = vrot.slane %v983_v58, 5  ;;  %v980_v9 = vor.u32 %v979_v56, %v976_v59  ;;  %5461 = vst [vmem:[#allocation32_spill] sm:$0xff] %v5029_v28 }
 0x120   : > { %v1176_v61 = vpop.f32.mrf.mxu1  ;;  %v3692_v58 = vrot.slane %v4945_v35, 9  ;;  %v4110_v35 = vld [vmem:[%s5407_s1 + $0x180] sm:$0xff] }
 0x121   : > { %v1946_v32 = vadd.f32 %v1875_v17, %v1690_v18  ;;  %v1246_v33 = vadd.f32 %v1176_v61, %v4816_v5  ;;  %v5014_v18 = vld [vmem:[%s4252_s6 + $0xb0] sm:$0x1]  ;;  %v5016_v17 = vpack.c.b16 %v1508_v51, %v1507_v43  ;;  %v990_v55 = vor.u32 %v989_v60, %v985_v25  ;;  %2654 = vmatpush.bf16.msra.mxu2 %v4110_v35 }
 0x122   : > { %v2155_v53 = vpop.f32.mrf.mxu0  ;;  %v993_v15 = vshll.u32 %v5014_v18, 16  ;;  %v981_v2 = vrot.slane %v980_v9, 4  ;;  %v1448_v51 = vsel %vm4435_vm5, %v3692_v58, %v1447_v40  ;;  %v998_v9 = vshrl.u32 %v5041_v22, 16  ;;  %v4102_v58 = vld [vmem:[%s5407_s1 + $0x140] sm:$0xff] }
 0x123   : > { %v5011_v14 = vadd.f32 %v2153_v42, %v1946_v32  ;;  %v1450_v32 = vrot.slane %v4973_v6, 5  ;;  %v991_v60 = vrot.slane %v990_v55, 4  ;;  %v4118_v6 = vld [vmem:[%s5407_s1 + $0x1c0] sm:$0xff]  ;;  %v1001_v55 = vshll.u32 %v5041_v22, 16  ;;  %2398 = vmatpush.bf16.msra.mxu1 %v4102_v58 }
 0x124   : > { %2932 = vmatpush.bf16.msra.mxu3 %v4118_v6  ;;  %v1000_v35 = vrot.slane %v998_v9, 4 }
 0x125   : > { %5459 = vst [vmem:[#allocation30_spill] sm:$0xff] %v5011_v14  ;;  %v1003_v6 = vrot.slane %v1001_v55, 5 }
 0x126   : > { %v1621_v5 = vpop.f32.mrf.mxu2 }
 0x127   : > { %v1691_v26 = vadd.f32 %v1621_v5, %v1246_v33  ;;  %v1877_v61 = vpop.f32.mrf.mxu3  ;;  %v995_v33 = vrot.slane %v993_v15, 5  ;;  %v1451_v5 = vsel %vm4435_vm5, %v1449_v46, %v1450_v32  ;;  %v1509_v46 = vunpack.c.l.b16 %v1448_v51 }
 0x128   : > { %v1179_v44 = vpop.f32.mrf.mxu1  ;;  %v1510_v32 = vunpack.c.l.b16 %v1451_v5  ;;  %v1454_v5 = vrot.slane %v4996_v8, 5  ;;  %v5082_v8 = vld [vmem:[%s4252_s6 + $0xa8] sm:$0xff] }
 0x129   : > { %v1947_v42 = vadd.f32 %v1877_v61, %v1691_v26  ;;  %v1247_v31 = vadd.f32 %v1179_v44, %v4612_v23  ;;  %v986_v26 = vsel %vm4430_vm4, %v981_v2, %v985_v25  ;;  %v996_v23 = vsel %vm4430_vm4, %v991_v60, %v995_v33  ;;  %v4126_v25 = vld [vmem:[%s5407_s1 + $0x200] sm:$0xff] }
 0x12a   : > { %v2158_v19 = vpop.f32.mrf.mxu0  ;;  %v1066_v2 = vunpack.c.l.b16 %v986_v26  ;;  %v1067_v60 = vunpack.c.l.b16 %v996_v23  ;;  %3194 = vmatpush.bf16.msra.mxu0 %v4126_v25  ;;  %v5070_v51 = vpack.c.b16 %v1510_v32, %v1509_v46  ;;  %v5089_v46 = vld [vmem:[%s4252_s6 + $0xc0] sm:$0xf] }
 0x12b   : > { %1218 = vmatmul.bf16.gmra.mxu1 %v4977_v12  ;;  %1663 = vmatmul.bf16.gmra.mxu2 %v5016_v17  ;;  %v5026_v16 = vadd.f32 %v2155_v53, %v1947_v42  ;;  %v5044_v53 = vld [vmem:[%s4252_s6 + $0xb8] sm:$0xf]  ;;  %5463 = vst [vmem:[#allocation34_spill] sm:$0xff] %v5089_v46 }
 0x12c   : > { %1919 = vmatmul.bf16.gmra.mxu3 %v5029_v28  ;;  %v1007_v40 = vshll.u32 %v5044_v53, 16  ;;  %v1011_v15 = vshrl.u32 %v5044_v53, 16  ;;  %v5073_v23 = vpack.c.b16 %v1067_v60, %v1066_v2 }
 0x12d   : > { %5460 = vst [vmem:[#allocation31_spill] sm:$0xff] %v5026_v16  ;;  %2197 = vmatmul.bf16.gmra.mxu0 %v5020_v34 }
 0x12e   : > { %v1624_v43 = vpop.f32.mrf.mxu2 }
 0x12f   : > { %v1692_v59 = vadd.f32 %v1624_v43, %v1247_v31  ;;  %v1880_v56 = vpop.f32.mrf.mxu3  ;;  %v1009_v31 = vrot.slane %v1007_v40, 5  ;;  %v1013_v43 = vrot.slane %v1011_v15, 4 }
 0x130   : > { %v1181_v61 = vpop.f32.mrf.mxu1 }
 0x131   : > { %v1948_v44 = vadd.f32 %v1880_v56, %v1692_v59  ;;  %v1248_v59 = vadd.f32 %v1181_v61, %v4644_v39  ;;  %v5068_v56 = vld [vmem:[%s4252_s6 + $0xbc] sm:$0x1]  ;;  %v1014_v9 = vor.u32 %v1013_v43, %v1009_v31  ;;  %v1456_v61 = vrot.slane %v1454_v5, 4 }
 0x132   : > { %v2160_v42 = vpop.f32.mrf.mxu0  ;;  %v1017_v55 = vshll.u32 %v5068_v56, 16  ;;  %v2037_v43 = vshrl.u32 %v5089_v46, 16 }
 0x133   : > { %v5064_v33 = vadd.f32 %v2158_v19, %v1948_v44  ;;  %v1004_v19 = vor.u32 %v1003_v6, %v1000_v35  ;;  %v1457_v44 = vrot.slane %v5014_v18, 5 }
 0x134   : > { %v1019_v58 = vrot.slane %v1017_v55, 5 }
 0x135   : > { %v1458_v6 = vsel %vm4435_vm5, %v1456_v61, %v1457_v44  ;;  %v2039_v44 = vrot.slane %v2037_v43, 4 }
 0x136   : > { %v1626_v16 = vpop.f32.mrf.mxu2 }
 0x137   : > { %v1693_v14 = vadd.f32 %v1626_v16, %v1248_v59  ;;  %v1882_v28 = vpop.f32.mrf.mxu3  ;;  %v3693_v16 = vrot.slane %v4986_v45, 9  ;;  %v5092_v45 = vld [vmem:[%s4252_s6 + $0xc4] sm:$0xf] }
 0x138   : > { %v1184_v26 = vpop.f32.mrf.mxu1 }
 0x139   : > { %v1949_v40 = vadd.f32 %v1882_v28, %v1693_v14  ;;  %v1005_v14 = vrot.slane %v1004_v19, 4  ;;  %v1015_v28 = vrot.slane %v1014_v9, 4  ;;  %v1249_v25 = vadd.f32 %v1184_v26, %v4673_v27 }
 0x13a   : > { %v2163_v39 = vpop.f32.mrf.mxu0  ;;  %v1455_v60 = vsel %vm4435_vm5, %v3693_v16, %v1454_v5  ;;  %v2040_v19 = vshll.u32 %v5089_v46, 16  ;;  %v2046_v9 = vshll.u32 %v5092_v45, 16  ;;  %v2050_v5 = vshrl.u32 %v5092_v45, 16 }
 0x13b   : > { %1223 = vmatmul.bf16.gmra.mxu1 %v5020_v34  ;;  %1668 = vmatmul.bf16.gmra.mxu2 %v5070_v51  ;;  %v5079_v15 = vadd.f32 %v2160_v42, %v1949_v40  ;;  %v1010_v18 = vsel %vm4430_vm4, %v1005_v14, %v1009_v31  ;;  %v1020_v27 = vsel %vm4430_vm4, %v1015_v28, %v1019_v58  ;;  %v1511_v55 = vunpack.c.l.b16 %v1455_v60 }
 0x13c   : > { %1924 = vmatmul.bf16.gmra.mxu3 %v5082_v8  ;;  %v1512_v40 = vunpack.c.l.b16 %v1458_v6  ;;  %v1068_v61 = vunpack.c.l.b16 %v1010_v18  ;;  %v1069_v31 = vunpack.c.l.b16 %v1020_v27  ;;  %v2042_v28 = vrot.slane %v2040_v19, 5  ;;  %v5123_v19 = vld [vmem:[%s4252_s6 + $0xb4] sm:$0xff] }
 0x13d   : > { %5462 = vst [vmem:[#allocation33_spill] sm:$0xff] %v5079_v15  ;;  %2202 = vmatmul.bf16.gmra.mxu0 %v5073_v23  ;;  %v2048_v58 = vrot.slane %v2046_v9, 5  ;;  %v1464_v9 = vrot.slane %v5068_v56, 5 }
 0x13e   : > { %v1629_v32 = vpop.f32.mrf.mxu2  ;;  %v5112_v15 = vpack.c.b16 %v1512_v40, %v1511_v55  ;;  %v5114_v6 = vpack.c.b16 %v1069_v31, %v1068_v61  ;;  %v2043_v43 = vor.u32 %v2042_v28, %v2039_v44 }
 0x13f   : > { %v1694_v42 = vadd.f32 %v1629_v32, %v1249_v25  ;;  %v1885_v2 = vpop.f32.mrf.mxu3  ;;  %v2052_v25 = vrot.slane %v2050_v5, 4 }
 0x140   : > { %v1186_v35 = vpop.f32.mrf.mxu1  ;;  %v2044_v55 = vrot.slane %v2043_v43, 4 }
 0x141   : > { %v1950_v59 = vadd.f32 %v1885_v2, %v1694_v42  ;;  %v1250_v14 = vadd.f32 %v1186_v35, %v4704_v1  ;;  %v5110_v42 = vld [vmem:[%s4252_s6 + $0xc8] sm:$0x1]  ;;  %v2053_v1 = vor.u32 %v2052_v25, %v2048_v58 }
 0x142   : > { %v2165_v26 = vpop.f32.mrf.mxu0  ;;  %v2056_v35 = vshll.u32 %v5110_v42, 16  ;;  %v2049_v56 = vsel %vm4430_vm4, %v2044_v55, %v2048_v58 }
 0x143   : > { %v5106_v16 = vadd.f32 %v2163_v39, %v1950_v59  ;;  %v1461_v39 = vrot.slane %v5044_v53, 5  ;;  %v3694_v53 = vrot.slane %v5041_v22, 9  ;;  %v2054_v40 = vrot.slane %v2053_v1, 4 }
 0x144   : > { %v2058_v61 = vrot.slane %v2056_v35, 5  ;;  %v2077_v43 = vunpack.c.l.b16 %v2049_v56 }
 0x145   : > { %v1462_v28 = vsel %vm4435_vm5, %v3694_v53, %v1461_v39 }
 0x146   : > { %v1631_v32 = vpop.f32.mrf.mxu2 }
 0x147   : > { %v1695_v2 = vadd.f32 %v1631_v32, %v1250_v14  ;;  %v1887_v46 = vpop.f32.mrf.mxu3 }
 0x148   : > { %v1189_v60 = vpop.f32.mrf.mxu1 }
 0x149   : > { %v1951_v18 = vadd.f32 %v1887_v46, %v1695_v2  ;;  %v1463_v46 = vrot.slane %v1461_v39, 4  ;;  %v1251_v5 = vadd.f32 %v1189_v60, %v4723_v13  ;;  %v2059_v13 = vsel %vm4430_vm4, %v2054_v40, %v2058_v61 }
 0x14a   : > { %v2168_v27 = vpop.f32.mrf.mxu0  ;;  %v1513_v2 = vunpack.c.l.b16 %v1462_v28  ;;  %v2078_v1 = vunpack.c.l.b16 %v2059_v13 }
 0x14b   : > { %1228 = vmatmul.bf16.gmra.mxu1 %v5073_v23  ;;  %1673 = vmatmul.bf16.gmra.mxu2 %v5112_v15  ;;  %v5120_v59 = vadd.f32 %v2165_v26, %v1951_v18  ;;  %v1465_v25 = vsel %vm4435_vm5, %v1463_v46, %v1464_v9 }
 0x14c   : > { %1929 = vmatmul.bf16.gmra.mxu3 %v5123_v19  ;;  %v1514_v60 = vunpack.c.l.b16 %v1465_v25  ;;  %v5146_v58 = vpack.c.b16 %v2078_v1, %v2077_v43 }
 0x14d   : > { %2207 = vmatmul.bf16.gmra.mxu0 %v5114_v6 }
 0x14e   : > { %v1634_v31 = vpop.f32.mrf.mxu2  ;;  %v5141_v9 = vpack.c.b16 %v1514_v60, %v1513_v2 }
 0x14f   : > { %v1696_v44 = vadd.f32 %v1634_v31, %v1251_v5  ;;  %v1890_v26 = vpop.f32.mrf.mxu3  ;;  %v5144_v31 = vld [vmem:[%s4252_s6 + $0xc0] sm:$0xff] }
 0x150   : > { %v1191_v14 = vpop.f32.mrf.mxu1 }
 0x151   : > { %v1952_v22 = vadd.f32 %v1890_v26, %v1696_v44  ;;  %v1252_v39 = vadd.f32 %v1191_v14, %v4759_v7 }
 0x152   : > { %v2170_v32 = vpop.f32.mrf.mxu0 }
 0x153   : > { %v5138_v18 = vadd.f32 %v2168_v27, %v1952_v22 }
 0x156   : > { %v1636_v35 = vpop.f32.mrf.mxu2 }
 0x157   : > { %v1697_v53 = vadd.f32 %v1636_v35, %v1252_v39  ;;  %v1892_v46 = vpop.f32.mrf.mxu3 }
 0x158   : > { %v1194_v5 = vpop.f32.mrf.mxu1 }
 0x159   : > { %v1953_v55 = vadd.f32 %v1892_v46, %v1697_v53  ;;  %v1253_v7 = vadd.f32 %v1194_v5, %v4783_v20  ;;  %v4174_v20 = vld [vmem:[%s4252_s6 + $0x18] sm:$0xff] }
 0x15a   : > { %v2173_v40 = vpop.f32.mrf.mxu0 }
 0x15b   : > { %1233 = vmatmul.bf16.gmra.mxu1 %v5114_v6  ;;  %1678 = vmatmul.bf16.gmra.mxu2 %v5141_v9  ;;  %v5150_v27 = vadd.f32 %v2170_v32, %v1953_v55 }
 0x15c   : > { %1934 = vmatmul.bf16.gmra.mxu3 %v5144_v31 }
 0x15d   : > { %2212 = vmatmul.bf16.gmra.mxu0 %v5146_v58 }
 0x15e   : > { %v1639_v61 = vpop.f32.mrf.mxu2 }
 0x15f   : > { %v1698_v44 = vadd.f32 %v1639_v61, %v1253_v7  ;;  %v1895_v26 = vpop.f32.mrf.mxu3 }
 0x160   : > { %v1196_v14 = vpop.f32.mrf.mxu1 }
 0x161   : > { %v1954_v28 = vadd.f32 %v1895_v26, %v1698_v44  ;;  %v1254_v56 = vadd.f32 %v1196_v14, %v4806_v30 }
 0x162   : > { %v2175_v25 = vpop.f32.mrf.mxu0 }
 0x163   : > { %v5155_v22 = vadd.f32 %v2173_v40, %v1954_v28 }
 0x166   : > { %v1641_v13 = vpop.f32.mrf.mxu2 }
 0x167   : > { %v1699_v32 = vadd.f32 %v1641_v13, %v1254_v56  ;;  %v1897_v2 = vpop.f32.mrf.mxu3 }
 0x168   : > { %v1199_v60 = vpop.f32.mrf.mxu1 }
 0x169   : > { %v1955_v43 = vadd.f32 %v1897_v2, %v1699_v32  ;;  %v1255_v35 = vadd.f32 %v1199_v60, %v4631_v57  ;;  %v4175_v57 = vld [vmem:[%s4252_s6 + $0x24] sm:$0xff] }
 0x16a   : > { %v2178_v1 = vpop.f32.mrf.mxu0 }
 0x16b   : > { %2399 = vmatmul.bf16.vlgmr.msra.gmra.mxu1 %v4501_v49  ;;  %2655 = vmatmul.bf16.vlgmr.msra.gmra.mxu2 %v4174_v20  ;;  %v5160_v39 = vadd.f32 %v2175_v25, %v1955_v43 }
 0x16c   : > { %2933 = vmatmul.bf16.vlgmr.msra.gmra.mxu3 %v4504_v52 }
 0x16d   : > { %3195 = vmatmul.bf16.vlgmr.msra.gmra.mxu0 %v4533_v63 }
 0x16e   : > { %v1644_v30 = vpop.f32.mrf.mxu2 }
 0x16f   : > { %v1700_v53 = vadd.f32 %v1644_v30, %v1255_v35  ;;  %v1900_v46 = vpop.f32.mrf.mxu3 }
 0x170   : > { %v1201_v5 = vpop.f32.mrf.mxu1 }
 0x171   : > { %v1956_v55 = vadd.f32 %v1900_v46, %v1700_v53  ;;  %v1256_v49 = vadd.f32 %v1201_v5, %v4663_v62 }
 0x172   : > { %v2180_v40 = vpop.f32.mrf.mxu0 }
 0x173   : > { %v5165_v7 = vadd.f32 %v2178_v1, %v1956_v55 }
 0x176   : > { %v1646_v61 = vpop.f32.mrf.mxu2 }
 0x177   : > { %v1701_v44 = vadd.f32 %v1646_v61, %v1256_v49  ;;  %v1902_v26 = vpop.f32.mrf.mxu3 }
 0x178   : > { %v1204_v14 = vpop.f32.mrf.mxu1 }
 0x179   : > { %v1957_v52 = vadd.f32 %v1902_v26, %v1701_v44  ;;  %v1257_v56 = vadd.f32 %v1204_v14, %v4692_v54  ;;  %v4176_v54 = vld [vmem:[%s4252_s6 + $0x30] sm:$0xff] }
 0x17a   : > { %v2183_v28 = vpop.f32.mrf.mxu0 }
 0x17b   : > { %2404 = vmatmul.bf16.gmra.mxu1 %v4533_v63  ;;  %2660 = vmatmul.bf16.gmra.mxu2 %v4175_v57  ;;  %v5170_v25 = vadd.f32 %v2180_v40, %v1957_v52 }
 0x17c   : > { %2938 = vmatmul.bf16.gmra.mxu3 %v4535_v21 }
 0x17d   : > { %3200 = vmatmul.bf16.gmra.mxu0 %v4577_v38 }
 0x17e   : > { %v1649_v62 = vpop.f32.mrf.mxu2 }
 0x17f   : > { %v1702_v13 = vadd.f32 %v1649_v62, %v1257_v56  ;;  %v1905_v32 = vpop.f32.mrf.mxu3 }
 0x180   : > { %v1206_v2 = vpop.f32.mrf.mxu1 }
 0x181   : > { %v1958_v60 = vadd.f32 %v1905_v32, %v1702_v13  ;;  %v1258_v63 = vadd.f32 %v1206_v2, %v4715_v10  ;;  %v5464_v32 = vld [vmem:[#allocation5_spill] sm:$0xff]  ;;  %v5465_v2 = vld [vmem:[#allocation15_spill] sm:$0xff] }
 0x182   : > { %v2185_v43 = vpop.f32.mrf.mxu0 }
 0x183   : > { %v5175_v1 = vadd.f32 %v2183_v28, %v1958_v60 }
 0x186   : > { %v1651_v20 = vpop.f32.mrf.mxu2 }
 0x187   : > { %v1703_v35 = vadd.f32 %v1651_v20, %v1258_v63  ;;  %v1907_v30 = vpop.f32.mrf.mxu3 }
 0x188   : > { %v1209_v53 = vpop.f32.mrf.mxu1 }
 0x189   : > { %v1959_v21 = vadd.f32 %v1907_v30, %v1703_v35  ;;  %v1259_v55 = vadd.f32 %v1209_v53, %v4747_v24  ;;  %v4177_v24 = vld [vmem:[%s4252_s6 + $0x3c] sm:$0xff] }
 0x18a   : > { %v2188_v46 = vpop.f32.mrf.mxu0 }
 0x18b   : > { %2409 = vmatmul.bf16.gmra.mxu1 %v4577_v38  ;;  %2665 = vmatmul.bf16.gmra.mxu2 %v4176_v54  ;;  %v5180_v5 = vadd.f32 %v2185_v43, %v1959_v21 }
 0x18c   : > { %2943 = vmatmul.bf16.gmra.mxu3 %v4580_v4 }
 0x18d   : > { %3205 = vmatmul.bf16.gmra.mxu0 %v4609_v36 }
 0x18e   : > { %v1654_v10 = vpop.f32.mrf.mxu2 }
 0x18f   : > { %v1704_v40 = vadd.f32 %v1654_v10, %v1259_v55  ;;  %v1910_v49 = vpop.f32.mrf.mxu3 }
 0x190   : > { %v1211_v61 = vpop.f32.mrf.mxu1 }
 0x191   : > { %v1960_v44 = vadd.f32 %v1910_v49, %v1704_v40  ;;  %v1260_v38 = vadd.f32 %v1211_v61, %v4776_v48  ;;  %v4178_v49 = vld [vmem:[%s4252_s6 + $0x48] sm:$0xff] }
 0x192   : > { %v2190_v26 = vpop.f32.mrf.mxu0 }
 0x193   : > { %v5185_v14 = vadd.f32 %v2188_v46, %v1960_v44  ;;  %v5467_v44 = vld [vmem:[#allocation6_spill] sm:$0xff] }
 0x196   : > { %v1656_v52 = vpop.f32.mrf.mxu2 }
 0x197   : > { %v1705_v28 = vadd.f32 %v1656_v52, %v1260_v38  ;;  %v1912_v57 = vpop.f32.mrf.mxu3  ;;  %v5469_v38 = vld [vmem:[#allocation3_spill] sm:$0xff] }
 0x198   : > { %v1214_v56 = vpop.f32.mrf.mxu1 }
 0x199   : > { %v1961_v4 = vadd.f32 %v1912_v57, %v1705_v28  ;;  %v1261_v60 = vadd.f32 %v1214_v56, %v5465_v2 }
 0x19a   : > { %v2193_v62 = vpop.f32.mrf.mxu0 }
 0x19b   : > { %2414 = vmatmul.bf16.gmra.mxu1 %v4609_v36  ;;  %2670 = vmatmul.bf16.gmra.mxu2 %v4177_v24  ;;  %v5190_v13 = vadd.f32 %v2190_v26, %v1961_v4  ;;  %v5466_v36 = vld [vmem:[#allocation17_spill] sm:$0xff] }
 0x19c   : > { %2948 = vmatmul.bf16.gmra.mxu3 %v4614_v41  ;;  %v5468_v26 = vld [vmem:[#allocation9_spill] sm:$0xff] }
 0x19d   : > { %3210 = vmatmul.bf16.gmra.mxu0 %v5464_v32 }
 0x19e   : > { %v1659_v48 = vpop.f32.mrf.mxu2 }
 0x19f   : > { %v1706_v43 = vadd.f32 %v1659_v48, %v1261_v60  ;;  %v1915_v63 = vpop.f32.mrf.mxu3 }
 0x1a0   : > { %v1216_v20 = vpop.f32.mrf.mxu1 }
 0x1a1   : > { %v1962_v35 = vadd.f32 %v1915_v63, %v1706_v43  ;;  %v1262_v21 = vadd.f32 %v1216_v20, %v5466_v36  ;;  %v4179_v36 = vld [vmem:[%s4252_s6 + $0x54] sm:$0xff] }
 0x1a2   : > { %v2195_v30 = vpop.f32.mrf.mxu0 }
 0x1a3   : > { %v5195_v53 = vadd.f32 %v2193_v62, %v1962_v35 }
 0x1a6   : > { %v1661_v46 = vpop.f32.mrf.mxu2 }
 0x1a7   : > { %v1707_v54 = vadd.f32 %v1661_v46, %v1262_v21  ;;  %v1917_v55 = vpop.f32.mrf.mxu3  ;;  %v5471_v46 = vld [vmem:[#allocation10_spill] sm:$0xff] }
 0x1a8   : > { %v1219_v10 = vpop.f32.mrf.mxu1 }
 0x1a9   : > { %v1963_v41 = vadd.f32 %v1917_v55, %v1707_v54  ;;  %v1263_v52 = vadd.f32 %v1219_v10, %v5469_v38  ;;  %v5472_v54 = vld [vmem:[#allocation13_spill] sm:$0xff]  ;;  %v5473_v55 = vld [vmem:[#allocation7_spill] sm:$0xff] }
 0x1aa   : > { %v2198_v40 = vpop.f32.mrf.mxu0 }
 0x1ab   : > { %2419 = vmatmul.bf16.gmra.mxu1 %v5464_v32  ;;  %2675 = vmatmul.bf16.gmra.mxu2 %v4178_v49  ;;  %v5200_v61 = vadd.f32 %v2195_v30, %v1963_v41  ;;  %v5470_v32 = vld [vmem:[#allocation4_spill] sm:$0xff] }
 0x1ac   : > { %2953 = vmatmul.bf16.gmra.mxu3 %v5467_v44 }
 0x1ad   : > { %3215 = vmatmul.bf16.gmra.mxu0 %v5468_v26 }
 0x1ae   : > { %v1664_v28 = vpop.f32.mrf.mxu2 }
 0x1af   : > { %v1708_v57 = vadd.f32 %v1664_v28, %v1263_v52  ;;  %v1920_v56 = vpop.f32.mrf.mxu3 }
 0x1b0   : > { %v1221_v4 = vpop.f32.mrf.mxu1 }
 0x1b1   : > { %v1964_v62 = vadd.f32 %v1920_v56, %v1708_v57  ;;  %v1264_v60 = vadd.f32 %v1221_v4, %v5470_v32 }
 0x1b2   : > { %v2200_v24 = vpop.f32.mrf.mxu0 }
 0x1b3   : > { %v5205_v2 = vadd.f32 %v2198_v40, %v1964_v62 }
 0x1b6   : > { %v1666_v48 = vpop.f32.mrf.mxu2 }
 0x1b7   : > { %v1709_v43 = vadd.f32 %v1666_v48, %v1264_v60  ;;  %v1922_v63 = vpop.f32.mrf.mxu3  ;;  %v4180_v48 = vld [vmem:[%s4252_s6 + $0x60] sm:$0xff] }
 0x1b8   : > { %v1224_v20 = vpop.f32.mrf.mxu1 }
 0x1b9   : > { %v1965_v35 = vadd.f32 %v1922_v63, %v1709_v43  ;;  %v1265_v10 = vadd.f32 %v1224_v20, %v5473_v55  ;;  %v5475_v63 = vld [vmem:[#allocation14_spill] sm:$0xff]  ;;  %v5476_v20 = vld [vmem:[#allocation19_spill] sm:$0xff] }
 0x1ba   : > { %v2203_v30 = vpop.f32.mrf.mxu0 }
 0x1bb   : > { %2424 = vmatmul.bf16.gmra.mxu1 %v5468_v26  ;;  %2680 = vmatmul.bf16.gmra.mxu2 %v4179_v36  ;;  %v5210_v21 = vadd.f32 %v2200_v24, %v1965_v35  ;;  %v5474_v26 = vld [vmem:[#allocation8_spill] sm:$0xff]  ;;  %v5477_v35 = vld [vmem:[#allocation11_spill] sm:$0xff] }
 0x1bc   : > { %2958 = vmatmul.bf16.gmra.mxu3 %v5471_v46 }
 0x1bd   : > { %3220 = vmatmul.bf16.gmra.mxu0 %v5472_v54 }
 0x1be   : > { %v1669_v41 = vpop.f32.mrf.mxu2 }
 0x1bf   : > { %v1710_v40 = vadd.f32 %v1669_v41, %v1265_v10  ;;  %v1925_v49 = vpop.f32.mrf.mxu3 }
 0x1c0   : > { %v1226_v44 = vpop.f32.mrf.mxu1 }
 0x1c1   : > { %v1966_v38 = vadd.f32 %v1925_v49, %v1710_v40  ;;  %v1266_v57 = vadd.f32 %v1226_v44, %v5474_v26 }
 0x1c2   : > { %v2205_v52 = vpop.f32.mrf.mxu0 }
 0x1c3   : > { %v5215_v28 = vadd.f32 %v2203_v30, %v1966_v38 }
 0x1c6   : > { %v1671_v56 = vpop.f32.mrf.mxu2 }
 0x1c7   : > { %v1711_v4 = vadd.f32 %v1671_v56, %v1266_v57  ;;  %v1927_v62 = vpop.f32.mrf.mxu3 }
 0x1c8   : > { %v1229_v24 = vpop.f32.mrf.mxu1 }
 0x1c9   : > { %v1967_v32 = vadd.f32 %v1927_v62, %v1711_v4  ;;  %v1267_v30 = vadd.f32 %v1229_v24, %v5477_v35  ;;  %v4181_v62 = vld [vmem:[%s4252_s6 + $0x6c] sm:$0xff] }
 0x1ca   : > { %v2208_v60 = vpop.f32.mrf.mxu0 }
 0x1cb   : > { %2429 = vmatmul.bf16.gmra.mxu1 %v5472_v54  ;;  %2685 = vmatmul.bf16.gmra.mxu2 %v4180_v48  ;;  %v5220_v43 = vadd.f32 %v2205_v52, %v1967_v32  ;;  %v5478_v54 = vld [vmem:[#allocation12_spill] sm:$0xff]  ;;  %v5480_v48 = vld [vmem:[#allocation22_spill] sm:$0xff] }
 0x1cc   : > { %2963 = vmatmul.bf16.gmra.mxu3 %v5475_v63  ;;  %v5479_v32 = vld [vmem:[#allocation20_spill] sm:$0xff] }
 0x1cd   : > { %3225 = vmatmul.bf16.gmra.mxu0 %v5476_v20 }
 0x1ce   : > { %v1674_v36 = vpop.f32.mrf.mxu2 }
 0x1cf   : > { %v1712_v46 = vadd.f32 %v1674_v36, %v1267_v30  ;;  %v1930_v55 = vpop.f32.mrf.mxu3 }
 0x1d0   : > { %v1231_v10 = vpop.f32.mrf.mxu1 }
 0x1d1   : > { %v1968_v41 = vadd.f32 %v1930_v55, %v1712_v46  ;;  %v1268_v44 = vadd.f32 %v1231_v10, %v5478_v54  ;;  %v5482_v54 = vld [vmem:[#allocation18_spill] sm:$0xff] }
 0x1d2   : > { %v2210_v40 = vpop.f32.mrf.mxu0 }
 0x1d3   : > { %v5225_v49 = vadd.f32 %v2208_v60, %v1968_v41  ;;  %v5481_v60 = vld [vmem:[#allocation16_spill] sm:$0xff] }
 0x1d6   : > { %v1676_v38 = vpop.f32.mrf.mxu2 }
 0x1d7   : > { %v1713_v52 = vadd.f32 %v1676_v38, %v1268_v44  ;;  %v1932_v26 = vpop.f32.mrf.mxu3 }
 0x1d8   : > { %v1234_v57 = vpop.f32.mrf.mxu1 }
 0x1d9   : > { %v1969_v56 = vadd.f32 %v1932_v26, %v1713_v52  ;;  %v1269_v63 = vadd.f32 %v1234_v57, %v5481_v60  ;;  %v5483_v57 = vld [vmem:[#allocation24_spill] sm:$0xff] }
 0x1da   : > { %v2213_v4 = vpop.f32.mrf.mxu0 }
 0x1db   : > { %2434 = vmatmul.bf16.gmra.mxu1 %v5476_v20  ;;  %2690 = vmatmul.bf16.gmra.mxu2 %v4181_v62  ;;  %v5230_v24 = vadd.f32 %v2210_v40, %v1969_v56 }
 0x1dc   : > { %2968 = vmatmul.bf16.gmra.mxu3 %v5479_v32 }
 0x1dd   : > { %3230 = vmatmul.bf16.gmra.mxu0 %v5480_v48 }
 0x1de   : > { %v1679_v35 = vpop.f32.mrf.mxu2 }
 0x1df   : > { %v1714_v30 = vadd.f32 %v1679_v35, %v1269_v63  ;;  %v1935_v36 = vpop.f32.mrf.mxu3 }
 0x1e0   : > { %v1236_v46 = vpop.f32.mrf.mxu1 }
 0x1e1   : > { %v1970_v55 = vadd.f32 %v1935_v36, %v1714_v30  ;;  %v1270_v20 = vadd.f32 %v1236_v46, %v5482_v54  ;;  %v5248_v46 = vld [vmem:[%s5408_s2] ss:$0 sm:$0xff] }
 0x1e2   : > { %v2215_v10 = vpop.f32.mrf.mxu0 }
 0x1e3   : > { %v5235_v41 = vadd.f32 %v2213_v4, %v1970_v55  ;;  %v5484_v4 = vld [vmem:[#allocation21_spill] sm:$0xff] }
 0x1e6   : > { %v1681_v44 = vpop.f32.mrf.mxu2 }
 0x1e7   : > { %v1715_v38 = vadd.f32 %v1681_v44, %v1270_v20  ;;  %v1937_v40 = vpop.f32.mrf.mxu3 }
 0x1e8   : > { %v2400_v52 = vpop.f32.mrf.mxu1 }
 0x1e9   : > { %v1971_v26 = vadd.f32 %v1937_v40, %v1715_v38  ;;  %v2480_v32 = vadd.f32 %v2400_v52, %v5484_v4 }
 0x1ea   : > { %v3196_v56 = vpop.f32.mrf.mxu0 }
 0x1eb   : > { %2439 = vmatmul.bf16.gmra.mxu1 %v5480_v48  ;;  %2695 = vmatmul.bf16.gmra.mxu2 %v5483_v57  ;;  %v5240_v62 = vadd.f32 %v2215_v10, %v1971_v26 }
 0x1ec   : > { %2973 = vmatmul.bf16.gmra.mxu3 %v4882_v50  ;;  %v5485_v50 = vld [vmem:[#allocation23_spill] sm:$0xff] }
 0x1ed   : > { %3235 = vmatmul.bf16.gmra.mxu0 %v4920_v11 }
 0x1ee   : > { %v2656_v60 = vpop.f32.mrf.mxu2 }
 0x1ef   : > { %v2736_v63 = vadd.f32 %v2656_v60, %v2480_v32  ;;  %v2934_v35 = vpop.f32.mrf.mxu3  ;;  %v5486_v32 = vld [vmem:[#allocation25_spill] sm:$0xff] }
 0x1f0   : > { %v2402_v30 = vpop.f32.mrf.mxu1 }
 0x1f1   : > { %v3014_v36 = vadd.f32 %v2934_v35, %v2736_v63  ;;  %v2481_v54 = vadd.f32 %v2402_v30, %v5485_v50  ;;  %v5487_v50 = vld [vmem:[#allocation26_spill] sm:$0xff] }
 0x1f2   : > { %v3198_v48 = vpop.f32.mrf.mxu0 }
 0x1f3   : > { %v3276_v55 = vadd.f32 %v3196_v56, %v3014_v36 }
 0x1f5   : > { %v3376_v10 = vadd.f32 %v5248_v46, %v3276_v55 }
 0x1f6   : > { %v2658_v20 = vpop.f32.mrf.mxu2 }
 0x1f7   : > { %v3408_v44 = vmax.f32 %v3376_v10, 0.0  ;;  %v2737_v38 = vadd.f32 %v2658_v20, %v2481_v54  ;;  %v2936_v40 = vpop.f32.mrf.mxu3 }
 0x1f8   : > { %v2405_v52 = vpop.f32.mrf.mxu1 }
 0x1f9   : > { %3440 = vst [vmem:[%s5256_s22] sm:$0xff] %v3408_v44  ;;  %v3015_v26 = vadd.f32 %v2936_v40, %v2737_v38  ;;  %v2482_v60 = vadd.f32 %v2405_v52, %v5486_v32  ;;  %v5489_v32 = vld [vmem:[#allocation27_spill] sm:$0xff] }
 0x1fa   : > { %v3201_v57 = vpop.f32.mrf.mxu0 }
 0x1fb   : > { %v3277_v56 = vadd.f32 %v3198_v48, %v3015_v26  ;;  %2444 = vmatmul.bf16.gmra.mxu1 %v4920_v11  ;;  %2700 = vmatmul.bf16.gmra.mxu2 %v4934_v47 }
 0x1fc   : > { %2978 = vmatmul.bf16.gmra.mxu3 %v4923_v3 }
 0x1fd   : > { %3240 = vmatmul.bf16.gmra.mxu0 %v4975_v0  ;;  %v3377_v4 = vadd.f32 %v5248_v46, %v3277_v56 }
 0x1fe   : > { %v2661_v63 = vpop.f32.mrf.mxu2 }
 0x1ff   : > { %v3409_v35 = vmax.f32 %v3377_v4, 0.0  ;;  %v2738_v30 = vadd.f32 %v2661_v63, %v2482_v60  ;;  %v2939_v36 = vpop.f32.mrf.mxu3  ;;  %v5488_v4 = vld [vmem:[#allocation29_spill] sm:$0xff] }
 0x200   : > { %v2407_v55 = vpop.f32.mrf.mxu1 }
 0x201   : > { %3441 = vst [vmem:[%s5256_s22 + $0x8] sm:$0xff] %v3409_v35  ;;  %v3016_v48 = vadd.f32 %v2939_v36, %v2738_v30  ;;  %v2483_v3 = vadd.f32 %v2407_v55, %v5487_v50 }
 0x202   : > { %v3203_v10 = vpop.f32.mrf.mxu0 }
 0x203   : > { %v3278_v11 = vadd.f32 %v3201_v57, %v3016_v48 }
 0x205   : > { %v3378_v47 = vadd.f32 %v5248_v46, %v3278_v11 }
 0x206   : > { %v2663_v54 = vpop.f32.mrf.mxu2 }
 0x207   : > { %v3410_v20 = vmax.f32 %v3378_v47, 0.0  ;;  %v2739_v44 = vadd.f32 %v2663_v54, %v2483_v3  ;;  %v2941_v38 = vpop.f32.mrf.mxu3  ;;  %v5490_v47 = vld [vmem:[#allocation28_spill] sm:$0xff] }
 0x208   : > { %v2410_v40 = vpop.f32.mrf.mxu1 }
 0x209   : > { %3442 = vst [vmem:[%s5256_s22 + $0x10] sm:$0xff] %v3410_v20  ;;  %v3017_v52 = vadd.f32 %v2941_v38, %v2739_v44  ;;  %v2484_v60 = vadd.f32 %v2410_v40, %v5489_v32 }
 0x20a   : > { %v3206_v26 = vpop.f32.mrf.mxu0 }
 0x20b   : > { %v3279_v56 = vadd.f32 %v3203_v10, %v3017_v52  ;;  %2449 = vmatmul.bf16.gmra.mxu1 %v4975_v0  ;;  %2705 = vmatmul.bf16.gmra.mxu2 %v5488_v4  ;;  %v5492_v4 = vld [vmem:[#allocation30_spill] sm:$0xff] }
 0x20c   : > { %2983 = vmatmul.bf16.gmra.mxu3 %v4977_v12 }
 0x20d   : > { %3245 = vmatmul.bf16.gmra.mxu0 %v5016_v17  ;;  %v3379_v57 = vadd.f32 %v5248_v46, %v3279_v56  ;;  %v5491_v56 = vld [vmem:[#allocation32_spill] sm:$0xff] }
 0x20e   : > { %v2666_v63 = vpop.f32.mrf.mxu2 }
 0x20f   : > { %v3411_v35 = vmax.f32 %v3379_v57, 0.0  ;;  %v2740_v30 = vadd.f32 %v2666_v63, %v2484_v60  ;;  %v2944_v36 = vpop.f32.mrf.mxu3 }
 0x210   : > { %v2412_v55 = vpop.f32.mrf.mxu1 }
 0x211   : > { %3443 = vst [vmem:[%s5256_s22 + $0x18] sm:$0xff] %v3411_v35  ;;  %v3018_v48 = vadd.f32 %v2944_v36, %v2740_v30  ;;  %v2485_v12 = vadd.f32 %v2412_v55, %v5490_v47 }
 0x212   : > { %v3208_v10 = vpop.f32.mrf.mxu0 }
 0x213   : > { %v3280_v0 = vadd.f32 %v3206_v26, %v3018_v48 }
 0x215   : > { %v3380_v11 = vadd.f32 %v5248_v46, %v3280_v0 }
 0x216   : > { %v2668_v50 = vpop.f32.mrf.mxu2 }
 0x217   : > { %v3412_v3 = vmax.f32 %v3380_v11, 0.0  ;;  %v2741_v54 = vadd.f32 %v2668_v50, %v2485_v12  ;;  %v2946_v20 = vpop.f32.mrf.mxu3 }
 0x218   : > { %v2415_v44 = vpop.f32.mrf.mxu1 }
 0x219   : > { %3444 = vst [vmem:[%s5256_s22 + $0x20] sm:$0xff] %v3412_v3  ;;  %v3019_v38 = vadd.f32 %v2946_v20, %v2741_v54  ;;  %v2486_v57 = vadd.f32 %v2415_v44, %v5492_v4 }
 0x21a   : > { %v3211_v40 = vpop.f32.mrf.mxu0 }
 0x21b   : > { %v3281_v52 = vadd.f32 %v3208_v10, %v3019_v38  ;;  %2454 = vmatmul.bf16.gmra.mxu1 %v5016_v17  ;;  %2710 = vmatmul.bf16.gmra.mxu2 %v5491_v56  ;;  %v5493_v10 = vld [vmem:[#allocation31_spill] sm:$0xff] }
 0x21c   : > { %2988 = vmatmul.bf16.gmra.mxu3 %v5020_v34 }
 0x21d   : > { %3250 = vmatmul.bf16.gmra.mxu0 %v5070_v51  ;;  %v3381_v26 = vadd.f32 %v5248_v46, %v3281_v52 }
 0x21e   : > { %v2671_v32 = vpop.f32.mrf.mxu2 }
 0x21f   : > { %v3413_v60 = vmax.f32 %v3381_v26, 0.0  ;;  %v2742_v63 = vadd.f32 %v2671_v32, %v2486_v57  ;;  %v2949_v35 = vpop.f32.mrf.mxu3 }
 0x220   : > { %v2417_v30 = vpop.f32.mrf.mxu1 }
 0x221   : > { %3445 = vst [vmem:[%s5256_s22 + $0x28] sm:$0xff] %v3413_v60  ;;  %v3020_v36 = vadd.f32 %v2949_v35, %v2742_v63  ;;  %v2487_v34 = vadd.f32 %v2417_v30, %v5493_v10  ;;  %v5494_v60 = vld [vmem:[#allocation33_spill] sm:$0xff] }
 0x222   : > { %v3213_v55 = vpop.f32.mrf.mxu0 }
 0x223   : > { %v3282_v17 = vadd.f32 %v3211_v40, %v3020_v36 }
 0x225   : > { %v3382_v48 = vadd.f32 %v5248_v46, %v3282_v17 }
 0x226   : > { %v2673_v0 = vpop.f32.mrf.mxu2 }
 0x227   : > { %v3414_v11 = vmax.f32 %v3382_v48, 0.0  ;;  %v2743_v47 = vadd.f32 %v2673_v0, %v2487_v34  ;;  %v2951_v12 = vpop.f32.mrf.mxu3  ;;  %v5495_v34 = vld [vmem:[#allocation34_spill] sm:$0xff] }
 0x228   : > { %v2420_v50 = vpop.f32.mrf.mxu1  ;;  %v3843_v0 = vrot.slane %v5495_v34, 9 }
 0x229   : > { %3446 = vst [vmem:[%s5256_s22 + $0x30] sm:$0xff] %v3414_v11  ;;  %v3021_v3 = vadd.f32 %v2951_v12, %v2743_v47  ;;  %v2488_v38 = vadd.f32 %v2420_v50, %v5064_v33  ;;  %v2317_v33 = vrot.slane %v5092_v45, 5  ;;  %v2320_v47 = vrot.slane %v5110_v42, 5  ;;  %v5309_v50 = vld [vmem:[%s4252_s6 + $0xcc] sm:$0xf] }
 0x22a   : > { %v3216_v54 = vpop.f32.mrf.mxu0 }
 0x22b   : > { %v3283_v20 = vadd.f32 %v3213_v55, %v3021_v3  ;;  %2459 = vmatmul.bf16.gmra.mxu1 %v5070_v51  ;;  %2715 = vmatmul.bf16.gmra.mxu2 %v5082_v8  ;;  %v2319_v11 = vrot.slane %v2317_v33, 4  ;;  %v5312_v3 = vld [vmem:[%s4252_s6 + $0xd0] sm:$0xf]  ;;  %v2318_v42 = vsel %vm4435_vm5, %v3843_v0, %v2317_v33 }
 0x22c   : > { %2993 = vmatmul.bf16.gmra.mxu3 %v5073_v23 }
 0x22d   : > { %3255 = vmatmul.bf16.gmra.mxu0 %v5112_v15  ;;  %v3383_v44 = vadd.f32 %v5248_v46, %v3283_v20 }
 0x22e   : > { %v2676_v40 = vpop.f32.mrf.mxu2 }
 0x22f   : > { %v3415_v52 = vmax.f32 %v3383_v44, 0.0  ;;  %v2744_v56 = vadd.f32 %v2676_v40, %v2488_v38  ;;  %v2954_v26 = vpop.f32.mrf.mxu3  ;;  %v2833_v38 = vshrl.u32 %v5309_v50, 16  ;;  %v2842_v40 = vshll.u32 %v5312_v3, 16 }
 0x230   : > { %v2422_v4 = vpop.f32.mrf.mxu1 }
 0x231   : > { %3447 = vst [vmem:[%s5256_s22 + $0x38] sm:$0xff] %v3415_v52  ;;  %v3022_v57 = vadd.f32 %v2954_v26, %v2744_v56  ;;  %v2489_v23 = vadd.f32 %v2422_v4, %v5494_v60  ;;  %v2846_v52 = vshrl.u32 %v5312_v3, 16  ;;  %v2844_v60 = vrot.slane %v2842_v40, 5 }
 0x232   : > { %v3218_v32 = vpop.f32.mrf.mxu0 }
 0x233   : > { %v3284_v51 = vadd.f32 %v3216_v54, %v3022_v57  ;;  %v2339_v57 = vunpack.c.l.b16 %v2318_v42 }
 0x235   : > { %v3384_v8 = vadd.f32 %v5248_v46, %v3284_v51  ;;  %v2835_v51 = vrot.slane %v2833_v38, 4 }
 0x236   : > { %v2678_v63 = vpop.f32.mrf.mxu2 }
 0x237   : > { %v3416_v35 = vmax.f32 %v3384_v8, 0.0  ;;  %v2745_v30 = vadd.f32 %v2678_v63, %v2489_v23  ;;  %v2956_v36 = vpop.f32.mrf.mxu3  ;;  %v2848_v23 = vrot.slane %v2846_v52, 4 }
 0x238   : > { %v2425_v55 = vpop.f32.mrf.mxu1 }
 0x239   : > { %3448 = vst [vmem:[%s5256_s22 + $0x40] sm:$0xff] %v3416_v35  ;;  %v3023_v17 = vadd.f32 %v2956_v36, %v2745_v30  ;;  %v2490_v12 = vadd.f32 %v2425_v55, %v5106_v16  ;;  %v2836_v16 = vshll.u32 %v5309_v50, 16  ;;  %v224_v30 = vld [vmem:[%s4252_s6 + $0xd4] sm:$0x1] }
 0x23a   : > { %v3221_v48 = vpop.f32.mrf.mxu0 }
 0x23b   : > { %v3285_v10 = vadd.f32 %v3218_v32, %v3023_v17  ;;  %2464 = vmatmul.bf16.gmra.mxu1 %v5112_v15  ;;  %2720 = vmatmul.bf16.gmra.mxu2 %v5123_v19  ;;  %v2838_v8 = vrot.slane %v2836_v16, 5 }
 0x23c   : > { %2998 = vmatmul.bf16.gmra.mxu3 %v5114_v6  ;;  %v2321_v6 = vsel %vm4435_vm5, %v2319_v11, %v2320_v47  ;;  %v2852_v11 = vshll.u32 %v224_v30, 16 }
 0x23d   : > { %3260 = vmatmul.bf16.gmra.mxu0 %v5141_v9  ;;  %v3385_v45 = vadd.f32 %v5248_v46, %v3285_v10  ;;  %v2340_v32 = vunpack.c.l.b16 %v2321_v6  ;;  %v2839_v0 = vor.u32 %v2838_v8, %v2835_v51 }
 0x23e   : > { %v2681_v15 = vpop.f32.mrf.mxu2 }
 0x23f   : > { %v3417_v19 = vmax.f32 %v3385_v45, 0.0  ;;  %v2746_v54 = vadd.f32 %v2681_v15, %v2490_v12  ;;  %v2959_v20 = vpop.f32.mrf.mxu3  ;;  %v2341_v34 = vpack.c.b16 %v2340_v32, %v2339_v57  ;;  %v3113_v12 = vrot.slane %v5312_v3, 5 }
 0x240   : > { %v2427_v44 = vpop.f32.mrf.mxu1  ;;  %v3116_v3 = vrot.slane %v224_v30, 5 }
 0x241   : > { %3449 = vst [vmem:[%s5256_s22 + $0x48] sm:$0xff] %v3417_v19  ;;  %v3024_v56 = vadd.f32 %v2959_v20, %v2746_v54  ;;  %v2491_v35 = vadd.f32 %v2427_v44, %v5120_v59  ;;  %v2840_v59 = vrot.slane %v2839_v0, 4  ;;  %v2854_v54 = vrot.slane %v2852_v11, 5 }
 0x242   : > { %v3223_v26 = vpop.f32.mrf.mxu0  ;;  %v3992_v20 = vrot.slane %v5309_v50, 9  ;;  %v3115_v44 = vrot.slane %v3113_v12, 4 }
 0x243   : > { %v3286_v4 = vadd.f32 %v3221_v48, %v3024_v56  ;;  %v2849_v48 = vor.u32 %v2848_v23, %v2844_v60 }
 0x245   : > { %v3386_v63 = vadd.f32 %v5248_v46, %v3286_v4  ;;  %v2850_v19 = vrot.slane %v2849_v48, 4 }
 0x246   : > { %v2683_v36 = vpop.f32.mrf.mxu2 }
 0x247   : > { %v3418_v33 = vmax.f32 %v3386_v63, 0.0  ;;  %v2747_v55 = vadd.f32 %v2683_v36, %v2491_v35  ;;  %v2961_v17 = vpop.f32.mrf.mxu3  ;;  %v2855_v50 = vsel %vm4430_vm4, %v2850_v19, %v2854_v54  ;;  %v4061_v36 = vld [vmem:[%s4252_s6 + $0xcc] sm:$0xff] }
 0x248   : > { %v2430_v10 = vpop.f32.mrf.mxu1  ;;  %v2874_v32 = vunpack.c.l.b16 %v2855_v50 }
 0x249   : > { %3450 = vst [vmem:[%s5256_s22 + $0x50] sm:$0xff] %v3418_v33  ;;  %v3025_v47 = vadd.f32 %v2961_v17, %v2747_v55  ;;  %v2492_v6 = vadd.f32 %v2430_v10, %v5138_v18  ;;  %v3114_v18 = vsel %vm4435_vm5, %v3992_v20, %v3113_v12 }
 0x24a   : > { %v3226_v45 = vpop.f32.mrf.mxu0  ;;  %v3135_v51 = vunpack.c.l.b16 %v3114_v18 }
 0x24b   : > { %v3287_v15 = vadd.f32 %v3223_v26, %v3025_v47  ;;  %2469 = vmatmul.bf16.gmra.mxu1 %v5141_v9  ;;  %2725 = vmatmul.bf16.gmra.mxu2 %v5144_v31  ;;  %v3117_v26 = vsel %vm4435_vm5, %v3115_v44, %v3116_v3 }
 0x24c   : > { %3003 = vmatmul.bf16.gmra.mxu3 %v5146_v58  ;;  %v2845_v58 = vsel %vm4430_vm4, %v2840_v59, %v2844_v60  ;;  %v3136_v8 = vunpack.c.l.b16 %v3117_v26 }
 0x24d   : > { %3265 = vmatmul.bf16.gmra.mxu0 %v2341_v34  ;;  %v3387_v42 = vadd.f32 %v5248_v46, %v3287_v15  ;;  %v2873_v57 = vunpack.c.l.b16 %v2845_v58 }
 0x24e   : > { %v2686_v38 = vpop.f32.mrf.mxu2  ;;  %v3137_v17 = vpack.c.b16 %v3136_v8, %v3135_v51 }
 0x24f   : > { %v3419_v16 = vmax.f32 %v3387_v42, 0.0  ;;  %v2748_v9 = vadd.f32 %v2686_v38, %v2492_v6  ;;  %v2964_v40 = vpop.f32.mrf.mxu3  ;;  %v2875_v55 = vpack.c.b16 %v2874_v32, %v2873_v57 }
 0x250   : > { %v2432_v31 = vpop.f32.mrf.mxu1 }
 0x251   : > { %3451 = vst [vmem:[%s5256_s22 + $0x58] sm:$0xff] %v3419_v16  ;;  %v3026_v52 = vadd.f32 %v2964_v40, %v2748_v9  ;;  %v2493_v23 = vadd.f32 %v2432_v31, %v5150_v27 }
 0x252   : > { %v3228_v56 = vpop.f32.mrf.mxu0 }
 0x253   : > { %v3288_v4 = vadd.f32 %v3226_v45, %v3026_v52 }
 0x255   : > { %v3388_v60 = vadd.f32 %v5248_v46, %v3288_v4 }
 0x256   : > { %v2688_v63 = vpop.f32.mrf.mxu2 }
 0x257   : > { %v3420_v35 = vmax.f32 %v3388_v60, 0.0  ;;  %v2749_v29 = vadd.f32 %v2688_v63, %v2493_v23  ;;  %v2966_v30 = vpop.f32.mrf.mxu3 }
 0x258   : > { %v2435_v33 = vpop.f32.mrf.mxu1 }
 0x259   : > { %3452 = vst [vmem:[%s5256_s22 + $0x60] sm:$0xff] %v3420_v35  ;;  %v3027_v37 = vadd.f32 %v2966_v30, %v2749_v29  ;;  %v2494_v27 = vadd.f32 %v2435_v33, %v5155_v22 }
 0x25a   : > { %v3231_v10 = vpop.f32.mrf.mxu0 }
 0x25b   : > { %v3289_v0 = vadd.f32 %v3228_v56, %v3027_v37  ;;  %2474 = vmatmul.bf16.gmra.mxu1 %v2341_v34  ;;  %2730 = vmatmul.bf16.gmra.mxu2 %v4061_v36 }
 0x25c   : > { %3008 = vmatmul.bf16.gmra.mxu3 %v2875_v55 }
 0x25d   : > { %3270 = vmatmul.bf16.gmra.mxu0 %v3137_v17  ;;  %v3389_v48 = vadd.f32 %v5248_v46, %v3289_v0 }
 0x25e   : > { %v2691_v11 = vpop.f32.mrf.mxu2 }
 0x25f   : > { %v3421_v47 = vmax.f32 %v3389_v48, 0.0  ;;  %v2750_v45 = vadd.f32 %v2691_v11, %v2494_v27  ;;  %v2969_v12 = vpop.f32.mrf.mxu3 }
 0x260   : > { %v2437_v15 = vpop.f32.mrf.mxu1 }
 0x261   : > { %3453 = vst [vmem:[%s5256_s22 + $0x68] sm:$0xff] %v3421_v47  ;;  %v3028_v59 = vadd.f32 %v2969_v12, %v2750_v45  ;;  %v2495_v34 = vadd.f32 %v2437_v15, %v5160_v39 }
 0x262   : > { %v3233_v19 = vpop.f32.mrf.mxu0 }
 0x263   : > { %v3290_v54 = vadd.f32 %v3231_v10, %v3028_v59 }
 0x265   : > { %v3390_v20 = vadd.f32 %v5248_v46, %v3290_v54 }
 0x266   : > { %v2693_v42 = vpop.f32.mrf.mxu2 }
 0x267   : > { %v3422_v6 = vmax.f32 %v3390_v20, 0.0  ;;  %v2751_v44 = vadd.f32 %v2693_v42, %v2495_v34  ;;  %v2971_v3 = vpop.f32.mrf.mxu3 }
 0x268   : > { %v2440_v22 = vpop.f32.mrf.mxu1 }
 0x269   : > { %3454 = vst [vmem:[%s5256_s22 + $0x70] sm:$0xff] %v3422_v6  ;;  %v3029_v38 = vadd.f32 %v2971_v3, %v2751_v44  ;;  %v2496_v31 = vadd.f32 %v2440_v22, %v5165_v7 }
 0x26a   : > { %v3236_v16 = vpop.f32.mrf.mxu0 }
 0x26b   : > { %v3291_v9 = vadd.f32 %v3233_v19, %v3029_v38 }
 0x26d   : > { %v3391_v40 = vadd.f32 %v5248_v46, %v3291_v9 }
 0x26e   : > { %v2696_v58 = vpop.f32.mrf.mxu2 }
 0x26f   : > { %v3423_v52 = vmax.f32 %v3391_v40, 0.0  ;;  %v2752_v56 = vadd.f32 %v2696_v58, %v2496_v31  ;;  %v2974_v50 = vpop.f32.mrf.mxu3 }
 0x270   : > { %v2442_v39 = vpop.f32.mrf.mxu1 }
 0x271   : > { %3455 = vst [vmem:[%s5256_s22 + $0x78] sm:$0xff] %v3423_v52  ;;  %v3030_v18 = vadd.f32 %v2974_v50, %v2752_v56  ;;  %v2497_v32 = vadd.f32 %v2442_v39, %v5170_v25 }
 0x272   : > { %v3238_v26 = vpop.f32.mrf.mxu0 }
 0x273   : > { %v3292_v4 = vadd.f32 %v3236_v16, %v3030_v18 }
 0x275   : > { %v3392_v57 = vadd.f32 %v5248_v46, %v3292_v4 }
 0x276   : > { %v2698_v51 = vpop.f32.mrf.mxu2 }
 0x277   : > { %v3424_v8 = vmax.f32 %v3392_v57, 0.0  ;;  %v2753_v60 = vadd.f32 %v2698_v51, %v2497_v32  ;;  %v2976_v23 = vpop.f32.mrf.mxu3 }
 0x278   : > { %v2445_v7 = vpop.f32.mrf.mxu1 }
 0x279   : > { %3456 = vst [vmem:[%s5256_s22 + $0x80] sm:$0xff] %v3424_v8  ;;  %v3031_v63 = vadd.f32 %v2976_v23, %v2753_v60  ;;  %v2498_v36 = vadd.f32 %v2445_v7, %v5175_v1 }
 0x27a   : > { %v3241_v35 = vpop.f32.mrf.mxu0 }
 0x27b   : > { %v3293_v29 = vadd.f32 %v3238_v26, %v3031_v63 }
 0x27d   : > { %v3393_v30 = vadd.f32 %v5248_v46, %v3293_v29 }
 0x27e   : > { %v2701_v33 = vpop.f32.mrf.mxu2 }
 0x27f   : > { %v3425_v55 = vmax.f32 %v3393_v30, 0.0  ;;  %v2754_v17 = vadd.f32 %v2701_v33, %v2498_v36  ;;  %v2979_v37 = vpop.f32.mrf.mxu3 }
 0x280   : > { %v2447_v25 = vpop.f32.mrf.mxu1 }
 0x281   : > { %3457 = vst [vmem:[%s5256_s22 + $0x88] sm:$0xff] %v3425_v55  ;;  %v3032_v10 = vadd.f32 %v2979_v37, %v2754_v17  ;;  %v2499_v11 = vadd.f32 %v2447_v25, %v5180_v5 }
 0x282   : > { %v3243_v0 = vpop.f32.mrf.mxu0 }
 0x283   : > { %v3294_v48 = vadd.f32 %v3241_v35, %v3032_v10 }
 0x285   : > { %v3394_v27 = vadd.f32 %v5248_v46, %v3294_v48 }
 0x286   : > { %v2703_v47 = vpop.f32.mrf.mxu2 }
 0x287   : > { %v3426_v45 = vmax.f32 %v3394_v27, 0.0  ;;  %v2755_v12 = vadd.f32 %v2703_v47, %v2499_v11  ;;  %v2981_v15 = vpop.f32.mrf.mxu3 }
 0x288   : > { %v2450_v1 = vpop.f32.mrf.mxu1 }
 0x289   : > { %3458 = vst [vmem:[%s5256_s22 + $0x90] sm:$0xff] %v3426_v45  ;;  %v3033_v59 = vadd.f32 %v2981_v15, %v2755_v12  ;;  %v2500_v34 = vadd.f32 %v2450_v1, %v5185_v14 }
 0x28a   : > { %v3246_v19 = vpop.f32.mrf.mxu0 }
 0x28b   : > { %v3295_v54 = vadd.f32 %v3243_v0, %v3033_v59 }
 0x28d   : > { %v3395_v20 = vadd.f32 %v5248_v46, %v3295_v54 }
 0x28e   : > { %v2706_v42 = vpop.f32.mrf.mxu2 }
 0x28f   : > { %v3427_v6 = vmax.f32 %v3395_v20, 0.0  ;;  %v2756_v44 = vadd.f32 %v2706_v42, %v2500_v34  ;;  %v2984_v3 = vpop.f32.mrf.mxu3 }
 0x290   : > { %v2452_v5 = vpop.f32.mrf.mxu1 }
 0x291   : > { %3459 = vst [vmem:[%s5256_s22 + $0x98] sm:$0xff] %v3427_v6  ;;  %v3034_v22 = vadd.f32 %v2984_v3, %v2756_v44  ;;  %v2501_v40 = vadd.f32 %v2452_v5, %v5190_v13 }
 0x292   : > { %v3248_v38 = vpop.f32.mrf.mxu0 }
 0x293   : > { %v3296_v16 = vadd.f32 %v3246_v19, %v3034_v22 }
 0x295   : > { %v3396_v9 = vadd.f32 %v5248_v46, %v3296_v16 }
 0x296   : > { %v2708_v31 = vpop.f32.mrf.mxu2 }
 0x297   : > { %v3428_v58 = vmax.f32 %v3396_v9, 0.0  ;;  %v2757_v52 = vadd.f32 %v2708_v31, %v2501_v40  ;;  %v2986_v56 = vpop.f32.mrf.mxu3 }
 0x298   : > { %v2455_v14 = vpop.f32.mrf.mxu1 }
 0x299   : > { %3460 = vst [vmem:[%s5256_s22 + $0xa0] sm:$0xff] %v3428_v58  ;;  %v3035_v50 = vadd.f32 %v2986_v56, %v2757_v52  ;;  %v2502_v4 = vadd.f32 %v2455_v14, %v5195_v53 }
 0x29a   : > { %v3251_v39 = vpop.f32.mrf.mxu0 }
 0x29b   : > { %v3297_v18 = vadd.f32 %v3248_v38, %v3035_v50 }
 0x29d   : > { %v3397_v26 = vadd.f32 %v5248_v46, %v3297_v18 }
 0x29e   : > { %v2711_v57 = vpop.f32.mrf.mxu2 }
 0x29f   : > { %v3429_v32 = vmax.f32 %v3397_v26, 0.0  ;;  %v2758_v51 = vadd.f32 %v2711_v57, %v2502_v4  ;;  %v2989_v8 = vpop.f32.mrf.mxu3 }
 0x2a0   : > { %v2457_v13 = vpop.f32.mrf.mxu1 }
 0x2a1   : > { %3461 = vst [vmem:[%s5256_s22 + $0xa8] sm:$0xff] %v3429_v32  ;;  %v3036_v60 = vadd.f32 %v2989_v8, %v2758_v51  ;;  %v2503_v35 = vadd.f32 %v2457_v13, %v5200_v61 }
 0x2a2   : > { %v3253_v23 = vpop.f32.mrf.mxu0 }
 0x2a3   : > { %v3298_v7 = vadd.f32 %v3251_v39, %v3036_v60 }
 0x2a5   : > { %v3398_v63 = vadd.f32 %v5248_v46, %v3298_v7 }
 0x2a6   : > { %v2713_v29 = vpop.f32.mrf.mxu2 }
 0x2a7   : > { %v3430_v30 = vmax.f32 %v3398_v63, 0.0  ;;  %v2759_v36 = vadd.f32 %v2713_v29, %v2503_v35  ;;  %v2991_v33 = vpop.f32.mrf.mxu3 }
 0x2a8   : > { %v2460_v53 = vpop.f32.mrf.mxu1 }
 0x2a9   : > { %3462 = vst [vmem:[%s5256_s22 + $0xb0] sm:$0xff] %v3430_v30  ;;  %v3037_v55 = vadd.f32 %v2991_v33, %v2759_v36  ;;  %v2504_v10 = vadd.f32 %v2460_v53, %v5205_v2 }
 0x2aa   : > { %v3256_v17 = vpop.f32.mrf.mxu0 }
 0x2ab   : > { %v3299_v37 = vadd.f32 %v3253_v23, %v3037_v55 }
 0x2ad   : > { %v3399_v25 = vadd.f32 %v5248_v46, %v3299_v37 }
 0x2ae   : > { %v2716_v0 = vpop.f32.mrf.mxu2 }
 0x2af   : > { %v3431_v48 = vmax.f32 %v3399_v25, 0.0  ;;  %v2760_v27 = vadd.f32 %v2716_v0, %v2504_v10  ;;  %v2994_v11 = vpop.f32.mrf.mxu3 }
 0x2b0   : > { %v2462_v61 = vpop.f32.mrf.mxu1 }
 0x2b1   : > { %3463 = vst [vmem:[%s5256_s22 + $0xb8] sm:$0xff] %v3431_v48  ;;  %v3038_v47 = vadd.f32 %v2994_v11, %v2760_v27  ;;  %v2505_v1 = vadd.f32 %v2462_v61, %v5210_v21 }
 0x2b2   : > { %v3258_v45 = vpop.f32.mrf.mxu0 }
 0x2b3   : > { %v3300_v12 = vadd.f32 %v3256_v17, %v3038_v47 }
 0x2b5   : > { %v3400_v15 = vadd.f32 %v5248_v46, %v3300_v12 }
 0x2b6   : > { %v2718_v59 = vpop.f32.mrf.mxu2 }
 0x2b7   : > { %v3432_v19 = vmax.f32 %v3400_v15, 0.0  ;;  %v2761_v54 = vadd.f32 %v2718_v59, %v2505_v1  ;;  %v2996_v20 = vpop.f32.mrf.mxu3 }
 0x2b8   : > { %v2465_v2 = vpop.f32.mrf.mxu1 }
 0x2b9   : > { %3464 = vst [vmem:[%s5256_s22 + $0xc0] sm:$0xff] %v3432_v19  ;;  %v3039_v34 = vadd.f32 %v2996_v20, %v2761_v54  ;;  %v2506_v3 = vadd.f32 %v2465_v2, %v5215_v28 }
 0x2ba   : > { %v3261_v42 = vpop.f32.mrf.mxu0 }
 0x2bb   : > { %v3301_v6 = vadd.f32 %v3258_v45, %v3039_v34 }
 0x2bd   : > { %v3401_v44 = vadd.f32 %v5248_v46, %v3301_v6 }
 0x2be   : > { %v2721_v5 = vpop.f32.mrf.mxu2 }
 0x2bf   : > { %v3433_v22 = vmax.f32 %v3401_v44, 0.0  ;;  %v2762_v38 = vadd.f32 %v2721_v5, %v2506_v3  ;;  %v2999_v16 = vpop.f32.mrf.mxu3 }
 0x2c0   : > { %v2467_v21 = vpop.f32.mrf.mxu1 }
 0x2c1   : > { %3465 = vst [vmem:[%s5256_s22 + $0xc8] sm:$0xff] %v3433_v22  ;;  %v3040_v9 = vadd.f32 %v2999_v16, %v2762_v38  ;;  %v2507_v52 = vadd.f32 %v2467_v21, %v5220_v43 }
 0x2c2   : > { %v3263_v40 = vpop.f32.mrf.mxu0 }
 0x2c3   : > { %v3302_v31 = vadd.f32 %v3261_v42, %v3040_v9 }
 0x2c5   : > { %v3402_v58 = vadd.f32 %v5248_v46, %v3302_v31 }
 0x2c6   : > { %v2723_v56 = vpop.f32.mrf.mxu2 }
 0x2c7   : > { %v3434_v14 = vmax.f32 %v3402_v58, 0.0  ;;  %v2763_v50 = vadd.f32 %v2723_v56, %v2507_v52  ;;  %v3001_v39 = vpop.f32.mrf.mxu3 }
 0x2c8   : > { %v2470_v28 = vpop.f32.mrf.mxu1 }
 0x2c9   : > { %3466 = vst [vmem:[%s5256_s22 + $0xd0] sm:$0xff] %v3434_v14  ;;  %v3041_v18 = vadd.f32 %v3001_v39, %v2763_v50  ;;  %v2508_v32 = vadd.f32 %v2470_v28, %v5225_v49 }
 0x2ca   : > { %v3266_v4 = vpop.f32.mrf.mxu0 }
 0x2cb   : > { %v3303_v26 = vadd.f32 %v3263_v40, %v3041_v18 }
 0x2cd   : > { %v3403_v57 = vadd.f32 %v5248_v46, %v3303_v26 }
 0x2ce   : > { %v2726_v51 = vpop.f32.mrf.mxu2 }
 0x2cf   : > { %v3435_v8 = vmax.f32 %v3403_v57, 0.0  ;;  %v2764_v13 = vadd.f32 %v2726_v51, %v2508_v32  ;;  %v3004_v60 = vpop.f32.mrf.mxu3 }
 0x2d0   : > { %v2472_v43 = vpop.f32.mrf.mxu1 }
 0x2d1   : > { %3467 = vst [vmem:[%s5256_s22 + $0xd8] sm:$0xff] %v3435_v8  ;;  %v3042_v23 = vadd.f32 %v3004_v60, %v2764_v13  ;;  %v2509_v35 = vadd.f32 %v2472_v43, %v5230_v24 }
 0x2d2   : > { %v3268_v29 = vpop.f32.mrf.mxu0 }
 0x2d3   : > { %v3304_v7 = vadd.f32 %v3266_v4, %v3042_v23 }
 0x2d5   : > { %v3404_v63 = vadd.f32 %v5248_v46, %v3304_v7 }
 0x2d6   : > { %v2728_v30 = vpop.f32.mrf.mxu2 }
 0x2d7   : > { %v3436_v36 = vmax.f32 %v3404_v63, 0.0  ;;  %v2765_v33 = vadd.f32 %v2728_v30, %v2509_v35  ;;  %v3006_v53 = vpop.f32.mrf.mxu3 }
 0x2d8   : > { %v2475_v49 = vpop.f32.mrf.mxu1 }
 0x2d9   : > { %3468 = vst [vmem:[%s5256_s22 + $0xe0] sm:$0xff] %v3436_v36  ;;  %v3043_v55 = vadd.f32 %v3006_v53, %v2765_v33  ;;  %v2510_v25 = vadd.f32 %v2475_v49, %v5235_v41 }
 0x2da   : > { %v3271_v24 = vpop.f32.mrf.mxu0 }
 0x2db   : > { %v3305_v17 = vadd.f32 %v3268_v29, %v3043_v55 }
 0x2dd   : > { %v3405_v37 = vadd.f32 %v5248_v46, %v3305_v17 }
 0x2de   : > { %v2731_v10 = vpop.f32.mrf.mxu2 }
 0x2df   : > { %v3437_v0 = vmax.f32 %v3405_v37, 0.0  ;;  %v2766_v48 = vadd.f32 %v2731_v10, %v2510_v25  ;;  %v3009_v27 = vpop.f32.mrf.mxu3 }
 0x2e0   : > { %v2477_v61 = vpop.f32.mrf.mxu1 }
 0x2e1   : > { %3469 = vst [vmem:[%s5256_s22 + $0xe8] sm:$0xff] %v3437_v0  ;;  %v3044_v11 = vadd.f32 %v3009_v27, %v2766_v48  ;;  %v2511_v12 = vadd.f32 %v2477_v61, %v5240_v62 }
 0x2e2   : > { %v3273_v54 = vpop.f32.mrf.mxu0 }
 0x2e3   : > { %v3306_v47 = vadd.f32 %v3271_v24, %v3044_v11 }
 0x2e5   : > { %v3406_v45 = vadd.f32 %v5248_v46, %v3306_v47 }
 0x2e6   : > { %v2733_v15 = vpop.f32.mrf.mxu2 }
 0x2e7   : > { %v3438_v1 = vmax.f32 %v3406_v45, 0.0  ;;  %v2767_v59 = vadd.f32 %v2733_v15, %v2511_v12  ;;  %v3011_v19 = vpop.f32.mrf.mxu3 }
 0x2e9   : > { %3470 = vst [vmem:[%s5256_s22 + $0xf0] sm:$0xff] %v3438_v1  ;;  %v3045_v41 = vadd.f32 %v3011_v19, %v2767_v59 }
 0x2eb   : > { %v3307_v20 = vadd.f32 %v3273_v54, %v3045_v41 }
 0x2ed   : > { %v3407_v2 = vadd.f32 %v5248_v46, %v3307_v20 }
 0x2ef   : > { %v3439_v34 = vmax.f32 %v3407_v2, 0.0 }
 0x2f1   : > { %3471 = vst [vmem:[%s5256_s22 + $0xf8] sm:$0xff] %v3439_v34 }
 0x2f2 PF: > { %s13_s12 = sadd.s32 1, %s4188_s12  }
 0x2f3   : > { %p10_p4 = scmp.ge.s32.totalorder %s13_s12, 4  }
 0x2f5   :  { %12 = sbr.rel (!%p10_p4) target bundleno = 1 (0x1), region = 70 }

</bundles_post_ra>
